<compile_context>
chip_gen: v5e
topology: v5e:2x2
jax: 0.10.0
libtpu: 0.0.40
codegen_flags: <defaults>
</compile_context>

<pallas_src>
import functools
import math

import jax
import jax.numpy as jnp
from jax.experimental import pallas as pl
from jax.experimental.pallas import tpu as pltpu

# bf16 operands on the MXU (f32 accumulation); keep BN/ReLU/residual in f32.
_MXU_DTYPE = jnp.bfloat16

_CP = pltpu.CompilerParams(
    dimension_semantics=("parallel",),      # shard grid steps over both TCs on v7x
    vmem_limit_bytes=32 * 1024 * 1024,      # demo footprint is a few MiB/step
)


def _dot(a, b):
    return jnp.dot(a.astype(_MXU_DTYPE), b.astype(_MXU_DTYPE),
                   preferred_element_type=jnp.float32)


def _pick_batch_tile(n, cap=4):
    """Largest Nb <= cap dividing n that still leaves >= 2 grid steps (v7x)."""
    for nb in range(min(cap, n), 0, -1):
        if n % nb == 0 and n // nb >= 2:
            return nb
    return 1


# --------------------------- fused bottleneck kernel ------------------------ #

@functools.partial(jax.jit, static_argnames=("stride",))
def bottleneck_forward_nhwc(x, params, *, stride):
    """Pre-activation bottleneck forward on NHWC input (N, H, W, Cin) f32."""
    x = x.astype(jnp.float32)
    N, H, W, Cin = x.shape
    C1 = params["w1"].shape[1]
    C2 = params["w3"].shape[0]
    Cout = params["w3"].shape[1]
    has_ds = "wd" in params
    Ho = (H + 2 - 3) // stride + 1
    Wo = (W + 2 - 3) // stride + 1
    if not has_ds:
        assert stride == 1 and Cin == Cout, "identity residual needs matching shape"
    Nb = _pick_batch_tile(N)                 # images per grid step
    M1 = Nb * H * W
    Mo = Nb * Ho * Wo

    def kernel(x_ref, s1_ref, b1_ref, w1_ref, s2_ref, b2_ref, w2_ref,
               s3_ref, b3_ref, w3_ref, *rest):
        if has_ds:
            wd_ref, o_ref, hp_ref = rest
        else:
            o_ref, hp_ref = rest

        def sds(start, size):                # stride-aware slice
            return pl.ds(start, size, stride) if stride > 1 else pl.ds(start, size)

        # ---- bn1 + relu fused prologue, then conv1 (1x1) on the MXU ----
        x2d = x_ref[...].reshape(M1, Cin)
        h1 = jnp.maximum(x2d * s1_ref[...] + b1_ref[...], 0.0)
        o1 = _dot(h1, w1_ref[...])                               # (M1, C1) f32

        # ---- bn2 + relu, staged into the interior of a zero-halo scratch ----
        h2 = jnp.maximum(o1 * s2_ref[...] + b2_ref[...], 0.0)
        # Zero only the 1-wide halo; the interior is fully overwritten below.
        zrow = jnp.zeros((Nb, 1, W + 2, C1), jnp.float32)
        zcol = jnp.zeros((Nb, H, 1, C1), jnp.float32)
        hp_ref[:, 0:1, :, :] = zrow
        hp_ref[:, H + 1:H + 2, :, :] = zrow
        hp_ref[:, 1:H + 1, 0:1, :] = zcol
        hp_ref[:, 1:H + 1, W + 1:W + 2, :] = zcol
        hp_ref[:, 1:H + 1, 1:W + 1, :] = h2.reshape(Nb, H, W, C1)

        # ---- conv2 (3x3, stride): ONE K = 9*C1 dot on an in-VMEM im2col slab ----
        taps = [hp_ref[:, sds(dh, Ho), sds(dw, Wo), :]
                for dh in range(3) for dw in range(3)]            # 9 x (Nb,Ho,Wo,C1)
        slab = jnp.concatenate(taps, axis=-1).reshape(Mo, 9 * C1)
        o2 = _dot(slab, w2_ref[...])                              # (Mo, C2) f32

        # ---- bn3 + relu + conv3 (1x1) + residual, fused epilogue ----
        h3 = jnp.maximum(o2 * s3_ref[...] + b3_ref[...], 0.0)
        out = _dot(h3, w3_ref[...])                               # (Mo, Cout)
        if has_ds:
            xs = x_ref[:, sds(0, Ho), sds(0, Wo), :]              # strided 1x1 downsample
            out = out + _dot(xs.reshape(Mo, Cin), wd_ref[...])
        else:
            out = out + x2d                                       # reuse loaded x
        o_ref[...] = out.reshape(Nb, Ho, Wo, Cout)

    in_specs = [
        pl.BlockSpec((Nb, H, W, Cin), lambda n: (n, 0, 0, 0)),    # x (Nb images / step)
        pl.BlockSpec((1, Cin), lambda n: (0, 0)),                 # bn1 scale
        pl.BlockSpec((1, Cin), lambda n: (0, 0)),                 # bn1 bias
        pl.BlockSpec((Cin, C1), lambda n: (0, 0)),                # conv1 (1x1), bf16
        pl.BlockSpec((1, C1), lambda n: (0, 0)),                  # bn2 scale
        pl.BlockSpec((1, C1), lambda n: (0, 0)),                  # bn2 bias
        pl.BlockSpec((9 * C1, C2), lambda n: (0, 0)),             # conv2 taps, (9*C1, C2) bf16
        pl.BlockSpec((1, C2), lambda n: (0, 0)),                  # bn3 scale
        pl.BlockSpec((1, C2), lambda n: (0, 0)),                  # bn3 bias
        pl.BlockSpec((C2, Cout), lambda n: (0, 0)),               # conv3 (1x1), bf16
    ]
    args = [x, params["s1"], params["b1"], params["w1"],
            params["s2"], params["b2"], params["w2"],
            params["s3"], params["b3"], params["w3"]]
    if has_ds:
        in_specs.append(pl.BlockSpec((Cin, Cout), lambda n: (0, 0)))   # downsample 1x1
        args.append(params["wd"])

    return pl.pallas_call(
        kernel,
        out_shape=jax.ShapeDtypeStruct((N, Ho, Wo, Cout), jnp.float32),
        grid=(N // Nb,),
        in_specs=in_specs,
        out_specs=pl.BlockSpec((Nb, Ho, Wo, Cout), lambda n: (n, 0, 0, 0)),
        scratch_shapes=[pltpu.VMEM((Nb, H + 2, W + 2, C1), jnp.float32)],  # padded bn2 out
        compiler_params=_CP,
    )(*args)


@functools.partial(jax.jit, static_argnames=("stride",))
def bottleneck_forward(x_nchw, params, *, stride):
    """PyTorch-layout (NCHW) entry point.  When chaining blocks, keep
    activations NHWC and call bottleneck_forward_nhwc to avoid this
    transpose pair."""
    x = jnp.transpose(x_nchw, (0, 2, 3, 1))
    y = bottleneck_forward_nhwc(x, params, stride=stride)
    return jnp.transpose(y, (0, 3, 1, 2))


# ------------------------------ parameter setup ----------------------------- #

def _conv_weight(key, cout, cin, k):
    # preresnet init: normal(0, sqrt(2 / (k*k*cout))), torch layout (cout,cin,k,k)
    std = math.sqrt(2.0 / (k * k * cout))
    return std * jax.random.normal(key, (cout, cin, k, k), jnp.float32)


def _bn_fold(key, c, eps=1e-5):
    # Eval-mode BatchNorm folded to per-channel scale/bias:
    #   y = gamma * (x - mean) * rsqrt(var + eps) + beta = x * scale + bias
    kg, kb, km, kv = jax.random.split(key, 4)
    gamma = 1.0 + 0.1 * jax.random.normal(kg, (c,), jnp.float32)
    beta = 0.1 * jax.random.normal(kb, (c,), jnp.float32)
    mean = 0.1 * jax.random.normal(km, (c,), jnp.float32)
    var = jnp.abs(1.0 + 0.1 * jax.random.normal(kv, (c,), jnp.float32))
    scale = gamma * jax.lax.rsqrt(var + eps)
    bias = beta - mean * scale
    return scale[None, :], bias[None, :]


def init_bottleneck_params(key, *, inplanes, planes, cfg, stride, expansion=4):
    cout = planes * expansion
    k = jax.random.split(key, 7)
    p = {}
    p["s1"], p["b1"] = _bn_fold(k[0], inplanes)
    p["w1"] = _conv_weight(k[1], cfg[1], cfg[0], 1)[:, :, 0, 0].T.astype(_MXU_DTYPE)
    p["s2"], p["b2"] = _bn_fold(k[2], cfg[1])
    w2 = _conv_weight(k[3], cfg[2], cfg[1], 3)                      # (C2, C1, 3, 3)
    # (kh, kw, cin, cout) flattened to (9*C1, C2): K ordered (dh, dw, c1) to
    # match the in-kernel im2col slab -> conv2 becomes a single MXU dot.
    p["w2"] = jnp.transpose(w2, (2, 3, 1, 0)).reshape(9 * cfg[1], cfg[2]).astype(_MXU_DTYPE)
    p["s3"], p["b3"] = _bn_fold(k[4], cfg[2])
    p["w3"] = _conv_weight(k[5], cout, cfg[2], 1)[:, :, 0, 0].T.astype(_MXU_DTYPE)
    if stride != 1 or inplanes != cout:
        p["wd"] = _conv_weight(k[6], cout, inplanes, 1)[:, :, 0, 0].T.astype(_MXU_DTYPE)
    return p


# ------------------------------ pure-JAX reference -------------------------- #

def bottleneck_reference(x_nchw, p, stride):
    """Reference with the same bf16-operand / f32-accumulate matmul contract."""
    x = jnp.transpose(x_nchw, (0, 2, 3, 1)).astype(jnp.float32)
    bnrelu = lambda h, s, b: jnp.maximum(h * s[0] + b[0], 0.0)
    mm = lambda h, w: jnp.einsum("nhwc,cd->nhwd", h.astype(_MXU_DTYPE),
                                 w.astype(_MXU_DTYPE),
                                 preferred_element_type=jnp.float32)
    c1 = p["w1"].shape[1]
    c2 = p["w3"].shape[0]
    h = mm(bnrelu(x, p["s1"], p["b1"]), p["w1"])
    h = bnrelu(h, p["s2"], p["b2"])
    h = jax.lax.conv_general_dilated(
        h.astype(_MXU_DTYPE), p["w2"].reshape(3, 3, c1, c2).astype(_MXU_DTYPE),
        (stride, stride), ((1, 1), (1, 1)),
        dimension_numbers=("NHWC", "HWIO", "NHWC"),
        preferred_element_type=jnp.float32)
    h = mm(bnrelu(h, p["s3"], p["b3"]), p["w3"])
    if "wd" in p:
        res = mm(x[:, ::stride, ::stride, :], p["wd"])
    else:
        res = x
    return jnp.transpose(h + res, (0, 3, 1, 2))


# ------------------------------------ main ----------------------------------- #

if __name__ == "__main__":
    key = jax.random.PRNGKey(0)
    kpa, kxa, kpb, kxb = jax.random.split(key, 4)

    # Config A: down-sampling block — inplanes=64, planes=32 (expansion 4 ->
    # Cout=128, lane-dense output), cfg=[64,32,32], stride=2, 1x1/s2 downsample.
    # N=8 -> Nb=4 images/grid-step, 2 grid steps (both v7x TensorCores busy).
    pA = init_bottleneck_params(kpa, inplanes=64, planes=32, cfg=(64, 32, 32), stride=2)
    xA = jax.random.normal(kxa, (8, 64, 16, 16), jnp.float32)
    outA = jax.block_until_ready(bottleneck_forward(xA, pA, stride=2))
    refA = bottleneck_reference(xA, pA, 2)
    assert outA.shape == (8, 128, 8, 8), outA.shape
    errA = float(jnp.max(jnp.abs(outA - refA)))
    assert errA < 1e-2, f"config A mismatch: max abs err {errA}"

    # Config B: identity-residual block — inplanes = Cout = 128, stride=1.
    pB = init_bottleneck_params(kpb, inplanes=128, planes=32, cfg=(128, 32, 32), stride=1)
    xB = jax.random.normal(kxb, (8, 128, 16, 16), jnp.float32)
    outB = jax.block_until_ready(bottleneck_forward(xB, pB, stride=1))
    refB = bottleneck_reference(xB, pB, 1)
    assert outB.shape == (8, 128, 16, 16), outB.shape
    errB = float(jnp.max(jnp.abs(outB - refB)))
    assert errB < 1e-2, f"config B mismatch: max abs err {errB}"

    assert bool(jnp.all(jnp.isfinite(outA))) and bool(jnp.all(jnp.isfinite(outB)))
    print("KERNEL_OK")
</pallas_src>

<mosaic_0001>
module attributes {stable_mosaic.version = 11 : i64} {
  func.func @kernel(%arg0: i32, %arg1: memref<4x16x16x64xf32, #tpu.memory_space<vmem>>, %arg2: memref<1x64xf32, #tpu.memory_space<vmem>>, %arg3: memref<1x64xf32, #tpu.memory_space<vmem>>, %arg4: memref<64x32xbf16, #tpu.memory_space<vmem>>, %arg5: memref<1x32xf32, #tpu.memory_space<vmem>>, %arg6: memref<1x32xf32, #tpu.memory_space<vmem>>, %arg7: memref<288x32xbf16, #tpu.memory_space<vmem>>, %arg8: memref<1x32xf32, #tpu.memory_space<vmem>>, %arg9: memref<1x32xf32, #tpu.memory_space<vmem>>, %arg10: memref<32x128xbf16, #tpu.memory_space<vmem>>, %arg11: memref<64x128xbf16, #tpu.memory_space<vmem>>, %arg12: memref<4x8x8x128xf32, #tpu.memory_space<vmem>>, %arg13: memref<4x18x18x32xf32, #tpu.memory_space<vmem>>) attributes {dimension_semantics = [#tpu.dimension_semantics<parallel>], iteration_bounds = array<i64: 2>, scalar_prefetch = 0 : i64, scratch_operands = 1 : i64, tpu.core_type = #tpu.core_type<tc>, window_params = [{transform_indices = @transform_0, window_bounds = array<i64: 4, 16, 16, 64>}, {pipeline_mode = #tpu.pipeline_mode<synchronous>, transform_indices = @transform_1, window_bounds = array<i64: 1, 64>}, {pipeline_mode = #tpu.pipeline_mode<synchronous>, transform_indices = @transform_2, window_bounds = array<i64: 1, 64>}, {pipeline_mode = #tpu.pipeline_mode<synchronous>, transform_indices = @transform_3, window_bounds = array<i64: 64, 32>}, {pipeline_mode = #tpu.pipeline_mode<synchronous>, transform_indices = @transform_4, window_bounds = array<i64: 1, 32>}, {pipeline_mode = #tpu.pipeline_mode<synchronous>, transform_indices = @transform_5, window_bounds = array<i64: 1, 32>}, {pipeline_mode = #tpu.pipeline_mode<synchronous>, transform_indices = @transform_6, window_bounds = array<i64: 288, 32>}, {pipeline_mode = #tpu.pipeline_mode<synchronous>, transform_indices = @transform_7, window_bounds = array<i64: 1, 32>}, {pipeline_mode = #tpu.pipeline_mode<synchronous>, transform_indices = @transform_8, window_bounds = array<i64: 1, 32>}, {pipeline_mode = #tpu.pipeline_mode<synchronous>, transform_indices = @transform_9, window_bounds = array<i64: 32, 128>}, {pipeline_mode = #tpu.pipeline_mode<synchronous>, transform_indices = @transform_10, window_bounds = array<i64: 64, 128>}, {transform_indices = @transform_11, window_bounds = array<i64: 4, 8, 8, 128>}]} {
    %c0 = arith.constant 0 : index
    %c0_0 = arith.constant 0 : index
    %c0_1 = arith.constant 0 : index
    %c0_2 = arith.constant 0 : index
    %0 = vector.load %arg1[%c0, %c0_0, %c0_1, %c0_2] : memref<4x16x16x64xf32, #tpu.memory_space<vmem>>, vector<4x16x16x64xf32>
    %1 = vector.shape_cast %0 : vector<4x16x16x64xf32> to vector<1024x64xf32>
    %c0_3 = arith.constant 0 : index
    %c0_4 = arith.constant 0 : index
    %2 = vector.load %arg2[%c0_3, %c0_4] : memref<1x64xf32, #tpu.memory_space<vmem>>, vector<1x64xf32>
    %3 = vector.broadcast %2 : vector<1x64xf32> to vector<1024x64xf32>
    %4 = arith.mulf %1, %3 : vector<1024x64xf32>
    %c0_5 = arith.constant 0 : index
    %c0_6 = arith.constant 0 : index
    %5 = vector.load %arg3[%c0_5, %c0_6] : memref<1x64xf32, #tpu.memory_space<vmem>>, vector<1x64xf32>
    %6 = vector.broadcast %5 : vector<1x64xf32> to vector<1024x64xf32>
    %7 = arith.addf %4, %6 : vector<1024x64xf32>
    %cst = arith.constant 0.000000e+00 : f32
    %8 = vector.broadcast %cst : f32 to vector<1024x64xf32>
    %9 = arith.maximumf %7, %8 : vector<1024x64xf32>
    %c0_7 = arith.constant 0 : index
    %c0_8 = arith.constant 0 : index
    %10 = vector.load %arg4[%c0_7, %c0_8] : memref<64x32xbf16, #tpu.memory_space<vmem>>, vector<64x32xbf16>
    %11 = arith.truncf %9 : vector<1024x64xf32> to vector<1024x64xbf16>
    %cst_9 = arith.constant dense<0.000000e+00> : vector<1024x32xf32>
    %12 = tpu.matmul %11, %10, %cst_9 {dimension_numbers = #tpu.dot_dimension_numbers<[1], [0], [0], [1], [0, 0, 1, 1], [], []>} : vector<1024x64xbf16>, vector<64x32xbf16>, vector<1024x32xf32> -> vector<1024x32xf32>
    %c0_10 = arith.constant 0 : index
    %c0_11 = arith.constant 0 : index
    %13 = vector.load %arg5[%c0_10, %c0_11] : memref<1x32xf32, #tpu.memory_space<vmem>>, vector<1x32xf32>
    %14 = vector.broadcast %13 : vector<1x32xf32> to vector<1024x32xf32>
    %15 = arith.mulf %12, %14 : vector<1024x32xf32>
    %c0_12 = arith.constant 0 : index
    %c0_13 = arith.constant 0 : index
    %16 = vector.load %arg6[%c0_12, %c0_13] : memref<1x32xf32, #tpu.memory_space<vmem>>, vector<1x32xf32>
    %17 = vector.broadcast %16 : vector<1x32xf32> to vector<1024x32xf32>
    %18 = arith.addf %15, %17 : vector<1024x32xf32>
    %cst_14 = arith.constant 0.000000e+00 : f32
    %19 = vector.broadcast %cst_14 : f32 to vector<1024x32xf32>
    %20 = arith.maximumf %18, %19 : vector<1024x32xf32>
    %cst_15 = arith.constant 0.000000e+00 : f32
    %21 = vector.broadcast %cst_15 : f32 to vector<4x1x18x32xf32>
    %cst_16 = arith.constant 0.000000e+00 : f32
    %22 = vector.broadcast %cst_16 : f32 to vector<4x16x1x32xf32>
    %c0_17 = arith.constant 0 : index
    %c0_18 = arith.constant 0 : index
    %c0_19 = arith.constant 0 : index
    %c0_20 = arith.constant 0 : index
    %23 = vector.load %arg13[%c0_17, %c0_18, %c0_19, %c0_20] : memref<4x18x18x32xf32, #tpu.memory_space<vmem>>, vector<4x1x18x32xf32>
    tpu.vector_store %arg13[%c0_17, %c0_18, %c0_19, %c0_20], %21 {strides = array<i32>} : memref<4x18x18x32xf32, #tpu.memory_space<vmem>>, vector<4x1x18x32xf32>,
    %c0_21 = arith.constant 0 : index
    %c17 = arith.constant 17 : index
    %c0_22 = arith.constant 0 : index
    %c0_23 = arith.constant 0 : index
    %24 = vector.load %arg13[%c0_21, %c17, %c0_22, %c0_23] : memref<4x18x18x32xf32, #tpu.memory_space<vmem>>, vector<4x1x18x32xf32>
    tpu.vector_store %arg13[%c0_21, %c17, %c0_22, %c0_23], %21 {strides = array<i32>} : memref<4x18x18x32xf32, #tpu.memory_space<vmem>>, vector<4x1x18x32xf32>,
    %c0_24 = arith.constant 0 : index
    %c1 = arith.constant 1 : index
    %c0_25 = arith.constant 0 : index
    %c0_26 = arith.constant 0 : index
    %25 = vector.load %arg13[%c0_24, %c1, %c0_25, %c0_26] : memref<4x18x18x32xf32, #tpu.memory_space<vmem>>, vector<4x16x1x32xf32>
    tpu.vector_store %arg13[%c0_24, %c1, %c0_25, %c0_26], %22 {strides = array<i32>} : memref<4x18x18x32xf32, #tpu.memory_space<vmem>>, vector<4x16x1x32xf32>,
    %c0_27 = arith.constant 0 : index
    %c1_28 = arith.constant 1 : index
    %c17_29 = arith.constant 17 : index
    %c0_30 = arith.constant 0 : index
    %26 = vector.load %arg13[%c0_27, %c1_28, %c17_29, %c0_30] : memref<4x18x18x32xf32, #tpu.memory_space<vmem>>, vector<4x16x1x32xf32>
    tpu.vector_store %arg13[%c0_27, %c1_28, %c17_29, %c0_30], %22 {strides = array<i32>} : memref<4x18x18x32xf32, #tpu.memory_space<vmem>>, vector<4x16x1x32xf32>,
    %27 = vector.shape_cast %20 : vector<1024x32xf32> to vector<4x16x16x32xf32>
    %c0_31 = arith.constant 0 : index
    %c1_32 = arith.constant 1 : index
    %c1_33 = arith.constant 1 : index
    %c0_34 = arith.constant 0 : index
    %28 = vector.load %arg13[%c0_31, %c1_32, %c1_33, %c0_34] : memref<4x18x18x32xf32, #tpu.memory_space<vmem>>, vector<4x16x16x32xf32>
    tpu.vector_store %arg13[%c0_31, %c1_32, %c1_33, %c0_34], %27 {strides = array<i32>} : memref<4x18x18x32xf32, #tpu.memory_space<vmem>>, vector<4x16x16x32xf32>,
    %c0_35 = arith.constant 0 : index
    %c0_36 = arith.constant 0 : index
    %c0_37 = arith.constant 0 : index
    %c0_38 = arith.constant 0 : index
    %29 = tpu.strided_load %arg13[%c0_35, %c0_36, %c0_37, %c0_38] {strides = array<i32: 1, 2, 2, 1>} : memref<4x18x18x32xf32, #tpu.memory_space<vmem>>, vector<4x8x8x32xf32>
    %c0_39 = arith.constant 0 : index
    %c0_40 = arith.constant 0 : index
    %c1_41 = arith.constant 1 : index
    %c0_42 = arith.constant 0 : index
    %30 = tpu.strided_load %arg13[%c0_39, %c0_40, %c1_41, %c0_42] {strides = array<i32: 1, 2, 2, 1>} : memref<4x18x18x32xf32, #tpu.memory_space<vmem>>, vector<4x8x8x32xf32>
    %c0_43 = arith.constant 0 : index
    %c0_44 = arith.constant 0 : index
    %c2 = arith.constant 2 : index
    %c0_45 = arith.constant 0 : index
    %31 = tpu.strided_load %arg13[%c0_43, %c0_44, %c2, %c0_45] {strides = array<i32: 1, 2, 2, 1>} : memref<4x18x18x32xf32, #tpu.memory_space<vmem>>, vector<4x8x8x32xf32>
    %c0_46 = arith.constant 0 : index
    %c1_47 = arith.constant 1 : index
    %c0_48 = arith.constant 0 : index
    %c0_49 = arith.constant 0 : index
    %32 = tpu.strided_load %arg13[%c0_46, %c1_47, %c0_48, %c0_49] {strides = array<i32: 1, 2, 2, 1>} : memref<4x18x18x32xf32, #tpu.memory_space<vmem>>, vector<4x8x8x32xf32>
    %c0_50 = arith.constant 0 : index
    %c1_51 = arith.constant 1 : index
    %c1_52 = arith.constant 1 : index
    %c0_53 = arith.constant 0 : index
    %33 = tpu.strided_load %arg13[%c0_50, %c1_51, %c1_52, %c0_53] {strides = array<i32: 1, 2, 2, 1>} : memref<4x18x18x32xf32, #tpu.memory_space<vmem>>, vector<4x8x8x32xf32>
    %c0_54 = arith.constant 0 : index
    %c1_55 = arith.constant 1 : index
    %c2_56 = arith.constant 2 : index
    %c0_57 = arith.constant 0 : index
    %34 = tpu.strided_load %arg13[%c0_54, %c1_55, %c2_56, %c0_57] {strides = array<i32: 1, 2, 2, 1>} : memref<4x18x18x32xf32, #tpu.memory_space<vmem>>, vector<4x8x8x32xf32>
    %c0_58 = arith.constant 0 : index
    %c2_59 = arith.constant 2 : index
    %c0_60 = arith.constant 0 : index
    %c0_61 = arith.constant 0 : index
    %35 = tpu.strided_load %arg13[%c0_58, %c2_59, %c0_60, %c0_61] {strides = array<i32: 1, 2, 2, 1>} : memref<4x18x18x32xf32, #tpu.memory_space<vmem>>, vector<4x8x8x32xf32>
    %c0_62 = arith.constant 0 : index
    %c2_63 = arith.constant 2 : index
    %c1_64 = arith.constant 1 : index
    %c0_65 = arith.constant 0 : index
    %36 = tpu.strided_load %arg13[%c0_62, %c2_63, %c1_64, %c0_65] {strides = array<i32: 1, 2, 2, 1>} : memref<4x18x18x32xf32, #tpu.memory_space<vmem>>, vector<4x8x8x32xf32>
    %c0_66 = arith.constant 0 : index
    %c2_67 = arith.constant 2 : index
    %c2_68 = arith.constant 2 : index
    %c0_69 = arith.constant 0 : index
    %37 = tpu.strided_load %arg13[%c0_66, %c2_67, %c2_68, %c0_69] {strides = array<i32: 1, 2, 2, 1>} : memref<4x18x18x32xf32, #tpu.memory_space<vmem>>, vector<4x8x8x32xf32>
    %38 = tpu.concatenate %29, %30, %31, %32, %33, %34, %35, %36, %37 in 3 : vector<4x8x8x32xf32>, vector<4x8x8x32xf32>, vector<4x8x8x32xf32>, vector<4x8x8x32xf32>, vector<4x8x8x32xf32>, vector<4x8x8x32xf32>, vector<4x8x8x32xf32>, vector<4x8x8x32xf32>, vector<4x8x8x32xf32> -> vector<4x8x8x288xf32>
    %39 = vector.shape_cast %38 : vector<4x8x8x288xf32> to vector<256x288xf32>
    %c0_70 = arith.constant 0 : index
    %c0_71 = arith.constant 0 : index
    %40 = vector.load %arg7[%c0_70, %c0_71] : memref<288x32xbf16, #tpu.memory_space<vmem>>, vector<288x32xbf16>
    %41 = arith.truncf %39 : vector<256x288xf32> to vector<256x288xbf16>
    %cst_72 = arith.constant dense<0.000000e+00> : vector<256x32xf32>
    %42 = tpu.matmul %41, %40, %cst_72 {dimension_numbers = #tpu.dot_dimension_numbers<[1], [0], [0], [1], [0, 0, 1, 1], [], []>} : vector<256x288xbf16>, vector<288x32xbf16>, vector<256x32xf32> -> vector<256x32xf32>
    %c0_73 = arith.constant 0 : index
    %c0_74 = arith.constant 0 : index
    %43 = vector.load %arg8[%c0_73, %c0_74] : memref<1x32xf32, #tpu.memory_space<vmem>>, vector<1x32xf32>
    %44 = vector.broadcast %43 : vector<1x32xf32> to vector<256x32xf32>
    %45 = arith.mulf %42, %44 : vector<256x32xf32>
    %c0_75 = arith.constant 0 : index
    %c0_76 = arith.constant 0 : index
    %46 = vector.load %arg9[%c0_75, %c0_76] : memref<1x32xf32, #tpu.memory_space<vmem>>, vector<1x32xf32>
    %47 = vector.broadcast %46 : vector<1x32xf32> to vector<256x32xf32>
    %48 = arith.addf %45, %47 : vector<256x32xf32>
    %cst_77 = arith.constant 0.000000e+00 : f32
    %49 = vector.broadcast %cst_77 : f32 to vector<256x32xf32>
    %50 = arith.maximumf %48, %49 : vector<256x32xf32>
    %c0_78 = arith.constant 0 : index
    %c0_79 = arith.constant 0 : index
    %51 = vector.load %arg10[%c0_78, %c0_79] : memref<32x128xbf16, #tpu.memory_space<vmem>>, vector<32x128xbf16>
    %52 = arith.truncf %50 : vector<256x32xf32> to vector<256x32xbf16>
    %cst_80 = arith.constant dense<0.000000e+00> : vector<256x128xf32>
    %53 = tpu.matmul %52, %51, %cst_80 {dimension_numbers = #tpu.dot_dimension_numbers<[1], [0], [0], [1], [0, 0, 1, 1], [], []>} : vector<256x32xbf16>, vector<32x128xbf16>, vector<256x128xf32> -> vector<256x128xf32>
    %c0_81 = arith.constant 0 : index
    %c0_82 = arith.constant 0 : index
    %c0_83 = arith.constant 0 : index
    %c0_84 = arith.constant 0 : index
    %54 = tpu.strided_load %arg1[%c0_81, %c0_82, %c0_83, %c0_84] {strides = array<i32: 1, 2, 2, 1>} : memref<4x16x16x64xf32, #tpu.memory_space<vmem>>, vector<4x8x8x64xf32>
    %55 = vector.shape_cast %54 : vector<4x8x8x64xf32> to vector<256x64xf32>
    %c0_85 = arith.constant 0 : index
    %c0_86 = arith.constant 0 : index
    %56 = vector.load %arg11[%c0_85, %c0_86] : memref<64x128xbf16, #tpu.memory_space<vmem>>, vector<64x128xbf16>
    %57 = arith.truncf %55 : vector<256x64xf32> to vector<256x64xbf16>
    %cst_87 = arith.constant dense<0.000000e+00> : vector<256x128xf32>
    %58 = tpu.matmul %57, %56, %cst_87 {dimension_numbers = #tpu.dot_dimension_numbers<[1], [0], [0], [1], [0, 0, 1, 1], [], []>} : vector<256x64xbf16>, vector<64x128xbf16>, vector<256x128xf32> -> vector<256x128xf32>
    %59 = arith.addf %53, %58 : vector<256x128xf32>
    %60 = vector.shape_cast %59 : vector<256x128xf32> to vector<4x8x8x128xf32>
    %c0_88 = arith.constant 0 : index
    %c0_89 = arith.constant 0 : index
    %c0_90 = arith.constant 0 : index
    %c0_91 = arith.constant 0 : index
    %61 = vector.load %arg12[%c0_88, %c0_89, %c0_90, %c0_91] : memref<4x8x8x128xf32, #tpu.memory_space<vmem>>, vector<4x8x8x128xf32>
    tpu.vector_store %arg12[%c0_88, %c0_89, %c0_90, %c0_91], %60 {strides = array<i32>} : memref<4x8x8x128xf32, #tpu.memory_space<vmem>>, vector<4x8x8x128xf32>,
    return
  }
  func.func @transform_0(%arg0: i32) -> (i32, i32, i32, i32) {
    %c0_i32 = arith.constant 0 : i32
    %c0_i32_0 = arith.constant 0 : i32
    %c0_i32_1 = arith.constant 0 : i32
    %c0_i32_2 = arith.constant 0 : i32
    return %arg0, %c0_i32, %c0_i32_0, %c0_i32_1 : i32, i32, i32, i32
  }
  func.func @transform_1(%arg0: i32) -> (i32, i32) {
    %c0_i32 = arith.constant 0 : i32
    %c0_i32_0 = arith.constant 0 : i32
    %c0_i32_1 = arith.constant 0 : i32
    return %c0_i32, %c0_i32_0 : i32, i32
  }
  func.func @transform_2(%arg0: i32) -> (i32, i32) {
    %c0_i32 = arith.constant 0 : i32
    %c0_i32_0 = arith.constant 0 : i32
    %c0_i32_1 = arith.constant 0 : i32
    return %c0_i32, %c0_i32_0 : i32, i32
  }
  func.func @transform_3(%arg0: i32) -> (i32, i32) {
    %c0_i32 = arith.constant 0 : i32
    %c0_i32_0 = arith.constant 0 : i32
    %c0_i32_1 = arith.constant 0 : i32
    return %c0_i32, %c0_i32_0 : i32, i32
  }
  func.func @transform_4(%arg0: i32) -> (i32, i32) {
    %c0_i32 = arith.constant 0 : i32
    %c0_i32_0 = arith.constant 0 : i32
    %c0_i32_1 = arith.constant 0 : i32
    return %c0_i32, %c0_i32_0 : i32, i32
  }
  func.func @transform_5(%arg0: i32) -> (i32, i32) {
    %c0_i32 = arith.constant 0 : i32
    %c0_i32_0 = arith.constant 0 : i32
    %c0_i32_1 = arith.constant 0 : i32
    return %c0_i32, %c0_i32_0 : i32, i32
  }
  func.func @transform_6(%arg0: i32) -> (i32, i32) {
    %c0_i32 = arith.constant 0 : i32
    %c0_i32_0 = arith.constant 0 : i32
    %c0_i32_1 = arith.constant 0 : i32
    return %c0_i32, %c0_i32_0 : i32, i32
  }
  func.func @transform_7(%arg0: i32) -> (i32, i32) {
    %c0_i32 = arith.constant 0 : i32
    %c0_i32_0 = arith.constant 0 : i32
    %c0_i32_1 = arith.constant 0 : i32
    return %c0_i32, %c0_i32_0 : i32, i32
  }
  func.func @transform_8(%arg0: i32) -> (i32, i32) {
    %c0_i32 = arith.constant 0 : i32
    %c0_i32_0 = arith.constant 0 : i32
    %c0_i32_1 = arith.constant 0 : i32
    return %c0_i32, %c0_i32_0 : i32, i32
  }
  func.func @transform_9(%arg0: i32) -> (i32, i32) {
    %c0_i32 = arith.constant 0 : i32
    %c0_i32_0 = arith.constant 0 : i32
    %c0_i32_1 = arith.constant 0 : i32
    return %c0_i32, %c0_i32_0 : i32, i32
  }
  func.func @transform_10(%arg0: i32) -> (i32, i32) {
    %c0_i32 = arith.constant 0 : i32
    %c0_i32_0 = arith.constant 0 : i32
    %c0_i32_1 = arith.constant 0 : i32
    return %c0_i32, %c0_i32_0 : i32, i32
  }
  func.func @transform_11(%arg0: i32) -> (i32, i32, i32, i32) {
    %c0_i32 = arith.constant 0 : i32
    %c0_i32_0 = arith.constant 0 : i32
    %c0_i32_1 = arith.constant 0 : i32
    %c0_i32_2 = arith.constant 0 : i32
    return %arg0, %c0_i32, %c0_i32_0, %c0_i32_1 : i32, i32, i32, i32
  }
}

</mosaic_0001>

<bundles_post_ra>
// kernel: bottleneck_forward_nhwc.1
= control target key start
LH: loop header
LB: loop body
LE: loop exit
PB: predicated region body
PF: predicated region fallthrough
CT: control target
= control target key end

     0   :  { %16 = vsyncpa [#allocation4], 0  ;;  %s8074_s0 = inlined_call_operand.hbm [shape: f32[8,16,16,64], index: 0, kind: input, shape index: {}]   ;;  %s8075_s1 = inlined_call_operand.vmem [shape: f32[1,64], index: 1, kind: input, shape index: {}]   ;;  %s8076_s2 = inlined_call_operand.vmem [shape: f32[1,64], index: 2, kind: input, shape index: {}]   ;;  %s8077_s3 = inlined_call_operand.vmem [shape: bf16[64,32], index: 3, kind: input, shape index: {}]   ;;  %s8078_s4 = inlined_call_operand.vmem [shape: f32[1,32], index: 4, kind: input, shape index: {}]   ;;  %s8079_s5 = inlined_call_operand.vmem [shape: f32[1,32], index: 5, kind: input, shape index: {}]   ;;  %s8080_s6 = inlined_call_operand.vmem [shape: bf16[288,32], index: 6, kind: input, shape index: {}]   ;;  %s8081_s7 = inlined_call_operand.vmem [shape: f32[1,32], index: 7, kind: input, shape index: {}]   ;;  %s8082_s8 = inlined_call_operand.vmem [shape: f32[1,32], index: 8, kind: input, shape index: {}]   ;;  %s8083_s9 = inlined_call_operand.vmem [shape: bf16[32,128], index: 9, kind: input, shape index: {}]   ;;  %s8084_s10 = inlined_call_operand.vmem [shape: bf16[64,128], index: 10, kind: input, shape index: {}]   ;;  %s8085_s11 = inlined_call_operand.hbm [shape: f32[8,8,8,128], index: 11, kind: output, shape index: {}]  }
   0x1   :  { %18 = vsyncpa [#allocation4 + $0x1], 0 }
   0x2   :  { %19 = vsyncpa [#allocation5], 0 }
   0x3   :  { %21 = vsyncpa [#allocation5 + $0x1], 0  ;;  %s6132_s17 = smov 0   ;;  %s6134_s18 = smov 0  }
   0x4   :  { %s6136_s19 = smov 0   ;;  %s6138_s20 = smov 0  }
   0x5 LB: > { %8091 = sst [smem:[#allocation9_spill]] %s6050_s17  ;;  %s6153_s21 = sadd.s32 4294967295, %s6062_s20   ;;  %s6062_s20 = sphi %s6138_s20, %s8104_s20   ;;  %s6058_s19 = sphi %s6136_s19, %s8109_s19   ;;  %s6054_s18 = sphi %s6134_s18, %s8108_s18   ;;  %s6050_s17 = sphi %s6132_s17, %s8107_s17  }
   0x6   : > { %8092 = sst [smem:[#allocation10_spill]] %s6058_s19  ;;  %s5101_s22 = sadd.s32 4294967294, %s6062_s20  }
   0x7   : > { %s6157_s23 = sadd.s32 1, %s6062_s20   ;;  %s34_s24 = sadd.s32 1, %s6058_s19 }
   0x8   : > { %8093 = sst [smem:[#allocation11_spill]] %s6157_s23  ;;  %s31_s25 = ssub.s32 %s6062_s20, %s6157_s23 }
   0x9   : > { %p41_p0 = scmp.ne.s32.totalorder %s6058_s19, %s6054_s18  ;;  %p32_p1 = scmp.eq.s32.totalorder %s31_s25, 0 }
   0xa   : > { %p42_p2 = scmp.eq.s32.totalorder %s6062_s20, 0  ;;  %p47_p3 = scmp.ne.s32.totalorder %s6054_s18, %s6050_s17 }
   0xb   : > { %p48_p4 = scmp.eq.s32.totalorder %s6153_s21, 0  ;;  %p281_p7 = scmp.eq.s32.totalorder %s6153_s21, 1 }
   0xc   : > { %s6169_s26 = scalar_select %p32_p1, %s6058_s19, %s34_s24  }
   0xd   : > { %p6171_p5 = por %p42_p2, %p41_p0  ;;  %p6175_p6 = por %p48_p4, %p47_p3 }
   0xe   : > { %8094 = sst [smem:[#allocation12_spill]] %s6169_s26  ;;  %p287_p8 = scmp.eq.s32.totalorder %s5101_s22, 1 }
   0xf   : > { %p5428_p10 = scmp.lt.s32.totalorder %s6062_s20, 2  ;;  %p6182_p11 = por %p281_p7, %p41_p0 }
  0x10   : > { %p6186_p12 = por %p287_p8, %p47_p3  ;;  %s337_s12 = sand.u32 1, %s6058_s19  }
  0x11   : > { %s5373_s13 = sshll.u32 %s6062_s20, 10  ;;  %s5104_s14 = sshll.u32 %s337_s12, 10 }
  0x12   : > { %s8098_s30 = scalar_select %p6186_p12, 1, 0 }
  0x13   : > { %s347_s24 = scalar_lea.hbm %s8074_s0, %s5373_s13  ;;  %s341_s22 = scalar_lea.vmem [#allocation3], %s5104_s14 }
  0x14   : > { %8099 = sst [smem:[#allocation13_spill]] %s8098_s30  ;;  %s348_s25 = sshll.u32 %s347_s24, 4  ;;  %s349_s25 = int_to_ptr.hbm [resolvable:$true] %s348_s25 }
  0x15   : > { %s350_s26 = sshll.u32 %s341_s22, 4  ;;  %p6197_p13 = pnand %p5428_p10, %p6171_p5  ;;  %s351_s26 = int_to_ptr.vmem [resolvable:$true] %s350_s26 }
  0x16   : > { %p5108_p0 = scmp.ge.s32.totalorder %s6062_s20, 1  ;;  %p358_p1 = scmp.lt.s32.totalorder %s6062_s20, 3 }
  0x17   : > { %s338_s19 = scalar_lea.sflag [#allocation4], %s337_s12  ;;  %s5966_s30 = sshra.s32 %s349_s25, 4  ;;  %s5967_s30 = int_to_ptr.hbm [resolvable:$true] %s5966_s30 }
  0x18   : > { %s5968_s17 = scalar_lea.hbm %s5967_s30, 1024  ;;  %p5970_p3 = pneg %p6197_p13 }
  0x19   : > { %p5969_p2 = scmp.ne.s32.totalorder %s5967_s30, %s5968_s17  ;;  %s5973_s27 = scalar_lea.hbm %s8074_s0, 2048 }
  0x1a   : > { %p5974_p5 = scmp.lt.s32.totalorder %s5967_s30, %s8074_s0  ;;  %p5975_p8 = scmp.lt.s32.totalorder %s5973_s27, %s5968_s17 }
  0x1b   : > { %p5971_p4 = pnand %p5970_p3, %p5969_p2 }
  0x1c   : > { %p5976_p10 = por %p5975_p8, %p5974_p5 }
  0x1d   : > { %p5972_p7 = pneg %p5971_p4 }
  0x1f   : > { %p5977_p9 = pnand %p5976_p10, %p5972_p7 }
  0x21   : > { %5980 = shalt.err (!%p5977_p9)
}
  0x22   : > { %s6064_s12 = smov 128   ;;  %s6065_s24 = smov 8  }
  0x23   : > { %5423 = dma.hbm_to_vmem [thread:$0]  (!%p6197_p13), %s349_s25, 16384, %s351_s26, %s338_s19, %s6064_s12, %s6064_s12, %s6065_s24  }
  0x24   : > { %p359_p2 = pnand %p5108_p0, %p358_p1 }
  0x25   : > { %s6218_s22 = sand.u32 (!%p359_p2), 1, %s6054_s18  }
  0x26   : > { %362 = sbr.rel (%p359_p2) target bundleno = 1384 (0x568), region = 64  ;;  %s5109_s17 = sshll.u32 (!%p359_p2), %s6218_s22, 10 }
  0x27   : > { %s365_s30 = scalar_lea.sflag (!%p359_p2), [#allocation4], %s6218_s22  ;;  %s6222_s13 = scalar_lea.vmem (!%p359_p2), [#allocation3], %s5109_s17 }
  0x2b   : > { %6041 = dma.done.wait (%p6175_p6), %s365_s30, 16384  }
  0x2c   : > { %6043 = vsyncadd (%p6175_p6), %s365_s30, 4294950912  ;;  %vm1941_vm0 = vcmask 261120   ;;  %v5377_v0 = vld [vmem:[%s8077_s3 + $0x18] sm:$0xff]  ;;  %vm1969_vm1 = vcmask 253952   ;;  %v5376_v1 = vld [vmem:[%s8077_s3 + $0x10] sm:$0xff]  ;;  %vm1027_vm2 = vcmask 523264  }
  0x2d   : > { %v411_v2 = vld [vmem:[%s6222_s13] sm:$0xff]  ;;  %v412_v3 = vld [vmem:[%s6222_s13 + $0x8] sm:$0xff]  ;;  %1224 = vmatpush.bf16.msra.mxu0 %v5377_v0  ;;  %5406 = vmatpush.bf16.msra.mxu3 %v5377_v0  ;;  %v413_v15 = vld [vmem:[%s6222_s13 + $0x10] sm:$0xff]  ;;  %v6066_v46 = vmov 0.0   ;;  %vm1944_vm3 = vcmask 254976   ;;  %s6067_s15 = smov 32  }
  0x2e   : > { %v6239_v4 = vld [vmem:[%s8075_s1] ss:$0 sm:$0xff]  ;;  %5404 = vmatpush.bf16.msra.mxu1 %v5377_v0  ;;  %5405 = vmatpush.bf16.msra.mxu2 %v5377_v0  ;;  %v5375_v8 = vld [vmem:[%s8077_s3 + $0x8] sm:$0xff]  ;;  %v414_v16 = vld [vmem:[%s6222_s13 + $0x18] sm:$0xff]  ;;  %1942 = vst.msk [vmem:[#allocation2] sm:$0xff] %vm1941_vm0, %v6066_v46  ;;  %s6068_s16 = smov 64  }
  0x2f   : > { %v6244_v5 = vld [vmem:[%s8076_s2] ss:$0 sm:$0xff]  ;;  %v543_v6 = vmul.f32 %v6239_v4, %v411_v2  ;;  %v544_v7 = vmul.f32 %v6239_v4, %v412_v3  ;;  %v545_v17 = vmul.f32 %v6239_v4, %v413_v15  ;;  %v546_v18 = vmul.f32 %v6239_v4, %v414_v16  ;;  %v416_v25 = vld [vmem:[%s6222_s13 + $0x28] sm:$0xff]  ;;  %v417_v33 = vld [vmem:[%s6222_s13 + $0x30] sm:$0xff]  ;;  %1943 = vst.msk [vmem:[#allocation2 + $0x8] sm:$0xff] %vm1941_vm0, %v6066_v46  ;;  %s6069_s12 = smov 96  }
  0x30   : > { %v5374_v13 = vld [vmem:[%s8077_s3] sm:$0xff]  ;;  %v548_v27 = vmul.f32 %v6239_v4, %v416_v25  ;;  %v418_v34 = vld [vmem:[%s6222_s13 + $0x38] sm:$0xff]  ;;  %v549_v35 = vmul.f32 %v6239_v4, %v417_v33  ;;  %v420_v43 = vld [vmem:[%s6222_s13 + $0x48] sm:$0xff]  ;;  %1946 = vst.msk [vmem:[#allocation2 + $0x1b0] sm:$0xff] %vm1941_vm0, %v6066_v46  ;;  %vm3632_vm4 = vcmask 785408   ;;  %s5110_s26 = sshll.u32 %s6218_s22, 8 }
  0x31   : > { %1225 = vmatpush.bf16.msra.mxu0 %v5376_v1  ;;  %v675_v9 = vadd.f32 %v6244_v5, %v543_v6  ;;  %v676_v10 = vadd.f32 %v6244_v5, %v544_v7  ;;  %5409 = vmatpush.bf16.msra.mxu3 %v5376_v1  ;;  %v677_v19 = vadd.f32 %v6244_v5, %v545_v17  ;;  %v415_v24 = vld [vmem:[%s6222_s13 + $0x20] sm:$0xff]  ;;  %v421_v52 = vld [vmem:[%s6222_s13 + $0x50] sm:$0xff]  ;;  %v422_v53 = vld [vmem:[%s6222_s13 + $0x58] sm:$0xff]  ;;  %s7920_s25 = scalar_lea.vmem [#allocation6], %s5110_s26  ;;  %s4822_s30 = scalar_lea.sflag [#allocation5], %s6218_s22 }
  0x32   : > { %5407 = vmatpush.bf16.msra.mxu1 %v5376_v1  ;;  %5408 = vmatpush.bf16.msra.mxu2 %v5376_v1  ;;  %v678_v20 = vadd.f32 %v6244_v5, %v546_v18  ;;  %v547_v26 = vmul.f32 %v6239_v4, %v415_v24  ;;  %v680_v29 = vadd.f32 %v6244_v5, %v548_v27  ;;  %v419_v42 = vld [vmem:[%s6222_s13 + $0x40] sm:$0xff]  ;;  %v424_v62 = vld [vmem:[%s6222_s13 + $0x68] sm:$0xff]  ;;  %s4835_s24 = sshll.u32 %s7920_s25, 4  ;;  %s4836_s24 = int_to_ptr.vmem [resolvable:$true] %s4835_s24 }
  0x33   : > { %v803_v11 = vmax.f32 %v675_v9, 0.0  ;;  %v804_v12 = vmax.f32 %v676_v10, 0.0  ;;  %v805_v21 = vmax.f32 %v677_v19, 0.0  ;;  %v550_v36 = vmul.f32 %v6239_v4, %v418_v34  ;;  %1947 = vst.msk [vmem:[#allocation2 + $0x1b8] sm:$0xff] %vm1941_vm0, %v6066_v46  ;;  %v423_v61 = vld [vmem:[%s6222_s13 + $0x60] sm:$0xff]  ;;  %v426_v9 = vld [vmem:[%s6222_s13 + $0x78] sm:$0xff] }
  0x34   : > { %v806_v22 = vmax.f32 %v678_v20, 0.0  ;;  %v679_v28 = vadd.f32 %v6244_v5, %v547_v26  ;;  %v808_v31 = vmax.f32 %v680_v29, 0.0  ;;  %v681_v37 = vadd.f32 %v6244_v5, %v549_v35  ;;  %1949 = vst.msk [vmem:[#allocation2 + $0x360] sm:$0xff] %vm1941_vm0, %v6066_v46  ;;  %v531_v10 = vld [vmem:[%s6222_s13 + $0x3c0] sm:$0xff]  ;;  %v428_v27 = vld [vmem:[%s6222_s13 + $0x88] sm:$0xff]  ;;  %v534_v29 = vld [vmem:[%s6222_s13 + $0x3d8] sm:$0xff] }
  0x35   : > { %1226 = vmatpush.bf16.msra.mxu0 %v5375_v8  ;;  %5412 = vmatpush.bf16.msra.mxu3 %v5375_v8  ;;  %v939_v14 = vpack.c.bf16 %v804_v12, %v803_v11  ;;  %v682_v38 = vadd.f32 %v6244_v5, %v550_v36  ;;  %v551_v44 = vmul.f32 %v6239_v4, %v419_v42  ;;  %v532_v11 = vld [vmem:[%s6222_s13 + $0x3c8] sm:$0xff]  ;;  %v427_v26 = vld [vmem:[%s6222_s13 + $0x80] sm:$0xff] }
  0x36   : > { %5410 = vmatpush.bf16.msra.mxu1 %v5375_v8  ;;  %5411 = vmatpush.bf16.msra.mxu2 %v5375_v8  ;;  %v940_v23 = vpack.c.bf16 %v806_v22, %v805_v21  ;;  %v807_v30 = vmax.f32 %v679_v28, 0.0  ;;  %v809_v39 = vmax.f32 %v681_v37, 0.0  ;;  %v552_v45 = vmul.f32 %v6239_v4, %v420_v43  ;;  %1950 = vst.msk [vmem:[#allocation2 + $0x368] sm:$0xff] %vm1941_vm0, %v6066_v46  ;;  %v425_v8 = vld [vmem:[%s6222_s13 + $0x70] sm:$0xff]  ;;  %v6473_v43 = vld [vmem:[%s8078_s4] ss:$0 sm:$0xff] }
  0x37   : > { %v810_v40 = vmax.f32 %v682_v38, 0.0  ;;  %v683_v47 = vadd.f32 %v6244_v5, %v551_v44  ;;  %1952 = vst.msk [vmem:[#allocation2 + $0x510] sm:$0xff] %vm1941_vm0, %v6066_v46  ;;  %v553_v54 = vmul.f32 %v6239_v4, %v421_v52  ;;  %v554_v55 = vmul.f32 %v6239_v4, %v422_v53  ;;  %v533_v28 = vld [vmem:[%s6222_s13 + $0x3d0] sm:$0xff]  ;;  %v6478_v44 = vld [vmem:[%s8079_s5] ss:$0 sm:$0xff] }
  0x38   : > { %v941_v32 = vpack.c.bf16 %v808_v31, %v807_v30  ;;  %v684_v48 = vadd.f32 %v6244_v5, %v552_v45  ;;  %1953 = vst.msk [vmem:[#allocation2 + $0x518] sm:$0xff] %vm1941_vm0, %v6066_v46  ;;  %v555_v63 = vmul.f32 %v6239_v4, %v423_v61  ;;  %v556_v0 = vmul.f32 %v6239_v4, %v424_v62 }
  0x39   : > { %1227 = vmatpush.bf16.msra.mxu0 %v5374_v13  ;;  %5415 = vmatpush.bf16.msra.mxu3 %v5374_v13  ;;  %v942_v41 = vpack.c.bf16 %v810_v40, %v809_v39  ;;  %v811_v49 = vmax.f32 %v683_v47, 0.0  ;;  %1970 = vst.msk [vmem:[#allocation2 + $0x18] sm:$0x1] %vm1969_vm1, %v6066_v46  ;;  %v685_v56 = vadd.f32 %v6244_v5, %v553_v54  ;;  %v429_v47 = vld [vmem:[%s6222_s13 + $0x90] sm:$0xff] }
  0x3a   : > { %5413 = vmatpush.bf16.msra.mxu1 %v5374_v13  ;;  %5414 = vmatpush.bf16.msra.mxu2 %v5374_v13  ;;  %v812_v50 = vmax.f32 %v684_v48, 0.0  ;;  %1971 = vst.msk [vmem:[#allocation2 + $0x30] sm:$0x1] %vm1969_vm1, %v6066_v46  ;;  %v686_v57 = vadd.f32 %v6244_v5, %v554_v55  ;;  %v687_v1 = vadd.f32 %v6244_v5, %v555_v63  ;;  %v430_v48 = vld [vmem:[%s6222_s13 + $0x98] sm:$0xff] }
  0x3b   : > { %1972 = vst.msk [vmem:[#allocation2 + $0x48] sm:$0x1] %vm1969_vm1, %v6066_v46  ;;  %v813_v58 = vmax.f32 %v685_v56, 0.0  ;;  %v688_v2 = vadd.f32 %v6244_v5, %v556_v0  ;;  %v663_v12 = vmul.f32 %v6239_v4, %v531_v10  ;;  %v664_v13 = vmul.f32 %v6239_v4, %v532_v11  ;;  %v431_v10 = vld [vmem:[%s6222_s13 + $0xa0] sm:$0xff] }
  0x3c   : > { %5127 = vmatmul.msk.bf16.vlgmr.msra.gmra.mxu0 %vm1027_vm2, %v939_v14  ;;  %1973 = vst.msk [vmem:[#allocation2 + $0x60] sm:$0x1] %vm1969_vm1, %v6066_v46  ;;  %v943_v51 = vpack.c.bf16 %v812_v50, %v811_v49  ;;  %v814_v59 = vmax.f32 %v686_v57, 0.0  ;;  %v815_v3 = vmax.f32 %v687_v1, 0.0  ;;  %v557_v14 = vmul.f32 %v6239_v4, %v425_v8  ;;  %v535_v50 = vld [vmem:[%s6222_s13 + $0x3e0] sm:$0xff] }
  0x3d   : > { %1974 = vst.msk [vmem:[#allocation2 + $0x78] sm:$0x1] %vm1969_vm1, %v6066_v46  ;;  %v816_v6 = vmax.f32 %v688_v2, 0.0  ;;  %v558_v15 = vmul.f32 %v6239_v4, %v426_v9  ;;  %v795_v16 = vadd.f32 %v6244_v5, %v663_v12  ;;  %v796_v17 = vadd.f32 %v6244_v5, %v664_v13  ;;  %v432_v12 = vld [vmem:[%s6222_s13 + $0xa8] sm:$0xff]  ;;  %v537_v13 = vld [vmem:[%s6222_s13 + $0x3f0] sm:$0xff] }
  0x3e   : > { %1975 = vst.msk [vmem:[#allocation2 + $0x90] sm:$0x1] %vm1969_vm1, %v6066_v46  ;;  %v944_v60 = vpack.c.bf16 %v814_v59, %v813_v58  ;;  %v689_v20 = vadd.f32 %v6244_v5, %v557_v14  ;;  %v665_v30 = vmul.f32 %v6239_v4, %v533_v28  ;;  %v666_v31 = vmul.f32 %v6239_v4, %v534_v29  ;;  %v538_v14 = vld [vmem:[%s6222_s13 + $0x3f8] sm:$0xff] }
  0x3f   : > { %1976 = vst.msk [vmem:[#allocation2 + $0xa8] sm:$0x1] %vm1969_vm1, %v6066_v46  ;;  %v945_v7 = vpack.c.bf16 %v816_v6, %v815_v3  ;;  %v923_v18 = vmax.f32 %v795_v16, 0.0  ;;  %v924_v19 = vmax.f32 %v796_v17, 0.0  ;;  %v690_v21 = vadd.f32 %v6244_v5, %v558_v15 }
  0x40   : > { %1977 = vst.msk [vmem:[#allocation2 + $0xc0] sm:$0x1] %vm1969_vm1, %v6066_v46  ;;  %v560_v33 = vmul.f32 %v6239_v4, %v428_v27  ;;  %v797_v34 = vadd.f32 %v6244_v5, %v665_v30  ;;  %v798_v35 = vadd.f32 %v6244_v5, %v666_v31  ;;  %v667_v53 = vmul.f32 %v6239_v4, %v535_v50 }
  0x41   : > { %1978 = vst.msk [vmem:[#allocation2 + $0xd8] sm:$0x1] %vm1969_vm1, %v6066_v46  ;;  %v999_v22 = vpack.c.bf16 %v924_v19, %v923_v18  ;;  %v818_v24 = vmax.f32 %v690_v21, 0.0  ;;  %v561_v55 = vmul.f32 %v6239_v4, %v429_v47  ;;  %v562_v56 = vmul.f32 %v6239_v4, %v430_v48  ;;  %v2290_v47 = vld [vmem:[#allocation2 + $0x1] ss:$2 sm:$0xff] }
  0x42   : > { %1979 = vst.msk [vmem:[#allocation2 + $0xf0] sm:$0x1] %vm1969_vm1, %v6066_v46  ;;  %v925_v36 = vmax.f32 %v797_v34, 0.0  ;;  %v926_v37 = vmax.f32 %v798_v35, 0.0  ;;  %v692_v39 = vadd.f32 %v6244_v5, %v560_v33  ;;  %v799_v58 = vadd.f32 %v6244_v5, %v667_v53  ;;  %v5394_v48 = vld [vmem:[%s8080_s6 + $0x80] sm:$0xff] }
  0x43   : > { %1980 = vst.msk [vmem:[#allocation2 + $0x108] sm:$0x1] %vm1969_vm1, %v6066_v46  ;;  %5187 = vmatmul.msk.bf16.vlgmr.msra.gmra.mxu3 %vm1027_vm2, %v999_v22  ;;  %v693_v63 = vadd.f32 %v6244_v5, %v561_v55  ;;  %v694_v0 = vadd.f32 %v6244_v5, %v562_v56  ;;  %v669_v16 = vmul.f32 %v6239_v4, %v537_v13 }
  0x44   : > { %1981 = vst.msk [vmem:[#allocation2 + $0x120] sm:$0x1] %vm1969_vm1, %v6066_v46  ;;  %v1000_v40 = vpack.c.bf16 %v926_v37, %v925_v36  ;;  %v820_v42 = vmax.f32 %v692_v39, 0.0  ;;  %v927_v61 = vmax.f32 %v799_v58, 0.0  ;;  %v670_v17 = vmul.f32 %v6239_v4, %v538_v14  ;;  %v433_v37 = vld [vmem:[%s6222_s13 + $0xb0] sm:$0xff]  ;;  %v5395_v39 = vld [vmem:[%s8080_s6 + $0x88] sm:$0xff] }
  0x45   : > { %1982 = vst.msk [vmem:[#allocation2 + $0x138] sm:$0x1] %vm1969_vm1, %v6066_v46  ;;  %v822_v8 = vmax.f32 %v694_v0, 0.0  ;;  %v563_v18 = vmul.f32 %v6239_v4, %v431_v10  ;;  %v801_v21 = vadd.f32 %v6244_v5, %v669_v16  ;;  %4185 = vmatpush.bf16.msrb.mxu3 %v5395_v39 }
  0x46   : > { %1983 = vst.msk [vmem:[#allocation2 + $0x150] sm:$0x1] %vm1969_vm1, %v6066_v46  ;;  %v802_v22 = vadd.f32 %v6244_v5, %v670_v17 }
  0x47   : > { %1984 = vst.msk [vmem:[#allocation2 + $0x168] sm:$0x1] %vm1969_vm1, %v6066_v46 }
  0x48   : > { %1985 = vst.msk [vmem:[#allocation2 + $0x180] sm:$0x1] %vm1969_vm1, %v6066_v46 }
  0x49   : > { %1986 = vst.msk [vmem:[#allocation2 + $0x1c8] sm:$0x1] %vm1969_vm1, %v6066_v46  ;;  %4186 = vmatpush.bf16.msrb.mxu3 %v5394_v48 }
  0x4a   : > { %1987 = vst.msk [vmem:[#allocation2 + $0x1e0] sm:$0x1] %vm1969_vm1, %v6066_v46 }
  0x4b   : > { %1988 = vst.msk [vmem:[#allocation2 + $0x1f8] sm:$0x1] %vm1969_vm1, %v6066_v46 }
  0x4c   : > { %5128 = vmatmul.msk.bf16.gmra.mxu0 %vm1027_vm2, %v940_v23  ;;  %1989 = vst.msk [vmem:[#allocation2 + $0x210] sm:$0x1] %vm1969_vm1, %v6066_v46  ;;  %v817_v23 = vmax.f32 %v689_v20, 0.0  ;;  %v564_v20 = vmul.f32 %v6239_v4, %v432_v12 }
  0x4d   : > { %1990 = vst.msk [vmem:[#allocation2 + $0x228] sm:$0x1] %vm1969_vm1, %v6066_v46 }
  0x4e   : > { %1991 = vst.msk [vmem:[#allocation2 + $0x240] sm:$0x1] %vm1969_vm1, %v6066_v46  ;;  %v946_v25 = vpack.c.bf16 %v818_v24, %v817_v23  ;;  %v929_v24 = vmax.f32 %v801_v21, 0.0  ;;  %v696_v27 = vadd.f32 %v6244_v5, %v564_v20 }
  0x4f   : > { %1992 = vst.msk [vmem:[#allocation2 + $0x258] sm:$0x1] %vm1969_vm1, %v6066_v46 }
  0x50   : > { %1993 = vst.msk [vmem:[#allocation2 + $0x270] sm:$0x1] %vm1969_vm1, %v6066_v46  ;;  %v824_v33 = vmax.f32 %v696_v27, 0.0 }
  0x51   : > { %1994 = vst.msk [vmem:[#allocation2 + $0x288] sm:$0x1] %vm1969_vm1, %v6066_v46 }
  0x52   : > { %1995 = vst.msk [vmem:[#allocation2 + $0x2a0] sm:$0x1] %vm1969_vm1, %v6066_v46 }
  0x53   : > { %1996 = vst.msk [vmem:[#allocation2 + $0x2b8] sm:$0x1] %vm1969_vm1, %v6066_v46  ;;  %5188 = vmatmul.msk.bf16.gmra.mxu3 %vm1027_vm2, %v1000_v40 }
  0x54   : > { %1997 = vst.msk [vmem:[#allocation2 + $0x2d0] sm:$0x1] %vm1969_vm1, %v6066_v46 }
  0x55   : > { %1998 = vst.msk [vmem:[#allocation2 + $0x2e8] sm:$0x1] %vm1969_vm1, %v6066_v46 }
  0x56   : > { %1999 = vst.msk [vmem:[#allocation2 + $0x300] sm:$0x1] %vm1969_vm1, %v6066_v46 }
  0x57   : > { %2000 = vst.msk [vmem:[#allocation2 + $0x318] sm:$0x1] %vm1969_vm1, %v6066_v46 }
  0x58   : > { %2001 = vst.msk [vmem:[#allocation2 + $0x330] sm:$0x1] %vm1969_vm1, %v6066_v46 }
  0x59   : > { %2002 = vst.msk [vmem:[#allocation2 + $0x378] sm:$0x1] %vm1969_vm1, %v6066_v46 }
  0x5a   : > { %2003 = vst.msk [vmem:[#allocation2 + $0x390] sm:$0x1] %vm1969_vm1, %v6066_v46 }
  0x5b   : > { %2004 = vst.msk [vmem:[#allocation2 + $0x3a8] sm:$0x1] %vm1969_vm1, %v6066_v46 }
  0x5c   : > { %5129 = vmatmul.msk.bf16.gmra.mxu0 %vm1027_vm2, %v941_v32  ;;  %2005 = vst.msk [vmem:[#allocation2 + $0x3c0] sm:$0x1] %vm1969_vm1, %v6066_v46  ;;  %v559_v32 = vmul.f32 %v6239_v4, %v427_v26  ;;  %v695_v26 = vadd.f32 %v6244_v5, %v563_v18 }
  0x5d   : > { %2006 = vst.msk [vmem:[#allocation2 + $0x3d8] sm:$0x1] %vm1969_vm1, %v6066_v46 }
  0x5e   : > { %2007 = vst.msk [vmem:[#allocation2 + $0x3f0] sm:$0x1] %vm1969_vm1, %v6066_v46  ;;  %v691_v38 = vadd.f32 %v6244_v5, %v559_v32  ;;  %v823_v32 = vmax.f32 %v695_v26, 0.0 }
  0x5f   : > { %2008 = vst.msk [vmem:[#allocation2 + $0x408] sm:$0x1] %vm1969_vm1, %v6066_v46 }
  0x60   : > { %2009 = vst.msk [vmem:[#allocation2 + $0x420] sm:$0x1] %vm1969_vm1, %v6066_v46  ;;  %v949_v35 = vpack.c.bf16 %v824_v33, %v823_v32 }
  0x61   : > { %2010 = vst.msk [vmem:[#allocation2 + $0x438] sm:$0x1] %vm1969_vm1, %v6066_v46 }
  0x62   : > { %2011 = vst.msk [vmem:[#allocation2 + $0x450] sm:$0x1] %vm1969_vm1, %v6066_v46 }
  0x63   : > { %2012 = vst.msk [vmem:[#allocation2 + $0x468] sm:$0x1] %vm1969_vm1, %v6066_v46 }
  0x64   : > { %2013 = vst.msk [vmem:[#allocation2 + $0x480] sm:$0x1] %vm1969_vm1, %v6066_v46 }
  0x65   : > { %2014 = vst.msk [vmem:[#allocation2 + $0x498] sm:$0x1] %vm1969_vm1, %v6066_v46 }
  0x66   : > { %2015 = vst.msk [vmem:[#allocation2 + $0x4b0] sm:$0x1] %vm1969_vm1, %v6066_v46 }
  0x67   : > { %2016 = vst.msk [vmem:[#allocation2 + $0x4c8] sm:$0x1] %vm1969_vm1, %v6066_v46 }
  0x68   : > { %2017 = vst.msk [vmem:[#allocation2 + $0x4e0] sm:$0x1] %vm1969_vm1, %v6066_v46 }
  0x69   : > { %2018 = vst.msk [vmem:[#allocation2 + $0x528] sm:$0x1] %vm1969_vm1, %v6066_v46 }
  0x6a   : > { %2019 = vst.msk [vmem:[#allocation2 + $0x540] sm:$0x1] %vm1969_vm1, %v6066_v46 }
  0x6b   : > { %2020 = vst.msk [vmem:[#allocation2 + $0x558] sm:$0x1] %vm1969_vm1, %v6066_v46 }
  0x6c   : > { %5130 = vmatmul.msk.bf16.gmra.mxu0 %vm1027_vm2, %v942_v41  ;;  %2021 = vst.msk [vmem:[#allocation2 + $0x570] sm:$0x1] %vm1969_vm1, %v6066_v46  ;;  %v819_v41 = vmax.f32 %v691_v38, 0.0  ;;  %v434_v38 = vld [vmem:[%s6222_s13 + $0xb8] sm:$0xff] }
  0x6d   : > { %2022 = vst.msk [vmem:[#allocation2 + $0x588] sm:$0x1] %vm1969_vm1, %v6066_v46 }
  0x6e   : > { %2023 = vst.msk [vmem:[#allocation2 + $0x5a0] sm:$0x1] %vm1969_vm1, %v6066_v46  ;;  %v947_v45 = vpack.c.bf16 %v820_v42, %v819_v41  ;;  %v565_v42 = vmul.f32 %v6239_v4, %v433_v37 }
  0x6f   : > { %2024 = vst.msk [vmem:[#allocation2 + $0x5b8] sm:$0x1] %vm1969_vm1, %v6066_v46 }
  0x70   : > { %2025 = vst.msk [vmem:[#allocation2 + $0x5d0] sm:$0x1] %vm1969_vm1, %v6066_v46 }
  0x71   : > { %2026 = vst.msk [vmem:[#allocation2 + $0x5e8] sm:$0x1] %vm1969_vm1, %v6066_v46 }
  0x72   : > { %2027 = vst.msk [vmem:[#allocation2 + $0x600] sm:$0x1] %vm1969_vm1, %v6066_v46 }
  0x73   : > { %2028 = vst.msk [vmem:[#allocation2 + $0x618] sm:$0x1] %vm1969_vm1, %v6066_v46 }
  0x74   : > { %2029 = vst.msk [vmem:[#allocation2 + $0x630] sm:$0x1] %vm1969_vm1, %v6066_v46 }
  0x75   : > { %2030 = vst.msk [vmem:[#allocation2 + $0x648] sm:$0x1] %vm1969_vm1, %v6066_v46 }
  0x76   : > { %2031 = vst.msk [vmem:[#allocation2 + $0x660] sm:$0x1] %vm1969_vm1, %v6066_v46 }
  0x77   : > { %2032 = vst.msk [vmem:[#allocation2 + $0x678] sm:$0x1] %vm1969_vm1, %v6066_v46 }
  0x78   : > { %2033 = vst.msk [vmem:[#allocation2 + $0x690] sm:$0x1] %vm1969_vm1, %v6066_v46 }
  0x79   : > { %1945 = vst.msk [vmem:[#allocation2 + $0x10] sm:$0x3] %vm1944_vm3, %v6066_v46 }
  0x7a   : > { %1948 = vst.msk [vmem:[#allocation2 + $0x1c0] sm:$0x3] %vm1944_vm3, %v6066_v46 }
  0x7b   : > { %1951 = vst.msk [vmem:[#allocation2 + $0x370] sm:$0x3] %vm1944_vm3, %v6066_v46 }
  0x7c   : > { %5131 = vmatmul.msk.bf16.gmra.mxu0 %vm1027_vm2, %v943_v51  ;;  %v536_v51 = vld [vmem:[%s6222_s13 + $0x3e8] sm:$0xff]  ;;  %1954 = vst.msk [vmem:[#allocation2 + $0x520] sm:$0x3] %vm1944_vm3, %v6066_v46 }
  0x7d   : > { %v668_v54 = vmul.f32 %v6239_v4, %v536_v51 }
  0x7f   : > { %v800_v59 = vadd.f32 %v6244_v5, %v668_v54 }
  0x81   : > { %v928_v62 = vmax.f32 %v800_v59, 0.0  ;;  %v2354_v59 = vld [vmem:[#allocation2 + $0x2] ss:$2 sm:$0xff] }
  0x83   : > { %v1001_v1 = vpack.c.bf16 %v928_v62, %v927_v61 }
  0x85   : > { %5189 = vmatmul.msk.bf16.gmra.mxu3 %vm1027_vm2, %v1001_v1  ;;  %v435_v1 = vld [vmem:[%s6222_s13 + $0xc0] sm:$0xff] }
  0x8c   : > { %5132 = vmatmul.msk.bf16.gmra.mxu0 %vm1027_vm2, %v944_v60 }
  0x9c   : > { %5133 = vmatmul.msk.bf16.gmra.mxu0 %vm1027_vm2, %v945_v7  ;;  %v821_v7 = vmax.f32 %v693_v63, 0.0 }
  0x9e   : > { %v948_v9 = vpack.c.bf16 %v822_v8, %v821_v7  ;;  %v567_v7 = vmul.f32 %v6239_v4, %v435_v1 }
  0xa0   : > { %v699_v12 = vadd.f32 %v6244_v5, %v567_v7 }
  0xa2   : > { %v827_v17 = vmax.f32 %v699_v12, 0.0 }
  0xac   : > { %5134 = vmatmul.msk.bf16.gmra.mxu0 %vm1027_vm2, %v946_v25  ;;  %v930_v25 = vmax.f32 %v802_v22, 0.0  ;;  %v437_v22 = vld [vmem:[%s6222_s13 + $0xd0] sm:$0xff] }
  0xad   : > { %v569_v26 = vmul.f32 %v6239_v4, %v437_v22 }
  0xae   : > { %v1002_v28 = vpack.c.bf16 %v930_v25, %v929_v24 }
  0xaf   : > { %v701_v32 = vadd.f32 %v6244_v5, %v569_v26 }
  0xb0   : > { %5190 = vmatmul.msk.bf16.gmra.mxu3 %vm1027_vm2, %v1002_v28 }
  0xb1   : > { %v829_v37 = vmax.f32 %v701_v32, 0.0 }
  0xb9   : > { %v1229_v49 = vpop.f32.mrf.mxu0 }
  0xba   : > { %v1553_v52 = vmul.f32 %v6473_v43, %v1229_v49 }
  0xbc   : > { %v1685_v57 = vadd.f32 %v6478_v44, %v1553_v52  ;;  %5135 = vmatmul.msk.bf16.gmra.mxu0 %vm1027_vm2, %v947_v45  ;;  %v566_v45 = vmul.f32 %v6239_v4, %v434_v38  ;;  %v697_v52 = vadd.f32 %v6244_v5, %v565_v42  ;;  %v439_v42 = vld [vmem:[%s6222_s13 + $0xe0] sm:$0xff] }
  0xbe   : > { %v1813_v60 = vmax.f32 %v1685_v57, 0.0  ;;  %v698_v53 = vadd.f32 %v6244_v5, %v566_v45  ;;  %v825_v57 = vmax.f32 %v697_v52, 0.0  ;;  %v440_v45 = vld [vmem:[%s6222_s13 + $0xe8] sm:$0xff] }
  0xc0   : > { %2098 = vst.msk [vmem:[#allocation2 + $0x19] sm:$0xff] %vm1941_vm0, %v1813_v60  ;;  %v826_v58 = vmax.f32 %v698_v53, 0.0 }
  0xc1   : > { %v1231_v2 = vpop.f32.mrf.mxu0 }
  0xc2   : > { %v1554_v3 = vmul.f32 %v6473_v43, %v1231_v2  ;;  %v950_v63 = vpack.c.bf16 %v826_v58, %v825_v57  ;;  %v436_v2 = vld [vmem:[%s6222_s13 + $0xc8] sm:$0xff] }
  0xc3   : > { %v568_v8 = vmul.f32 %v6239_v4, %v436_v2 }
  0xc4   : > { %v1686_v6 = vadd.f32 %v6478_v44, %v1554_v3 }
  0xc5   : > { %v700_v13 = vadd.f32 %v6244_v5, %v568_v8 }
  0xc6   : > { %v1814_v46 = vmax.f32 %v1686_v6, 0.0 }
  0xc7   : > { %v828_v18 = vmax.f32 %v700_v13, 0.0 }
  0xc8   : > { %2099 = vst.msk [vmem:[#allocation2 + $0x21] sm:$0xff] %vm1941_vm0, %v1814_v46 }
  0xc9   : > { %v1234_v11 = vpop.f32.mrf.mxu0  ;;  %v951_v20 = vpack.c.bf16 %v828_v18, %v827_v17 }
  0xca   : > { %v1555_v15 = vmul.f32 %v6473_v43, %v1234_v11 }
  0xcc   : > { %v1687_v19 = vadd.f32 %v6478_v44, %v1555_v15  ;;  %5136 = vmatmul.msk.bf16.gmra.mxu0 %vm1027_vm2, %v948_v9 }
  0xce   : > { %v1815_v23 = vmax.f32 %v1687_v19, 0.0 }
  0xcf   : > { %v2417_v9 = vld [vmem:[#allocation2 + $0x18] ss:$2 sm:$0xff] }
  0xd0   : > { %2100 = vst.msk [vmem:[#allocation2 + $0x31] sm:$0xff] %vm1941_vm0, %v1815_v23  ;;  %v438_v23 = vld [vmem:[%s6222_s13 + $0xd8] sm:$0xff] }
  0xd1   : > { %v1236_v29 = vpop.f32.mrf.mxu0  ;;  %v570_v27 = vmul.f32 %v6239_v4, %v438_v23 }
  0xd2   : > { %v1556_v30 = vmul.f32 %v6473_v43, %v1236_v29 }
  0xd3   : > { %v702_v33 = vadd.f32 %v6244_v5, %v570_v27 }
  0xd4   : > { %v1688_v31 = vadd.f32 %v6478_v44, %v1556_v30 }
  0xd5   : > { %v830_v38 = vmax.f32 %v702_v33, 0.0 }
  0xd6   : > { %v1816_v34 = vmax.f32 %v1688_v31, 0.0 }
  0xd8   : > { %2101 = vst.msk [vmem:[#allocation2 + $0x39] sm:$0xff] %vm1941_vm0, %v1816_v34 }
  0xd9   : > { %v1239_v36 = vpop.f32.mrf.mxu0 }
  0xda   : > { %v1557_v40 = vmul.f32 %v6473_v43, %v1239_v36 }
  0xdc   : > { %v1689_v41 = vadd.f32 %v6478_v44, %v1557_v40  ;;  %5137 = vmatmul.msk.bf16.gmra.mxu0 %vm1027_vm2, %v949_v35  ;;  %v952_v40 = vpack.c.bf16 %v830_v38, %v829_v37 }
  0xde   : > { %v1817_v49 = vmax.f32 %v1689_v41, 0.0 }
  0xdf   : > { %v2292_v50 = vld [vmem:[#allocation2 + $0x31] ss:$2 sm:$0xff]  ;;  %v2356_v60 = vld [vmem:[#allocation2 + $0x32] ss:$2 sm:$0xff] }
  0xe0   : > { %2102 = vst.msk [vmem:[#allocation2 + $0x49] sm:$0xff] %vm1941_vm0, %v1817_v49  ;;  %v5470_v51 = vpack.i.bf16 %v2292_v50, %v2290_v47  ;;  %v5475_v62 = vpack.i.bf16 %v2356_v60, %v2354_v59  ;;  %v2737_v29 = vld [vmem:[#allocation2 + $0x32] ss:$2 sm:$0xff]  ;;  %v571_v49 = vmul.f32 %v6239_v4, %v439_v42  ;;  %v572_v50 = vmul.f32 %v6239_v4, %v440_v45 }
  0xe1   : > { %v1241_v54 = vpop.f32.mrf.mxu0  ;;  %v5384_v45 = vld [vmem:[%s8080_s6 + $0x30] sm:$0xff] }
  0xe2   : > { %v1558_v55 = vmul.f32 %v6473_v43, %v1241_v54  ;;  %5471 = vrot.lane.b32.xlu0 %v5470_v51, %s6067_s15  ;;  %v703_v52 = vadd.f32 %v6244_v5, %v571_v49  ;;  %v704_v53 = vadd.f32 %v6244_v5, %v572_v50 }
  0xe4   : > { %v1690_v56 = vadd.f32 %v6478_v44, %v1558_v55  ;;  %v831_v57 = vmax.f32 %v703_v52, 0.0  ;;  %v832_v58 = vmax.f32 %v704_v53, 0.0 }
  0xe6   : > { %v1818_v61 = vmax.f32 %v1690_v56, 0.0  ;;  %v953_v60 = vpack.c.bf16 %v832_v58, %v831_v57  ;;  %v487_v57 = vld [vmem:[%s6222_s13 + $0x260] sm:$0xff]  ;;  %v488_v58 = vld [vmem:[%s6222_s13 + $0x268] sm:$0xff] }
  0xe8   : > { %2103 = vst.msk [vmem:[#allocation2 + $0x51] sm:$0xff] %vm1941_vm0, %v1818_v61  ;;  %v441_v61 = vld [vmem:[%s6222_s13 + $0xf0] sm:$0xff] }
  0xe9   : > { %v1244_v0 = vpop.f32.mrf.mxu0  ;;  %v573_v1 = vmul.f32 %v6239_v4, %v441_v61 }
  0xea   : > { %v1559_v3 = vmul.f32 %v6473_v43, %v1244_v0  ;;  %5476 = vrot.lane.b32.xlu0 %v5475_v62, %s6068_s16 }
  0xec   : > { %v1691_v6 = vadd.f32 %v6478_v44, %v1559_v3  ;;  %5138 = vmatmul.msk.bf16.gmra.mxu0 %vm1027_vm2, %v950_v63  ;;  %v442_v63 = vld [vmem:[%s6222_s13 + $0xf8] sm:$0xff] }
  0xed   : > { %v574_v3 = vmul.f32 %v6239_v4, %v442_v63 }
  0xee   : > { %v1819_v46 = vmax.f32 %v1691_v6, 0.0 }
  0xef   : > { %v2419_v10 = vld [vmem:[#allocation2 + $0x48] ss:$2 sm:$0xff]  ;;  %v706_v13 = vadd.f32 %v6244_v5, %v574_v3 }
  0xf0   : > { %2104 = vst.msk [vmem:[#allocation2 + $0x61] sm:$0xff] %vm1941_vm0, %v1819_v46  ;;  %v5480_v11 = vpack.i.bf16 %v2419_v10, %v2417_v9  ;;  %v705_v10 = vadd.f32 %v6244_v5, %v573_v1  ;;  %v6651_v1 = vld [vmem:[%s8076_s2] ss:$0 sm:$0xff] }
  0xf1   : > { %v1246_v14 = vpop.f32.mrf.mxu0  ;;  %v834_v22 = vmax.f32 %v706_v13, 0.0  ;;  %v445_v13 = vld [vmem:[%s6222_s13 + $0x110] sm:$0xff] }
  0xf2   : > { %v1560_v15 = vmul.f32 %v6473_v43, %v1246_v14  ;;  %5481 = vrot.lane.b32.xlu1 %v5480_v11, %s6069_s12 }
  0xf4   : > { %v1692_v16 = vadd.f32 %v6478_v44, %v1560_v15  ;;  %v485_v15 = vld [vmem:[%s6222_s13 + $0x250] sm:$0xff] }
  0xf5   : > { %v617_v18 = vmul.f32 %v6239_v4, %v485_v15 }
  0xf6   : > { %v1820_v19 = vmax.f32 %v1692_v16, 0.0  ;;  %v486_v16 = vld [vmem:[%s6222_s13 + $0x258] sm:$0xff] }
  0xf7   : > { %v749_v23 = vadd.f32 %v6244_v5, %v617_v18 }
  0xf8   : > { %2105 = vst.msk [vmem:[#allocation2 + $0x69] sm:$0xff] %vm1941_vm0, %v1820_v19  ;;  %v618_v19 = vmul.f32 %v6239_v4, %v486_v16 }
  0xf9   : > { %v1249_v21 = vpop.f32.mrf.mxu0  ;;  %v877_v27 = vmax.f32 %v749_v23, 0.0 }
  0xfa   : > { %v1561_v24 = vmul.f32 %v6473_v43, %v1249_v21 }
  0xfc   : > { %v1693_v25 = vadd.f32 %v6478_v44, %v1561_v24  ;;  %5139 = vmatmul.msk.bf16.gmra.mxu0 %vm1027_vm2, %v951_v20  ;;  %v833_v20 = vmax.f32 %v705_v10, 0.0  ;;  %v750_v24 = vadd.f32 %v6244_v5, %v618_v19 }
  0xfe   : > { %v1821_v28 = vmax.f32 %v1693_v25, 0.0  ;;  %v1529_v25 = vpop.f32.mrf.mxu3 }
  0xff   : > { %v2739_v30 = vld [vmem:[#allocation2 + $0x62] ss:$2 sm:$0xff]  ;;  %v2294_v46 = vld [vmem:[#allocation2 + $0x61] ss:$2 sm:$0xff]  ;;  %v1673_v32 = vmul.f32 %v6473_v43, %v1529_v25 }
 0x100   : > { %2106 = vst.msk [vmem:[#allocation2 + $0x79] sm:$0xff] %vm1941_vm0, %v1821_v28  ;;  %v3799_v31 = vpack.c.bf16 %v2739_v30, %v2737_v29  ;;  %v2358_v7 = vld [vmem:[#allocation2 + $0x62] ss:$2 sm:$0xff]  ;;  %v878_v28 = vmax.f32 %v750_v24, 0.0  ;;  %v954_v29 = vpack.c.bf16 %v834_v22, %v833_v20  ;;  %v5381_v22 = vld [vmem:[%s8080_s6 + $0x18] sm:$0xff] }
 0x101   : > { %v1251_v34 = vpop.f32.mrf.mxu0  ;;  %v443_v30 = vld [vmem:[%s6222_s13 + $0x100] sm:$0xff]  ;;  %v1805_v37 = vadd.f32 %v6478_v44, %v1673_v32 }
 0x102   : > { %v1562_v35 = vmul.f32 %v6473_v43, %v1251_v34  ;;  %5263 = vmatmul.msk.bf16.vlgmr.msrb.gmra.mxu3 %vm1941_vm0, %v3799_v31  ;;  %v444_v31 = vld [vmem:[%s6222_s13 + $0x108] sm:$0xff]  ;;  %v976_v33 = vpack.c.bf16 %v878_v28, %v877_v27  ;;  %v575_v38 = vmul.f32 %v6239_v4, %v443_v30 }
 0x104   : > { %v1694_v36 = vadd.f32 %v6478_v44, %v1562_v35  ;;  %v5385_v35 = vld [vmem:[%s8080_s6 + $0x38] sm:$0xff]  ;;  %5164 = vmatmul.msk.bf16.vlgmr.msra.gmra.mxu1 %vm1027_vm2, %v976_v33 }
 0x105   : > { %4001 = vmatpush.bf16.msrb.mxu1 %v5385_v35 }
 0x106   : > { %v1822_v39 = vmax.f32 %v1694_v36, 0.0  ;;  %v1531_v42 = vpop.f32.mrf.mxu3 }
 0x107   : > { %v1674_v52 = vmul.f32 %v6473_v43, %v1531_v42 }
 0x108   : > { %2107 = vst.msk [vmem:[#allocation2 + $0x81] sm:$0xff] %vm1941_vm0, %v1822_v39  ;;  %v576_v39 = vmul.f32 %v6239_v4, %v444_v31  ;;  %v707_v4 = vadd.f32 %v6244_v5, %v575_v38 }
 0x109   : > { %v1254_v41 = vpop.f32.mrf.mxu0  ;;  %4002 = vmatpush.bf16.msrb.mxu1 %v5384_v45 }
 0x10a   : > { %v1563_v47 = vmul.f32 %v6473_v43, %v1254_v41  ;;  %v1933_v41 = vmax.f32 %v1805_v37, 0.0  ;;  %v708_v50 = vadd.f32 %v6244_v5, %v576_v39  ;;  %v835_v5 = vmax.f32 %v707_v4, 0.0 }
 0x10c   : > { %v1695_v48 = vadd.f32 %v6478_v44, %v1563_v47  ;;  %5140 = vmatmul.msk.bf16.gmra.mxu0 %vm1027_vm2, %v952_v40  ;;  %2218 = vst.msk [vmem:[#allocation2 + $0x649] sm:$0xff] %vm1941_vm0, %v1933_v41 }
 0x10e   : > { %v1823_v51 = vmax.f32 %v1695_v48, 0.0 }
 0x10f   : > { %v2421_v48 = vld [vmem:[#allocation2 + $0x78] ss:$2 sm:$0xff] }
 0x110   : > { %2108 = vst.msk [vmem:[#allocation2 + $0x91] sm:$0xff] %vm1941_vm0, %v1823_v51 }
 0x111   : > { %v1256_v54 = vpop.f32.mrf.mxu0 }
 0x112   : > { %v1564_v55 = vmul.f32 %v6473_v43, %v1256_v54  ;;  %v5383_v54 = vld [vmem:[%s8080_s6 + $0x28] sm:$0xff] }
 0x113   : > { %4003 = vmatpush.bf16.msrb.mxu1 %v5383_v54  ;;  %v491_v54 = vld [vmem:[%s6222_s13 + $0x280] sm:$0xff] }
 0x114   : > { %v1696_v56 = vadd.f32 %v6478_v44, %v1564_v55 }
 0x116   : > { %v1824_v59 = vmax.f32 %v1696_v56, 0.0  ;;  %v1806_v56 = vadd.f32 %v6478_v44, %v1674_v52 }
 0x118   : > { %2109 = vst.msk [vmem:[#allocation2 + $0x99] sm:$0xff] %vm1941_vm0, %v1824_v59  ;;  %v836_v59 = vmax.f32 %v708_v50, 0.0 }
 0x119   : > { %v1259_v62 = vpop.f32.mrf.mxu0 }
 0x11a   : > { %v1565_v0 = vmul.f32 %v6473_v43, %v1259_v62 }
 0x11c   : > { %v1697_v2 = vadd.f32 %v6478_v44, %v1565_v0  ;;  %5141 = vmatmul.msk.bf16.gmra.mxu0 %vm1027_vm2, %v953_v60  ;;  %v6643_v60 = vld [vmem:[%s8075_s1] ss:$0 sm:$0xff]  ;;  %v1934_v0 = vmax.f32 %v1806_v56, 0.0 }
 0x11d   : > { %v619_v61 = vmul.f32 %v6643_v60, %v487_v57  ;;  %v620_v62 = vmul.f32 %v6643_v60, %v488_v58  ;;  %v577_v25 = vmul.f32 %v6643_v60, %v445_v13  ;;  %v623_v56 = vmul.f32 %v6643_v60, %v491_v54  ;;  %v447_v58 = vld [vmem:[%s6222_s13 + $0x120] sm:$0xff] }
 0x11e   : > { %v1825_v6 = vmax.f32 %v1697_v2, 0.0  ;;  %2219 = vst.msk [vmem:[#allocation2 + $0x651] sm:$0xff] %vm1941_vm0, %v1934_v0 }
 0x11f   : > { %v2360_v8 = vld [vmem:[#allocation2 + $0x92] ss:$2 sm:$0xff]  ;;  %v2296_v9 = vld [vmem:[#allocation2 + $0x91] ss:$2 sm:$0xff]  ;;  %v751_v2 = vadd.f32 %v6651_v1, %v619_v61  ;;  %v752_v3 = vadd.f32 %v6651_v1, %v620_v62  ;;  %v709_v37 = vadd.f32 %v6651_v1, %v577_v25  ;;  %v448_v62 = vld [vmem:[%s6222_s13 + $0x128] sm:$0xff] }
 0x120   : > { %2110 = vst.msk [vmem:[#allocation2 + $0xa9] sm:$0xff] %vm1941_vm0, %v1825_v6  ;;  %v5490_v11 = vpack.i.bf16 %v2360_v8, %v2358_v7  ;;  %v5485_v12 = vpack.i.bf16 %v2296_v9, %v2294_v46  ;;  %v1534_v7 = vpop.f32.mrf.mxu3  ;;  %v5382_v8 = vld [vmem:[%s8080_s6 + $0x20] sm:$0xff]  ;;  %v489_v46 = vld [vmem:[%s6222_s13 + $0x270] sm:$0xff]  ;;  %v955_v9 = vpack.c.bf16 %v836_v59, %v835_v5 }
 0x121   : > { %v1261_v14 = vpop.f32.mrf.mxu0  ;;  %v879_v10 = vmax.f32 %v751_v2, 0.0  ;;  %v1675_v15 = vmul.f32 %v6473_v43, %v1534_v7  ;;  %4004 = vmatpush.bf16.msrb.mxu1 %v5382_v8  ;;  %v621_v16 = vmul.f32 %v6643_v60, %v489_v46  ;;  %v2741_v35 = vld [vmem:[#allocation2 + $0x92] ss:$2 sm:$0xff]  ;;  %v580_v46 = vmul.f32 %v6643_v60, %v448_v62 }
 0x122   : > { %v1566_v17 = vmul.f32 %v6473_v43, %v1261_v14  ;;  %5491 = vrot.lane.b32.xlu2 %v5490_v11, %s6068_s16  ;;  %5486 = vrot.lane.b32.xlu1 %v5485_v12, %s6067_s15  ;;  %v880_v11 = vmax.f32 %v752_v3, 0.0  ;;  %v490_v12 = vld [vmem:[%s6222_s13 + $0x278] sm:$0xff] }
 0x123   : > { %v446_v14 = vld [vmem:[%s6222_s13 + $0x118] sm:$0xff]  ;;  %v753_v23 = vadd.f32 %v6651_v1, %v621_v16 }
 0x124   : > { %v1698_v21 = vadd.f32 %v6478_v44, %v1566_v17  ;;  %v622_v17 = vmul.f32 %v6643_v60, %v490_v12  ;;  %v977_v19 = vpack.c.bf16 %v880_v11, %v879_v10 }
 0x125   : > { %4005 = vmatpush.bf16.msrb.mxu1 %v5381_v22 }
 0x126   : > { %v1826_v26 = vmax.f32 %v1698_v21, 0.0  ;;  %v1807_v21 = vadd.f32 %v6478_v44, %v1675_v15  ;;  %v754_v24 = vadd.f32 %v6651_v1, %v622_v17  ;;  %5165 = vmatmul.msk.bf16.gmra.mxu1 %vm1027_vm2, %v977_v19  ;;  %v712_v15 = vadd.f32 %v6651_v1, %v580_v46 }
 0x128   : > { %2111 = vst.msk [vmem:[#allocation2 + $0xb1] sm:$0xff] %vm1941_vm0, %v1826_v26  ;;  %v578_v26 = vmul.f32 %v6643_v60, %v446_v14  ;;  %v1935_v28 = vmax.f32 %v1807_v21, 0.0  ;;  %v882_v30 = vmax.f32 %v754_v24, 0.0  ;;  %v1536_v32 = vpop.f32.mrf.mxu3  ;;  %v840_v22 = vmax.f32 %v712_v15, 0.0 }
 0x129   : > { %v1264_v34 = vpop.f32.mrf.mxu0 }
 0x12a   : > { %v1567_v36 = vmul.f32 %v6473_v43, %v1264_v34  ;;  %2220 = vst.msk [vmem:[#allocation2 + $0x661] sm:$0xff] %vm1941_vm0, %v1935_v28  ;;  %v5380_v34 = vld [vmem:[%s8080_s6 + $0x10] sm:$0xff]  ;;  %v710_v39 = vadd.f32 %v6651_v1, %v578_v26  ;;  %v494_v28 = vld [vmem:[%s6222_s13 + $0x298] sm:$0xff] }
 0x12b   : > { %4006 = vmatpush.bf16.msrb.mxu1 %v5380_v34  ;;  %v626_v34 = vmul.f32 %v6643_v60, %v494_v28 }
 0x12c   : > { %v1699_v40 = vadd.f32 %v6478_v44, %v1567_v36  ;;  %5142 = vmatmul.msk.bf16.gmra.mxu0 %vm1027_vm2, %v954_v29  ;;  %v881_v29 = vmax.f32 %v753_v23, 0.0  ;;  %v838_v4 = vmax.f32 %v710_v39, 0.0 }
 0x12d   : > { %v758_v39 = vadd.f32 %v6651_v1, %v626_v34 }
 0x12e   : > { %v1827_v47 = vmax.f32 %v1699_v40, 0.0  ;;  %v978_v33 = vpack.c.bf16 %v882_v30, %v881_v29  ;;  %v1676_v40 = vmul.f32 %v6473_v43, %v1536_v32  ;;  %v449_v30 = vld [vmem:[%s6222_s13 + $0x130] sm:$0xff] }
 0x12f   : > { %v2423_v49 = vld [vmem:[#allocation2 + $0xa8] ss:$2 sm:$0xff] }
 0x130   : > { %2112 = vst.msk [vmem:[#allocation2 + $0xc1] sm:$0xff] %vm1941_vm0, %v1827_v47  ;;  %v5495_v51 = vpack.i.bf16 %v2423_v49, %v2421_v48  ;;  %5166 = vmatmul.msk.bf16.vlgmr.msra.gmra.mxu2 %vm1027_vm2, %v978_v33  ;;  %v1808_v45 = vadd.f32 %v6478_v44, %v1676_v40  ;;  %v5379_v47 = vld [vmem:[%s8080_s6 + $0x8] sm:$0xff]  ;;  %v837_v49 = vmax.f32 %v709_v37, 0.0  ;;  %v1539_v52 = vpop.f32.mrf.mxu3  ;;  %v581_v40 = vmul.f32 %v6643_v60, %v449_v30 }
 0x131   : > { %v1266_v53 = vpop.f32.mrf.mxu0  ;;  %4007 = vmatpush.bf16.msrb.mxu1 %v5379_v47  ;;  %v1677_v5 = vmul.f32 %v6473_v43, %v1539_v52  ;;  %v452_v30 = vld [vmem:[%s6222_s13 + $0x148] sm:$0xff] }
 0x132   : > { %v1568_v55 = vmul.f32 %v6473_v43, %v1266_v53  ;;  %5496 = vrot.lane.b32.xlu2 %v5495_v51, %s6069_s12  ;;  %v1936_v50 = vmax.f32 %v1808_v45, 0.0  ;;  %v5378_v53 = vld [vmem:[%s8080_s6] sm:$0xff]  ;;  %v956_v57 = vpack.c.bf16 %v838_v4, %v837_v49 }
 0x133   : > { %v1809_v2 = vadd.f32 %v6478_v44, %v1677_v5 }
 0x134   : > { %v1700_v63 = vadd.f32 %v6478_v44, %v1568_v55  ;;  %2221 = vst.msk [vmem:[#allocation2 + $0x669] sm:$0xff] %vm1941_vm0, %v1936_v50  ;;  %v492_v55 = vld [vmem:[%s6222_s13 + $0x288] sm:$0xff] }
 0x135   : > { %4008 = vmatpush.bf16.msrb.mxu1 %v5378_v53  ;;  %v624_v59 = vmul.f32 %v6643_v60, %v492_v55  ;;  %v713_v55 = vadd.f32 %v6651_v1, %v581_v40 }
 0x136   : > { %v1828_v6 = vmax.f32 %v1700_v63, 0.0  ;;  %v755_v63 = vadd.f32 %v6651_v1, %v623_v56 }
 0x137   : > { %v756_v3 = vadd.f32 %v6651_v1, %v624_v59 }
 0x138   : > { %2113 = vst.msk [vmem:[#allocation2 + $0xc9] sm:$0xff] %vm1941_vm0, %v1828_v6  ;;  %v579_v6 = vmul.f32 %v6643_v60, %v447_v58  ;;  %v883_v7 = vmax.f32 %v755_v63, 0.0  ;;  %v1541_v12 = vpop.f32.mrf.mxu3 }
 0x139   : > { %v1269_v18 = vpop.f32.mrf.mxu0  ;;  %v884_v10 = vmax.f32 %v756_v3, 0.0  ;;  %v1678_v16 = vmul.f32 %v6473_v43, %v1541_v12 }
 0x13a   : > { %v1569_v20 = vmul.f32 %v6473_v43, %v1269_v18  ;;  %v711_v14 = vadd.f32 %v6651_v1, %v579_v6 }
 0x13b   : > { %v979_v13 = vpack.c.bf16 %v884_v10, %v883_v7  ;;  %v1810_v19 = vadd.f32 %v6478_v44, %v1678_v16  ;;  %v841_v10 = vmax.f32 %v713_v55, 0.0  ;;  %v498_v55 = vld [vmem:[%s6222_s13 + $0x2b8] sm:$0xff] }
 0x13c   : > { %v1701_v27 = vadd.f32 %v6478_v44, %v1569_v20  ;;  %5143 = vmatmul.msk.bf16.gmra.mxu0 %vm1027_vm2, %v955_v9  ;;  %v1937_v9 = vmax.f32 %v1809_v2, 0.0  ;;  %v839_v21 = vmax.f32 %v711_v14, 0.0 }
 0x13d   : > { %v1938_v23 = vmax.f32 %v1810_v19, 0.0 }
 0x13e   : > { %v1829_v31 = vmax.f32 %v1701_v27, 0.0  ;;  %2222 = vst.msk [vmem:[#allocation2 + $0x679] sm:$0xff] %vm1941_vm0, %v1937_v9  ;;  %v493_v27 = vld [vmem:[%s6222_s13 + $0x290] sm:$0xff]  ;;  %v957_v29 = vpack.c.bf16 %v840_v22, %v839_v21  ;;  %v496_v21 = vld [vmem:[%s6222_s13 + $0x2a8] sm:$0xff] }
 0x13f   : > { %v2743_v36 = vld [vmem:[#allocation2 + $0xc2] ss:$2 sm:$0xff]  ;;  %2223 = vst.msk [vmem:[#allocation2 + $0x681] sm:$0xff] %vm1941_vm0, %v1938_v23  ;;  %v625_v33 = vmul.f32 %v6643_v60, %v493_v27  ;;  %v2298_v53 = vld [vmem:[#allocation2 + $0xc1] ss:$2 sm:$0xff]  ;;  %v628_v28 = vmul.f32 %v6643_v60, %v496_v21 }
 0x140   : > { %2114 = vst.msk [vmem:[#allocation2 + $0xd9] sm:$0xff] %vm1941_vm0, %v1829_v31  ;;  %v3802_v38 = vpack.c.bf16 %v2743_v36, %v2741_v35  ;;  %5167 = vmatmul.msk.bf16.gmra.mxu2 %vm1027_vm2, %v979_v13  ;;  %v1544_v26 = vpop.f32.mrf.mxu3  ;;  %v450_v31 = vld [vmem:[%s6222_s13 + $0x138] sm:$0xff]  ;;  %v2362_v4 = vld [vmem:[#allocation2 + $0xc2] ss:$2 sm:$0xff] }
 0x141   : > { %v1271_v41 = vpop.f32.mrf.mxu0  ;;  %v1679_v32 = vmul.f32 %v6473_v43, %v1544_v26  ;;  %v451_v26 = vld [vmem:[%s6222_s13 + $0x140] sm:$0xff] }
 0x142   : > { %v1570_v42 = vmul.f32 %v6473_v43, %v1271_v41  ;;  %5264 = vmatmul.msk.bf16.gmra.mxu3 %vm1941_vm0, %v3802_v38  ;;  %v757_v38 = vadd.f32 %v6651_v1, %v625_v33  ;;  %v582_v41 = vmul.f32 %v6643_v60, %v450_v31  ;;  %v760_v33 = vadd.f32 %v6651_v1, %v628_v28  ;;  %v499_v21 = vld [vmem:[%s6222_s13 + $0x2c0] sm:$0xff] }
 0x143   : > { %v1811_v37 = vadd.f32 %v6478_v44, %v1679_v32  ;;  %v583_v34 = vmul.f32 %v6643_v60, %v451_v26 }
 0x144   : > { %v1702_v48 = vadd.f32 %v6478_v44, %v1570_v42  ;;  %v885_v47 = vmax.f32 %v757_v38, 0.0  ;;  %v714_v56 = vadd.f32 %v6651_v1, %v582_v41  ;;  %v888_v38 = vmax.f32 %v760_v33, 0.0 }
 0x145   : > { %v1939_v45 = vmax.f32 %v1811_v37, 0.0 }
 0x146   : > { %v1830_v51 = vmax.f32 %v1702_v48, 0.0  ;;  %v886_v48 = vmax.f32 %v758_v39, 0.0 }
 0x147   : > { %2224 = vst.msk [vmem:[#allocation2 + $0x691] sm:$0xff] %vm1941_vm0, %v1939_v45 }
 0x148   : > { %2115 = vst.msk [vmem:[#allocation2 + $0xe1] sm:$0xff] %vm1941_vm0, %v1830_v51  ;;  %v980_v50 = vpack.c.bf16 %v886_v48, %v885_v47  ;;  %v715_v47 = vadd.f32 %v6651_v1, %v583_v34 }
 0x149   : > { %v1274_v61 = vpop.f32.mrf.mxu0 }
 0x14a   : > { %v1571_v0 = vmul.f32 %v6473_v43, %v1274_v61 }
 0x14c   : > { %v1703_v8 = vadd.f32 %v6478_v44, %v1571_v0  ;;  %5144 = vmatmul.msk.bf16.gmra.mxu0 %vm1027_vm2, %v956_v57  ;;  %v1546_v57 = vpop.f32.mrf.mxu3  ;;  %v2226_v0 = vld [vmem:[#allocation2] ss:$2 sm:$0xff] }
 0x14d   : > { %v1680_v59 = vmul.f32 %v6473_v43, %v1546_v57  ;;  %v630_v57 = vmul.f32 %v6643_v60, %v498_v55 }
 0x14e   : > { %v1831_v11 = vmax.f32 %v1703_v8, 0.0  ;;  %v2228_v8 = vld [vmem:[#allocation2 + $0x30] ss:$2 sm:$0xff] }
 0x14f   : > { %v1812_v7 = vadd.f32 %v6478_v44, %v1680_v59  ;;  %v2425_v41 = vld [vmem:[#allocation2 + $0xd8] ss:$2 sm:$0xff]  ;;  %v453_v59 = vld [vmem:[%s6222_s13 + $0x150] sm:$0xff] }
 0x150   : > { %2116 = vst.msk [vmem:[#allocation2 + $0xf1] sm:$0xff] %vm1941_vm0, %v1831_v11  ;;  %5168 = vmatmul.msk.bf16.gmra.mxu2 %vm1027_vm2, %v980_v50  ;;  %v842_v11 = vmax.f32 %v714_v56, 0.0 }
 0x151   : > { %v1276_v17 = vpop.f32.mrf.mxu0  ;;  %v1940_v12 = vmax.f32 %v1812_v7, 0.0  ;;  %v585_v7 = vmul.f32 %v6643_v60, %v453_v59  ;;  %v502_v59 = vld [vmem:[%s6222_s13 + $0x2d8] sm:$0xff] }
 0x152   : > { %v1572_v18 = vmul.f32 %v6473_v43, %v1276_v17 }
 0x153   : > { %2225 = vst.msk [vmem:[#allocation2 + $0x699] sm:$0xff] %vm1941_vm0, %v1940_v12 }
 0x154   : > { %v1704_v20 = vadd.f32 %v6478_v44, %v1572_v18  ;;  %v5472_v24 = vpop.permute.xlu0 %5471 }
 0x155   : > { %v5474_v61 = vunpack.i.h.bf16 %v5472_v24  ;;  %v5473_v62 = vunpack.i.l.bf16 %v5472_v24 }
 0x156   : > { %v1832_v25 = vmax.f32 %v1704_v20, 0.0  ;;  %v495_v20 = vld [vmem:[%s6222_s13 + $0x2a0] sm:$0xff] }
 0x157   : > { %v3568_v13 = vsel %vm1941_vm0, %v2226_v0, %v5473_v62  ;;  %v3569_v14 = vsel %vm1941_vm0, %v2228_v8, %v5474_v61  ;;  %v627_v27 = vmul.f32 %v6643_v60, %v495_v20  ;;  %v454_v61 = vld [vmem:[%s6222_s13 + $0x158] sm:$0xff] }
 0x158   : > { %2117 = vst.msk [vmem:[#allocation2 + $0xf9] sm:$0xff] %vm1941_vm0, %v1832_v25  ;;  %v958_v25 = vpack.c.bf16 %v842_v11, %v841_v10  ;;  %v586_v8 = vmul.f32 %v6643_v60, %v454_v61 }
 0x159   : > { %v1279_v35 = vpop.f32.mrf.mxu0  ;;  %v759_v32 = vadd.f32 %v6651_v1, %v627_v27 }
 0x15a   : > { %v1573_v36 = vmul.f32 %v6473_v43, %v1279_v35 }
 0x15b   : > { %v887_v37 = vmax.f32 %v759_v32, 0.0 }
 0x15c   : > { %v1705_v42 = vadd.f32 %v6478_v44, %v1573_v36  ;;  %5145 = vmatmul.msk.bf16.gmra.mxu0 %vm1027_vm2, %v957_v29  ;;  %v5477_v51 = vpop.permute.xlu0 %5476  ;;  %v584_v36 = vmul.f32 %v6643_v60, %v452_v30 }
 0x15d   : > { %v5479_v2 = vunpack.i.h.bf16 %v5477_v51  ;;  %v5478_v3 = vunpack.i.l.bf16 %v5477_v51  ;;  %v981_v40 = vpack.c.bf16 %v888_v38, %v887_v37  ;;  %v843_v51 = vmax.f32 %v715_v47, 0.0 }
 0x15e   : > { %v1833_v49 = vmax.f32 %v1705_v42, 0.0  ;;  %v716_v48 = vadd.f32 %v6651_v1, %v584_v36 }
 0x15f   : > { %v2364_v52 = vld [vmem:[#allocation2 + $0xf2] ss:$2 sm:$0xff]  ;;  %v2300_v54 = vld [vmem:[#allocation2 + $0xf1] ss:$2 sm:$0xff]  ;;  %v3600_v17 = vsel %vm1027_vm2, %v3568_v13, %v5478_v3  ;;  %v3601_v18 = vsel %vm1027_vm2, %v3569_v14, %v5479_v2  ;;  %v717_v13 = vadd.f32 %v6651_v1, %v585_v7  ;;  %v718_v14 = vadd.f32 %v6651_v1, %v586_v8 }
 0x160   : > { %2118 = vst.msk [vmem:[#allocation2 + $0x109] sm:$0xff] %vm1941_vm0, %v1833_v49  ;;  %v5505_v58 = vpack.i.bf16 %v2364_v52, %v2362_v4  ;;  %v5500_v5 = vpack.i.bf16 %v2300_v54, %v2298_v53  ;;  %5169 = vmatmul.msk.bf16.gmra.mxu2 %vm1027_vm2, %v981_v40  ;;  %v844_v52 = vmax.f32 %v716_v48, 0.0  ;;  %v497_v54 = vld [vmem:[%s6222_s13 + $0x2b0] sm:$0xff]  ;;  %v634_v8 = vmul.f32 %v6643_v60, %v502_v59 }
 0x161   : > { %v1281_v63 = vpop.f32.mrf.mxu0  ;;  %v629_v56 = vmul.f32 %v6643_v60, %v497_v54  ;;  %v2745_v10 = vld [vmem:[#allocation2 + $0xf2] ss:$2 sm:$0xff] }
 0x162   : > { %v1574_v6 = vmul.f32 %v6473_v43, %v1281_v63  ;;  %5506 = vrot.lane.b32.xlu1 %v5505_v58, %s6068_s16  ;;  %5501 = vrot.lane.b32.xlu0 %v5500_v5, %s6067_s15  ;;  %v959_v58 = vpack.c.bf16 %v844_v52, %v843_v51  ;;  %v762_v63 = vadd.f32 %v6651_v1, %v630_v57  ;;  %v2230_v51 = vld [vmem:[#allocation2 + $0x60] ss:$2 sm:$0xff]  ;;  %v2232_v57 = vld [vmem:[#allocation2 + $0x90] ss:$2 sm:$0xff] }
 0x163   : > { %v761_v62 = vadd.f32 %v6651_v1, %v629_v56 }
 0x164   : > { %v1706_v46 = vadd.f32 %v6478_v44, %v1574_v6  ;;  %v5482_v9 = vpop.permute.xlu1 %5481  ;;  %v890_v3 = vmax.f32 %v762_v63, 0.0 }
 0x165   : > { %v5484_v15 = vunpack.i.h.bf16 %v5482_v9  ;;  %v5483_v16 = vunpack.i.l.bf16 %v5482_v9  ;;  %v889_v2 = vmax.f32 %v761_v62, 0.0 }
 0x166   : > { %v1834_v19 = vmax.f32 %v1706_v46, 0.0 }
 0x167   : > { %v3633_v22 = vsel %vm3632_vm4, %v3600_v17, %v5483_v16  ;;  %v3634_v23 = vsel %vm3632_vm4, %v3601_v18, %v5484_v15  ;;  %v982_v46 = vpack.c.bf16 %v890_v3, %v889_v2  ;;  %v845_v18 = vmax.f32 %v717_v13, 0.0 }
 0x168   : > { %2119 = vst.msk [vmem:[#allocation2 + $0x111] sm:$0xff] %vm1941_vm0, %v1834_v19  ;;  %v3797_v24 = vpack.c.bf16 %v3634_v23, %v3633_v22  ;;  %v846_v19 = vmax.f32 %v718_v14, 0.0  ;;  %v500_v22 = vld [vmem:[%s6222_s13 + $0x2c8] sm:$0xff]  ;;  %v455_v23 = vld [vmem:[%s6222_s13 + $0x160] sm:$0xff] }
 0x169   : > { %v1284_v29 = vpop.f32.mrf.mxu0  ;;  %v632_v26 = vmul.f32 %v6643_v60, %v500_v22  ;;  %v587_v32 = vmul.f32 %v6643_v60, %v455_v23 }
 0x16a   : > { %v1575_v31 = vmul.f32 %v6473_v43, %v1284_v29  ;;  %4009 = vmatmul.bf16.vlgmr.msrb.gmra.mxu1 %v3797_v24  ;;  %v456_v24 = vld [vmem:[%s6222_s13 + $0x168] sm:$0xff]  ;;  %v960_v27 = vpack.c.bf16 %v846_v19, %v845_v18 }
 0x16b   : > { %v764_v30 = vadd.f32 %v6651_v1, %v632_v26  ;;  %v588_v33 = vmul.f32 %v6643_v60, %v456_v24  ;;  %v719_v40 = vadd.f32 %v6651_v1, %v587_v32 }
 0x16c   : > { %v1707_v35 = vadd.f32 %v6478_v44, %v1575_v31  ;;  %5146 = vmatmul.msk.bf16.gmra.mxu0 %vm1027_vm2, %v958_v25  ;;  %v631_v25 = vmul.f32 %v6643_v60, %v499_v21 }
 0x16e   : > { %v1835_v39 = vmax.f32 %v1707_v35, 0.0  ;;  %v763_v29 = vadd.f32 %v6651_v1, %v631_v25  ;;  %v892_v35 = vmax.f32 %v764_v30, 0.0 }
 0x16f   : > { %v2427_v42 = vld [vmem:[#allocation2 + $0x108] ss:$2 sm:$0xff] }
 0x170   : > { %2120 = vst.msk [vmem:[#allocation2 + $0x121] sm:$0xff] %vm1941_vm0, %v1835_v39  ;;  %v5510_v45 = vpack.i.bf16 %v2427_v42, %v2425_v41  ;;  %5170 = vmatmul.msk.bf16.gmra.mxu2 %vm1027_vm2, %v982_v46  ;;  %v891_v34 = vmax.f32 %v763_v29, 0.0  ;;  %v720_v41 = vadd.f32 %v6651_v1, %v588_v33  ;;  %v6822_v42 = vld [vmem:[%s8078_s4] ss:$0 sm:$0xff] }
 0x171   : > { %v1286_v49 = vpop.f32.mrf.mxu0 }
 0x172   : > { %v1576_v4 = vmul.f32 %v6473_v43, %v1286_v49  ;;  %5511 = vrot.lane.b32.xlu2 %v5510_v45, %s6069_s12  ;;  %v983_v38 = vpack.c.bf16 %v892_v35, %v891_v34  ;;  %v847_v45 = vmax.f32 %v719_v40, 0.0  ;;  %v848_v47 = vmax.f32 %v720_v41, 0.0  ;;  %v6828_v49 = vld [vmem:[%s8079_s5] ss:$0 sm:$0xff] }
 0x174   : > { %v1708_v50 = vadd.f32 %v6478_v44, %v1576_v4 }
 0x176   : > { %v1836_v53 = vmax.f32 %v1708_v50, 0.0 }
 0x178   : > { %2121 = vst.msk [vmem:[#allocation2 + $0x129] sm:$0xff] %vm1941_vm0, %v1836_v53 }
 0x179   : > { %v1289_v5 = vpop.f32.mrf.mxu0 }
 0x17a   : > { %v1577_v0 = vmul.f32 %v6473_v43, %v1289_v5  ;;  %v501_v5 = vld [vmem:[%s6222_s13 + $0x2d0] sm:$0xff] }
 0x17b   : > { %v633_v7 = vmul.f32 %v6643_v60, %v501_v5 }
 0x17c   : > { %v1709_v6 = vadd.f32 %v6478_v44, %v1577_v0  ;;  %5147 = vmatmul.msk.bf16.gmra.mxu0 %vm1027_vm2, %v959_v58  ;;  %v5492_v36 = vpop.permute.xlu2 %5491  ;;  %v961_v58 = vpack.c.bf16 %v848_v47, %v847_v45  ;;  %v459_v45 = vld [vmem:[%s6222_s13 + $0x180] sm:$0xff]  ;;  %v460_v47 = vld [vmem:[%s6222_s13 + $0x188] sm:$0xff] }
 0x17d   : > { %v5494_v54 = vunpack.i.h.bf16 %v5492_v36  ;;  %v5493_v55 = vunpack.i.l.bf16 %v5492_v36  ;;  %v765_v14 = vadd.f32 %v6651_v1, %v633_v7 }
 0x17e   : > { %v1837_v9 = vmax.f32 %v1709_v6, 0.0  ;;  %v457_v6 = vld [vmem:[%s6222_s13 + $0x170] sm:$0xff] }
 0x17f   : > { %v2747_v11 = vld [vmem:[#allocation2 + $0x122] ss:$2 sm:$0xff]  ;;  %v893_v19 = vmax.f32 %v765_v14, 0.0  ;;  %v2302_v25 = vld [vmem:[#allocation2 + $0x121] ss:$2 sm:$0xff] }
 0x180   : > { %2122 = vst.msk [vmem:[#allocation2 + $0x139] sm:$0xff] %vm1941_vm0, %v1837_v9  ;;  %v3805_v12 = vpack.c.bf16 %v2747_v11, %v2745_v10  ;;  %5171 = vmatmul.msk.bf16.gmra.mxu2 %vm1027_vm2, %v983_v38  ;;  %v458_v11 = vld [vmem:[%s6222_s13 + $0x178] sm:$0xff]  ;;  %v2366_v22 = vld [vmem:[#allocation2 + $0x122] ss:$2 sm:$0xff] }
 0x181   : > { %v1291_v15 = vpop.f32.mrf.mxu0  ;;  %v590_v18 = vmul.f32 %v6643_v60, %v458_v11  ;;  %v504_v38 = vld [vmem:[%s6222_s13 + $0x2e8] sm:$0xff]  ;;  %v505_v14 = vld [vmem:[%s6222_s13 + $0x2f0] sm:$0xff] }
 0x182   : > { %v1578_v16 = vmul.f32 %v6473_v43, %v1291_v15  ;;  %5265 = vmatmul.msk.bf16.gmra.mxu3 %vm1941_vm0, %v3805_v12  ;;  %v766_v15 = vadd.f32 %v6651_v1, %v634_v8  ;;  %v636_v40 = vmul.f32 %v6643_v60, %v504_v38 }
 0x183   : > { %v722_v30 = vadd.f32 %v6651_v1, %v590_v18 }
 0x184   : > { %v1710_v17 = vadd.f32 %v6478_v44, %v1578_v16  ;;  %v589_v16 = vmul.f32 %v6643_v60, %v457_v6 }
 0x185   : > { %v850_v35 = vmax.f32 %v722_v30, 0.0 }
 0x186   : > { %v1838_v20 = vmax.f32 %v1710_v17, 0.0 }
 0x188   : > { %2123 = vst.msk [vmem:[#allocation2 + $0x141] sm:$0xff] %vm1941_vm0, %v1838_v20  ;;  %v894_v20 = vmax.f32 %v766_v15, 0.0  ;;  %v506_v15 = vld [vmem:[%s6222_s13 + $0x2f8] sm:$0xff] }
 0x189   : > { %v1294_v28 = vpop.f32.mrf.mxu0 }
 0x18a   : > { %v1579_v31 = vmul.f32 %v6473_v43, %v1294_v28  ;;  %v984_v23 = vpack.c.bf16 %v894_v20, %v893_v19 }
 0x18c   : > { %v1711_v37 = vadd.f32 %v6478_v44, %v1579_v31  ;;  %5148 = vmatmul.msk.bf16.gmra.mxu0 %vm1027_vm2, %v960_v27  ;;  %v5497_v48 = vpop.permute.xlu2 %5496  ;;  %v721_v27 = vadd.f32 %v6651_v1, %v589_v16  ;;  %v637_v16 = vmul.f32 %v6643_v60, %v505_v14 }
 0x18d   : > { %v5499_v61 = vunpack.i.h.bf16 %v5497_v48  ;;  %v5498_v62 = vunpack.i.l.bf16 %v5497_v48 }
 0x18e   : > { %v1839_v39 = vmax.f32 %v1711_v37, 0.0  ;;  %v849_v34 = vmax.f32 %v721_v27, 0.0  ;;  %v503_v37 = vld [vmem:[%s6222_s13 + $0x2e0] sm:$0xff] }
 0x190   : > { %2124 = vst.msk [vmem:[#allocation2 + $0x151] sm:$0xff] %vm1941_vm0, %v1839_v39  ;;  %5172 = vmatmul.msk.bf16.gmra.mxu2 %vm1027_vm2, %v984_v23  ;;  %v635_v39 = vmul.f32 %v6643_v60, %v503_v37  ;;  %v962_v41 = vpack.c.bf16 %v850_v35, %v849_v34 }
 0x191   : > { %v1296_v43 = vpop.f32.mrf.mxu0 }
 0x192   : > { %v1580_v44 = vmul.f32 %v6822_v42, %v1296_v43  ;;  %v1414_v43 = vpop.f32.mrf.mxu1 }
 0x193   : > { %v1627_v48 = vmul.f32 %v6822_v42, %v1414_v43 }
 0x194   : > { %v1712_v4 = vadd.f32 %v6828_v49, %v1580_v44  ;;  %v5487_v50 = vpop.permute.xlu1 %5486 }
 0x195   : > { %v5489_v52 = vunpack.i.h.bf16 %v5487_v50  ;;  %v5488_v53 = vunpack.i.l.bf16 %v5487_v50 }
 0x196   : > { %v1840_v56 = vmax.f32 %v1712_v4, 0.0  ;;  %v767_v4 = vadd.f32 %v6651_v1, %v635_v39 }
 0x197   : > { %v3570_v63 = vsel %vm1941_vm0, %v2230_v51, %v5488_v53  ;;  %v3571_v0 = vsel %vm1941_vm0, %v2232_v57, %v5489_v52  ;;  %v768_v51 = vadd.f32 %v6651_v1, %v636_v40  ;;  %v1759_v52 = vadd.f32 %v6828_v49, %v1627_v48 }
 0x198   : > { %2125 = vst.msk [vmem:[#allocation2 + $0x159] sm:$0xff] %vm1941_vm0, %v1840_v56  ;;  %v3602_v2 = vsel %vm1027_vm2, %v3570_v63, %v5493_v55  ;;  %v3603_v3 = vsel %vm1027_vm2, %v3571_v0, %v5494_v54  ;;  %v895_v53 = vmax.f32 %v767_v4, 0.0  ;;  %v591_v55 = vmul.f32 %v6643_v60, %v459_v45 }
 0x199   : > { %v1299_v46 = vpop.f32.mrf.mxu0  ;;  %v3635_v9 = vsel %vm3632_vm4, %v3602_v2, %v5498_v62  ;;  %v3636_v10 = vsel %vm3632_vm4, %v3603_v3, %v5499_v61  ;;  %v592_v56 = vmul.f32 %v6643_v60, %v460_v47  ;;  %v896_v57 = vmax.f32 %v768_v51, 0.0  ;;  %v2429_v61 = vld [vmem:[#allocation2 + $0x138] ss:$2 sm:$0xff] }
 0x19a   : > { %v1581_v12 = vmul.f32 %v6822_v42, %v1299_v46  ;;  %v3800_v13 = vpack.c.bf16 %v3636_v10, %v3635_v9  ;;  %v723_v0 = vadd.f32 %v6651_v1, %v591_v55  ;;  %v1416_v3 = vpop.f32.mrf.mxu1  ;;  %v508_v55 = vld [vmem:[%s6222_s13 + $0x308] sm:$0xff] }
 0x19b   : > { %v985_v59 = vpack.c.bf16 %v896_v57, %v895_v53  ;;  %v724_v2 = vadd.f32 %v6651_v1, %v592_v56  ;;  %v1628_v7 = vmul.f32 %v6822_v42, %v1416_v3  ;;  %v640_v57 = vmul.f32 %v6643_v60, %v508_v55 }
 0x19c   : > { %v1713_v17 = vadd.f32 %v6828_v49, %v1581_v12  ;;  %5149 = vmatmul.msk.bf16.gmra.mxu0 %vm1027_vm2, %v961_v58  ;;  %4014 = vmatmul.bf16.gmra.mxu1 %v3800_v13  ;;  %v1887_v58 = vmax.f32 %v1759_v52, 0.0  ;;  %v851_v10 = vmax.f32 %v723_v0, 0.0 }
 0x19d   : > { %v1760_v46 = vadd.f32 %v6828_v49, %v1628_v7  ;;  %v852_v11 = vmax.f32 %v724_v2, 0.0  ;;  %v772_v0 = vadd.f32 %v6651_v1, %v640_v57 }
 0x19e   : > { %v1841_v21 = vmax.f32 %v1713_v17, 0.0  ;;  %2172 = vst.msk [vmem:[#allocation2 + $0x3f1] sm:$0xff] %vm1941_vm0, %v1887_v58  ;;  %v638_v17 = vmul.f32 %v6643_v60, %v506_v15 }
 0x19f   : > { %v2368_v24 = vld [vmem:[#allocation2 + $0x152] ss:$2 sm:$0xff]  ;;  %v2304_v26 = vld [vmem:[#allocation2 + $0x151] ss:$2 sm:$0xff]  ;;  %v1888_v12 = vmax.f32 %v1760_v46, 0.0  ;;  %v963_v18 = vpack.c.bf16 %v852_v11, %v851_v10 }
 0x1a0   : > { %2126 = vst.msk [vmem:[#allocation2 + $0x169] sm:$0xff] %vm1941_vm0, %v1841_v21  ;;  %v5520_v28 = vpack.i.bf16 %v2368_v24, %v2366_v22  ;;  %v5515_v29 = vpack.i.bf16 %v2304_v26, %v2302_v25  ;;  %5173 = vmatmul.msk.bf16.gmra.mxu2 %vm1027_vm2, %v985_v59  ;;  %v461_v21 = vld [vmem:[%s6222_s13 + $0x190] sm:$0xff]  ;;  %v462_v22 = vld [vmem:[%s6222_s13 + $0x198] sm:$0xff]  ;;  %v769_v24 = vadd.f32 %v6651_v1, %v637_v16 }
 0x1a1   : > { %v1301_v31 = vpop.f32.mrf.mxu0  ;;  %2173 = vst.msk [vmem:[#allocation2 + $0x3f9] sm:$0xff] %vm1941_vm0, %v1888_v12  ;;  %v770_v26 = vadd.f32 %v6651_v1, %v638_v17  ;;  %v593_v30 = vmul.f32 %v6643_v60, %v461_v21 }
 0x1a2   : > { %v1582_v32 = vmul.f32 %v6822_v42, %v1301_v31  ;;  %5521 = vrot.lane.b32.xlu1 %v5520_v28, %s6068_s16  ;;  %5516 = vrot.lane.b32.xlu0 %v5515_v29, %s6067_s15  ;;  %v897_v28 = vmax.f32 %v769_v24, 0.0  ;;  %v594_v31 = vmul.f32 %v6643_v60, %v462_v22 }
 0x1a3   : > { %v1419_v19 = vpop.f32.mrf.mxu1  ;;  %v725_v39 = vadd.f32 %v6651_v1, %v593_v30  ;;  %v2234_v30 = vld [vmem:[#allocation2 + $0xc0] ss:$2 sm:$0xff] }
 0x1a4   : > { %v1714_v33 = vadd.f32 %v6828_v49, %v1582_v32  ;;  %v1629_v23 = vmul.f32 %v6822_v42, %v1419_v19  ;;  %v898_v32 = vmax.f32 %v770_v26, 0.0  ;;  %v726_v40 = vadd.f32 %v6651_v1, %v594_v31 }
 0x1a6   : > { %v1842_v36 = vmax.f32 %v1714_v33, 0.0  ;;  %v1761_v27 = vadd.f32 %v6828_v49, %v1629_v23  ;;  %v986_v35 = vpack.c.bf16 %v898_v32, %v897_v28  ;;  %v854_v51 = vmax.f32 %v726_v40, 0.0 }
 0x1a8   : > { %2127 = vst.msk [vmem:[#allocation2 + $0x171] sm:$0xff] %vm1941_vm0, %v1842_v36  ;;  %v1889_v33 = vmax.f32 %v1761_v27, 0.0  ;;  %v2749_v36 = vld [vmem:[#allocation2 + $0x152] ss:$2 sm:$0xff] }
 0x1a9   : > { %v1304_v44 = vpop.f32.mrf.mxu0 }
 0x1aa   : > { %v1583_v50 = vmul.f32 %v6822_v42, %v1304_v44  ;;  %2174 = vst.msk [vmem:[#allocation2 + $0x409] sm:$0xff] %vm1941_vm0, %v1889_v33 }
 0x1ac   : > { %v1715_v54 = vadd.f32 %v6828_v49, %v1583_v50  ;;  %5150 = vmatmul.msk.bf16.gmra.mxu0 %vm1027_vm2, %v962_v41  ;;  %v1421_v41 = vpop.f32.mrf.mxu1  ;;  %v853_v50 = vmax.f32 %v725_v39, 0.0 }
 0x1ad   : > { %v1630_v44 = vmul.f32 %v6822_v42, %v1421_v41 }
 0x1ae   : > { %v1843_v5 = vmax.f32 %v1715_v54, 0.0  ;;  %v507_v54 = vld [vmem:[%s6222_s13 + $0x300] sm:$0xff]  ;;  %v964_v58 = vpack.c.bf16 %v854_v51, %v853_v50 }
 0x1af   : > { %v2431_v62 = vld [vmem:[#allocation2 + $0x168] ss:$2 sm:$0xff]  ;;  %v1762_v47 = vadd.f32 %v6828_v49, %v1630_v44  ;;  %v639_v56 = vmul.f32 %v6643_v60, %v507_v54 }
 0x1b0   : > { %2128 = vst.msk [vmem:[#allocation2 + $0x181] sm:$0xff] %vm1941_vm0, %v1843_v5  ;;  %v5525_v63 = vpack.i.bf16 %v2431_v62, %v2429_v61  ;;  %5174 = vmatmul.msk.bf16.gmra.mxu2 %vm1027_vm2, %v986_v35  ;;  %v463_v61 = vld [vmem:[%s6222_s13 + $0x1a0] sm:$0xff]  ;;  %v464_v62 = vld [vmem:[%s6222_s13 + $0x1a8] sm:$0xff] }
 0x1b1   : > { %v1306_v6 = vpop.f32.mrf.mxu0  ;;  %v1890_v52 = vmax.f32 %v1762_v47, 0.0  ;;  %v596_v10 = vmul.f32 %v6643_v60, %v464_v62 }
 0x1b2   : > { %v1584_v8 = vmul.f32 %v6822_v42, %v1306_v6  ;;  %5526 = vrot.lane.b32.xlu2 %v5525_v63, %s6069_s12  ;;  %v771_v63 = vadd.f32 %v6651_v1, %v639_v56 }
 0x1b3   : > { %v1424_v48 = vpop.f32.mrf.mxu2  ;;  %2175 = vst.msk [vmem:[#allocation2 + $0x411] sm:$0xff] %vm1941_vm0, %v1890_v52  ;;  %v728_v15 = vadd.f32 %v6651_v1, %v596_v10 }
 0x1b4   : > { %v1716_v9 = vadd.f32 %v6828_v49, %v1584_v8  ;;  %v1631_v5 = vmul.f32 %v6822_v42, %v1424_v48  ;;  %v899_v7 = vmax.f32 %v771_v63, 0.0  ;;  %v900_v8 = vmax.f32 %v772_v0, 0.0  ;;  %v465_v48 = vld [vmem:[%s6222_s13 + $0x1b0] sm:$0xff] }
 0x1b5   : > { %v856_v26 = vmax.f32 %v728_v15, 0.0 }
 0x1b6   : > { %v1844_v13 = vmax.f32 %v1716_v9, 0.0  ;;  %v1763_v3 = vadd.f32 %v6828_v49, %v1631_v5  ;;  %v595_v9 = vmul.f32 %v6643_v60, %v463_v61  ;;  %v987_v12 = vpack.c.bf16 %v900_v8, %v899_v7 }
 0x1b8   : > { %2129 = vst.msk [vmem:[#allocation2 + $0x189] sm:$0xff] %vm1941_vm0, %v1844_v13  ;;  %v1891_v11 = vmax.f32 %v1763_v3, 0.0  ;;  %v727_v14 = vadd.f32 %v6651_v1, %v595_v9  ;;  %v2306_v3 = vld [vmem:[#allocation2 + $0x1b1] ss:$2 sm:$0xff] }
 0x1b9   : > { %v1309_v20 = vpop.f32.mrf.mxu0 }
 0x1ba   : > { %v1585_v25 = vmul.f32 %v6822_v42, %v1309_v20  ;;  %2176 = vst.msk [vmem:[#allocation2 + $0x421] sm:$0xff] %vm1941_vm0, %v1891_v11 }
 0x1bb   : > { %v1426_v6 = vpop.f32.mrf.mxu2 }
 0x1bc   : > { %v1717_v29 = vadd.f32 %v6828_v49, %v1585_v25  ;;  %5151 = vmatmul.msk.bf16.gmra.mxu0 %vm1027_vm2, %v963_v18  ;;  %v1632_v16 = vmul.f32 %v6822_v42, %v1426_v6  ;;  %v855_v25 = vmax.f32 %v727_v14, 0.0 }
 0x1be   : > { %v1845_v34 = vmax.f32 %v1717_v29, 0.0  ;;  %v1764_v19 = vadd.f32 %v6828_v49, %v1632_v16  ;;  %v965_v44 = vpack.c.bf16 %v856_v26, %v855_v25 }
 0x1bf   : > { %v2751_v37 = vld [vmem:[#allocation2 + $0x182] ss:$2 sm:$0xff] }
 0x1c0   : > { %2130 = vst.msk [vmem:[#allocation2 + $0x1c9] sm:$0xff] %vm1941_vm0, %v1845_v34  ;;  %v3808_v38 = vpack.c.bf16 %v2751_v37, %v2749_v36  ;;  %5175 = vmatmul.msk.bf16.gmra.mxu2 %vm1027_vm2, %v987_v12  ;;  %v1892_v27 = vmax.f32 %v1764_v19, 0.0  ;;  %v2236_v36 = vld [vmem:[#allocation2 + $0xf0] ss:$2 sm:$0xff] }
 0x1c1   : > { %v1311_v43 = vpop.f32.mrf.mxu0  ;;  %v509_v37 = vld [vmem:[%s6222_s13 + $0x310] sm:$0xff] }
 0x1c2   : > { %v1586_v45 = vmul.f32 %v6822_v42, %v1311_v43  ;;  %5266 = vmatmul.msk.bf16.gmra.mxu3 %vm1941_vm0, %v3808_v38  ;;  %2177 = vst.msk [vmem:[#allocation2 + $0x429] sm:$0xff] %vm1941_vm0, %v1892_v27  ;;  %v510_v38 = vld [vmem:[%s6222_s13 + $0x318] sm:$0xff]  ;;  %v641_v41 = vmul.f32 %v6643_v60, %v509_v37 }
 0x1c3   : > { %v1429_v21 = vpop.f32.mrf.mxu2  ;;  %v642_v43 = vmul.f32 %v6643_v60, %v510_v38 }
 0x1c4   : > { %v1718_v4 = vadd.f32 %v6828_v49, %v1586_v45  ;;  %v773_v54 = vadd.f32 %v6651_v1, %v641_v41 }
 0x1c6   : > { %v1846_v53 = vmax.f32 %v1718_v4, 0.0  ;;  %v1633_v4 = vmul.f32 %v6822_v42, %v1429_v21  ;;  %v901_v61 = vmax.f32 %v773_v54, 0.0 }
 0x1c8   : > { %2131 = vst.msk [vmem:[#allocation2 + $0x1d1] sm:$0xff] %vm1941_vm0, %v1846_v53  ;;  %v466_v53 = vld [vmem:[%s6222_s13 + $0x1b8] sm:$0xff]  ;;  %v1765_v57 = vadd.f32 %v6828_v49, %v1633_v4 }
 0x1c9   : > { %v1314_v59 = vpop.f32.mrf.mxu0  ;;  %v598_v63 = vmul.f32 %v6643_v60, %v466_v53 }
 0x1ca   : > { %v1587_v2 = vmul.f32 %v6822_v42, %v1314_v59  ;;  %v774_v59 = vadd.f32 %v6651_v1, %v642_v43  ;;  %v1893_v0 = vmax.f32 %v1765_v57, 0.0 }
 0x1cb   : > { %v1431_v5 = vpop.f32.mrf.mxu2 }
 0x1cc   : > { %v1719_v46 = vadd.f32 %v6828_v49, %v1587_v2  ;;  %5152 = vmatmul.msk.bf16.gmra.mxu0 %vm1027_vm2, %v964_v58  ;;  %v5512_v20 = vpop.permute.xlu2 %5511  ;;  %v597_v58 = vmul.f32 %v6643_v60, %v465_v48  ;;  %v2370_v2 = vld [vmem:[#allocation2 + $0x1b2] ss:$2 sm:$0xff]  ;;  %v902_v6 = vmax.f32 %v774_v59, 0.0  ;;  %2178 = vst.msk [vmem:[#allocation2 + $0x439] sm:$0xff] %vm1941_vm0, %v1893_v0  ;;  %v1634_v60 = vmul.f32 %v6822_v42, %v1431_v5 }
 0x1cd   : > { %v5514_v33 = vunpack.i.h.bf16 %v5512_v20  ;;  %v5513_v34 = vunpack.i.l.bf16 %v5512_v20  ;;  %v513_v0 = vld [vmem:[%s6222_s13 + $0x330] sm:$0xff] }
 0x1ce   : > { %v1847_v13 = vmax.f32 %v1719_v46, 0.0  ;;  %v729_v9 = vadd.f32 %v6651_v1, %v597_v58  ;;  %v988_v10 = vpack.c.bf16 %v902_v6, %v901_v61  ;;  %v1766_v16 = vadd.f32 %v6828_v49, %v1634_v60 }
 0x1d0   : > { %2132 = vst.msk [vmem:[#allocation2 + $0x1e1] sm:$0xff] %vm1941_vm0, %v1847_v13  ;;  %v730_v13 = vadd.f32 %v6651_v1, %v598_v63  ;;  %5176 = vmatmul.msk.bf16.gmra.mxu2 %vm1027_vm2, %v988_v10  ;;  %v857_v19 = vmax.f32 %v729_v9, 0.0  ;;  %v1894_v20 = vmax.f32 %v1766_v16, 0.0  ;;  %v470_v10 = vld [vmem:[%s6222_s13 + $0x1d8] sm:$0xff] }
 0x1d1   : > { %v1316_v17 = vpop.f32.mrf.mxu0 }
 0x1d2   : > { %v1588_v18 = vmul.f32 %v6822_v42, %v1316_v17  ;;  %v858_v1 = vmax.f32 %v730_v13, 0.0  ;;  %2179 = vst.msk [vmem:[#allocation2 + $0x441] sm:$0xff] %vm1941_vm0, %v1894_v20 }
 0x1d3   : > { %v1434_v17 = vpop.f32.mrf.mxu2 }
 0x1d4   : > { %v1720_v22 = vadd.f32 %v6828_v49, %v1588_v18  ;;  %v5507_v23 = vpop.permute.xlu1 %5506  ;;  %v5502_v24 = vpop.permute.xlu0 %5501  ;;  %v966_v27 = vpack.c.bf16 %v858_v1, %v857_v19 }
 0x1d5   : > { %v5509_v28 = vunpack.i.h.bf16 %v5507_v23  ;;  %v5508_v29 = vunpack.i.l.bf16 %v5507_v23  ;;  %v5504_v31 = vunpack.i.h.bf16 %v5502_v24  ;;  %v5503_v32 = vunpack.i.l.bf16 %v5502_v24  ;;  %v512_v23 = vld [vmem:[%s6222_s13 + $0x328] sm:$0xff]  ;;  %v6978_v24 = vld [vmem:[%s8075_s1] ss:$0 sm:$0xff] }
 0x1d6   : > { %v1848_v35 = vmax.f32 %v1720_v22, 0.0  ;;  %v511_v22 = vld [vmem:[%s6222_s13 + $0x320] sm:$0xff]  ;;  %v644_v26 = vmul.f32 %v6978_v24, %v512_v23  ;;  %v602_v19 = vmul.f32 %v6978_v24, %v470_v10 }
 0x1d7   : > { %v3572_v39 = vsel %vm1941_vm0, %v2234_v30, %v5503_v32  ;;  %v3573_v40 = vsel %vm1941_vm0, %v2236_v36, %v5504_v31  ;;  %v643_v25 = vmul.f32 %v6978_v24, %v511_v22  ;;  %v5393_v30 = vld [vmem:[%s8080_s6 + $0x78] sm:$0xff]  ;;  %v468_v32 = vld [vmem:[%s6222_s13 + $0x1c8] sm:$0xff] }
 0x1d8   : > { %2133 = vst.msk [vmem:[#allocation2 + $0x1e9] sm:$0xff] %vm1941_vm0, %v1848_v35  ;;  %v3604_v45 = vsel %vm1027_vm2, %v3572_v39, %v5508_v29  ;;  %v3605_v47 = vsel %vm1027_vm2, %v3573_v40, %v5509_v28  ;;  %v467_v28 = vld [vmem:[%s6222_s13 + $0x1c0] sm:$0xff]  ;;  %v1635_v29 = vmul.f32 %v6822_v42, %v1434_v17  ;;  %4090 = vmatpush.bf16.msrb.mxu2 %v5393_v30 }
 0x1d9   : > { %v1319_v50 = vpop.f32.mrf.mxu0  ;;  %v3637_v51 = vsel %vm3632_vm4, %v3604_v45, %v5513_v34  ;;  %v3638_v52 = vsel %vm3632_vm4, %v3605_v47, %v5514_v33  ;;  %v6992_v33 = vld [vmem:[%s8076_s2] ss:$0 sm:$0xff]  ;;  %v599_v38 = vmul.f32 %v6978_v24, %v467_v28 }
 0x1da   : > { %v1589_v55 = vmul.f32 %v6822_v42, %v1319_v50  ;;  %v3803_v56 = vpack.c.bf16 %v3638_v52, %v3637_v51  ;;  %v775_v34 = vadd.f32 %v6992_v33, %v643_v25  ;;  %v776_v35 = vadd.f32 %v6992_v33, %v644_v26  ;;  %v2433_v51 = vld [vmem:[#allocation2 + $0x1c8] ss:$2 sm:$0xff] }
 0x1db   : > { %v1767_v37 = vadd.f32 %v6828_v49, %v1635_v29  ;;  %v1436_v39 = vpop.f32.mrf.mxu2  ;;  %v731_v54 = vadd.f32 %v6992_v33, %v599_v38  ;;  %v734_v29 = vadd.f32 %v6992_v33, %v602_v19 }
 0x1dc   : > { %v1721_v62 = vadd.f32 %v6828_v49, %v1589_v55  ;;  %5153 = vmatmul.msk.bf16.gmra.mxu0 %vm1027_vm2, %v965_v44  ;;  %4019 = vmatmul.bf16.gmra.mxu1 %v3803_v56  ;;  %v903_v40 = vmax.f32 %v775_v34, 0.0  ;;  %v904_v41 = vmax.f32 %v776_v35, 0.0  ;;  %v600_v44 = vmul.f32 %v6978_v24, %v468_v32 }
 0x1dd   : > { %v1895_v45 = vmax.f32 %v1767_v37, 0.0  ;;  %v1636_v47 = vmul.f32 %v6822_v42, %v1436_v39  ;;  %v859_v61 = vmax.f32 %v731_v54, 0.0  ;;  %v862_v37 = vmax.f32 %v734_v29, 0.0  ;;  %v515_v39 = vld [vmem:[%s6222_s13 + $0x340] sm:$0xff] }
 0x1de   : > { %v1849_v7 = vmax.f32 %v1721_v62, 0.0  ;;  %v989_v48 = vpack.c.bf16 %v904_v41, %v903_v40  ;;  %v732_v55 = vadd.f32 %v6992_v33, %v600_v44  ;;  %v516_v40 = vld [vmem:[%s6222_s13 + $0x348] sm:$0xff]  ;;  %v647_v41 = vmul.f32 %v6978_v24, %v515_v39  ;;  %v474_v39 = vld [vmem:[%s6222_s13 + $0x1f8] sm:$0xff] }
 0x1df   : > { %v2372_v8 = vld [vmem:[#allocation2 + $0x1e2] ss:$2 sm:$0xff]  ;;  %v2308_v46 = vld [vmem:[#allocation2 + $0x1e1] ss:$2 sm:$0xff]  ;;  %2180 = vst.msk [vmem:[#allocation2 + $0x451] sm:$0xff] %vm1941_vm0, %v1895_v45  ;;  %v1768_v50 = vadd.f32 %v6828_v49, %v1636_v47 }
 0x1e0   : > { %2134 = vst.msk [vmem:[#allocation2 + $0x1f9] sm:$0xff] %vm1941_vm0, %v1849_v7  ;;  %v5535_v11 = vpack.i.bf16 %v2372_v8, %v2370_v2  ;;  %v5530_v12 = vpack.i.bf16 %v2308_v46, %v2306_v3  ;;  %5177 = vmatmul.msk.bf16.gmra.mxu2 %vm1027_vm2, %v989_v48  ;;  %v860_v62 = vmax.f32 %v732_v55, 0.0  ;;  %v514_v2 = vld [vmem:[%s6222_s13 + $0x338] sm:$0xff]  ;;  %v645_v3 = vmul.f32 %v6978_v24, %v513_v0  ;;  %v469_v8 = vld [vmem:[%s6222_s13 + $0x1d0] sm:$0xff]  ;;  %v471_v45 = vld [vmem:[%s6222_s13 + $0x1e0] sm:$0xff] }
 0x1e1   : > { %v1321_v14 = vpop.f32.mrf.mxu0  ;;  %v1896_v56 = vmax.f32 %v1768_v50, 0.0  ;;  %v646_v6 = vmul.f32 %v6978_v24, %v514_v2  ;;  %v2753_v25 = vld [vmem:[#allocation2 + $0x1e2] ss:$2 sm:$0xff]  ;;  %v779_v50 = vadd.f32 %v6992_v33, %v647_v41  ;;  %v603_v54 = vmul.f32 %v6978_v24, %v471_v45 }
 0x1e2   : > { %v1590_v15 = vmul.f32 %v6822_v42, %v1321_v14  ;;  %5536 = vrot.lane.b32.xlu1 %v5535_v11, %s6068_s16  ;;  %5531 = vrot.lane.b32.xlu0 %v5530_v12, %s6067_s15  ;;  %v967_v7 = vpack.c.bf16 %v860_v62, %v859_v61  ;;  %v777_v11 = vadd.f32 %v6992_v33, %v645_v3 }
 0x1e3   : > { %2181 = vst.msk [vmem:[#allocation2 + $0x459] sm:$0xff] %vm1941_vm0, %v1896_v56  ;;  %v1439_v5 = vpop.f32.mrf.mxu2  ;;  %v778_v12 = vadd.f32 %v6992_v33, %v646_v6  ;;  %v601_v14 = vmul.f32 %v6978_v24, %v469_v8  ;;  %v907_v56 = vmax.f32 %v779_v50, 0.0  ;;  %v735_v2 = vadd.f32 %v6992_v33, %v603_v54 }
 0x1e4   : > { %v1722_v18 = vadd.f32 %v6828_v49, %v1590_v15  ;;  %v1637_v46 = vmul.f32 %v6822_v42, %v1439_v5  ;;  %v905_v16 = vmax.f32 %v777_v11, 0.0 }
 0x1e5   : > { %v906_v17 = vmax.f32 %v778_v12, 0.0  ;;  %v733_v28 = vadd.f32 %v6992_v33, %v601_v14 }
 0x1e6   : > { %v1850_v21 = vmax.f32 %v1722_v18, 0.0  ;;  %v1769_v60 = vadd.f32 %v6828_v49, %v1637_v46 }
 0x1e8   : > { %2135 = vst.msk [vmem:[#allocation2 + $0x201] sm:$0xff] %vm1941_vm0, %v1850_v21  ;;  %v1897_v1 = vmax.f32 %v1769_v60, 0.0  ;;  %v990_v21 = vpack.c.bf16 %v906_v17, %v905_v16  ;;  %v863_v60 = vmax.f32 %v735_v2, 0.0  ;;  %v2238_v17 = vld [vmem:[#allocation2 + $0x120] ss:$2 sm:$0xff] }
 0x1e9   : > { %v1324_v31 = vpop.f32.mrf.mxu0 }
 0x1ea   : > { %v1591_v36 = vmul.f32 %v6822_v42, %v1324_v31  ;;  %2182 = vst.msk [vmem:[#allocation2 + $0x469] sm:$0xff] %vm1941_vm0, %v1897_v1 }
 0x1eb   : > { %v1441_v15 = vpop.f32.mrf.mxu2 }
 0x1ec   : > { %v1723_v43 = vadd.f32 %v6828_v49, %v1591_v36  ;;  %5154 = vmatmul.msk.bf16.gmra.mxu0 %vm1027_vm2, %v966_v27  ;;  %v1638_v20 = vmul.f32 %v6822_v42, %v1441_v15  ;;  %v861_v36 = vmax.f32 %v733_v28, 0.0 }
 0x1ee   : > { %v1851_v4 = vmax.f32 %v1723_v43, 0.0  ;;  %v1770_v23 = vadd.f32 %v6828_v49, %v1638_v20  ;;  %v648_v43 = vmul.f32 %v6978_v24, %v516_v40  ;;  %v968_v44 = vpack.c.bf16 %v862_v37, %v861_v36 }
 0x1ef   : > { %v2435_v52 = vld [vmem:[#allocation2 + $0x1f8] ss:$2 sm:$0xff] }
 0x1f0   : > { %2136 = vst.msk [vmem:[#allocation2 + $0x211] sm:$0xff] %vm1941_vm0, %v1851_v4  ;;  %v5540_v53 = vpack.i.bf16 %v2435_v52, %v2433_v51  ;;  %v1898_v30 = vmax.f32 %v1770_v23, 0.0  ;;  %5178 = vmatmul.msk.bf16.gmra.mxu2 %vm1027_vm2, %v990_v21  ;;  %v472_v4 = vld [vmem:[%s6222_s13 + $0x1e8] sm:$0xff]  ;;  %v780_v51 = vadd.f32 %v6992_v33, %v648_v43  ;;  %v517_v23 = vld [vmem:[%s6222_s13 + $0x350] sm:$0xff] }
 0x1f1   : > { %v1326_v57 = vpop.f32.mrf.mxu0  ;;  %v604_v5 = vmul.f32 %v6978_v24, %v472_v4  ;;  %v649_v28 = vmul.f32 %v6978_v24, %v517_v23 }
 0x1f2   : > { %v1592_v58 = vmul.f32 %v6822_v42, %v1326_v57  ;;  %5541 = vrot.lane.b32.xlu2 %v5540_v53, %s6069_s12  ;;  %2183 = vst.msk [vmem:[#allocation2 + $0x471] sm:$0xff] %vm1941_vm0, %v1898_v30  ;;  %v908_v57 = vmax.f32 %v780_v51, 0.0  ;;  %v606_v51 = vmul.f32 %v6978_v24, %v474_v39 }
 0x1f3   : > { %v1444_v34 = vpop.f32.mrf.mxu2  ;;  %v736_v3 = vadd.f32 %v6992_v33, %v604_v5  ;;  %v781_v40 = vadd.f32 %v6992_v33, %v649_v28 }
 0x1f4   : > { %v1724_v59 = vadd.f32 %v6828_v49, %v1592_v58  ;;  %v1639_v47 = vmul.f32 %v6822_v42, %v1444_v34  ;;  %v991_v62 = vpack.c.bf16 %v908_v57, %v907_v56  ;;  %v473_v34 = vld [vmem:[%s6222_s13 + $0x1f0] sm:$0xff] }
 0x1f5   : > { %v864_v14 = vmax.f32 %v736_v3, 0.0  ;;  %v605_v45 = vmul.f32 %v6978_v24, %v473_v34  ;;  %v909_v4 = vmax.f32 %v781_v40, 0.0 }
 0x1f6   : > { %v1852_v63 = vmax.f32 %v1724_v59, 0.0  ;;  %v1771_v53 = vadd.f32 %v6828_v49, %v1639_v47 }
 0x1f7   : > { %v969_v30 = vpack.c.bf16 %v864_v14, %v863_v60  ;;  %v737_v5 = vadd.f32 %v6992_v33, %v605_v45 }
 0x1f8   : > { %2137 = vst.msk [vmem:[#allocation2 + $0x219] sm:$0xff] %vm1941_vm0, %v1852_v63  ;;  %v1899_v59 = vmax.f32 %v1771_v53, 0.0 }
 0x1f9   : > { %v1329_v9 = vpop.f32.mrf.mxu0 }
 0x1fa   : > { %v1593_v13 = vmul.f32 %v6822_v42, %v1329_v9  ;;  %2184 = vst.msk [vmem:[#allocation2 + $0x481] sm:$0xff] %vm1941_vm0, %v1899_v59 }
 0x1fb   : > { %v1446_v55 = vpop.f32.mrf.mxu2 }
 0x1fc   : > { %v1725_v18 = vadd.f32 %v6828_v49, %v1593_v13  ;;  %5155 = vmatmul.msk.bf16.gmra.mxu0 %vm1027_vm2, %v967_v7  ;;  %v1640_v61 = vmul.f32 %v6822_v42, %v1446_v55  ;;  %v5392_v7 = vld [vmem:[%s8080_s6 + $0x70] sm:$0xff] }
 0x1fd   : > { %4091 = vmatpush.bf16.msrb.mxu2 %v5392_v7 }
 0x1fe   : > { %v1853_v22 = vmax.f32 %v1725_v18, 0.0  ;;  %v1772_v0 = vadd.f32 %v6828_v49, %v1640_v61 }
 0x1ff   : > { %v2755_v26 = vld [vmem:[#allocation2 + $0x212] ss:$2 sm:$0xff]  ;;  %v2310_v57 = vld [vmem:[#allocation2 + $0x211] ss:$2 sm:$0xff] }
 0x200   : > { %2138 = vst.msk [vmem:[#allocation2 + $0x229] sm:$0xff] %vm1941_vm0, %v1853_v22  ;;  %v3811_v27 = vpack.c.bf16 %v2755_v26, %v2753_v25  ;;  %v1900_v6 = vmax.f32 %v1772_v0, 0.0  ;;  %5179 = vmatmul.msk.bf16.gmra.mxu2 %vm1027_vm2, %v991_v62  ;;  %v2240_v22 = vld [vmem:[#allocation2 + $0x150] ss:$2 sm:$0xff] }
 0x201   : > { %v1331_v31 = vpop.f32.mrf.mxu0  ;;  %v518_v25 = vld [vmem:[%s6222_s13 + $0x358] sm:$0xff] }
 0x202   : > { %v1594_v32 = vmul.f32 %v6822_v42, %v1331_v31  ;;  %5267 = vmatmul.msk.bf16.gmra.mxu3 %vm1941_vm0, %v3811_v27  ;;  %2185 = vst.msk [vmem:[#allocation2 + $0x489] sm:$0xff] %vm1941_vm0, %v1900_v6  ;;  %v650_v29 = vmul.f32 %v6978_v24, %v518_v25  ;;  %v2374_v55 = vld [vmem:[#allocation2 + $0x212] ss:$2 sm:$0xff] }
 0x203   : > { %v1449_v10 = vpop.f32.mrf.mxu2 }
 0x204   : > { %v1726_v35 = vadd.f32 %v6828_v49, %v1594_v32 }
 0x206   : > { %v1854_v38 = vmax.f32 %v1726_v35, 0.0  ;;  %v1641_v35 = vmul.f32 %v6822_v42, %v1449_v10 }
 0x208   : > { %2139 = vst.msk [vmem:[#allocation2 + $0x231] sm:$0xff] %vm1941_vm0, %v1854_v38 }
 0x209   : > { %v1334_v48 = vpop.f32.mrf.mxu0 }
 0x20a   : > { %v1595_v52 = vmul.f32 %v6822_v42, %v1334_v48  ;;  %v782_v48 = vadd.f32 %v6992_v33, %v650_v29 }
 0x20b   : > { %v1451_v47 = vpop.f32.mrf.mxu2 }
 0x20c   : > { %v1727_v58 = vadd.f32 %v6828_v49, %v1595_v52  ;;  %5156 = vmatmul.msk.bf16.gmra.mxu0 %vm1027_vm2, %v968_v44  ;;  %v5527_v9 = vpop.permute.xlu2 %5526  ;;  %v1773_v44 = vadd.f32 %v6828_v49, %v1641_v35  ;;  %v910_v53 = vmax.f32 %v782_v48, 0.0  ;;  %v1642_v0 = vmul.f32 %v6822_v42, %v1451_v47 }
 0x20d   : > { %v5529_v1 = vunpack.i.h.bf16 %v5527_v9  ;;  %v5528_v20 = vunpack.i.l.bf16 %v5527_v9 }
 0x20e   : > { %v1855_v63 = vmax.f32 %v1727_v58, 0.0  ;;  %v1901_v52 = vmax.f32 %v1773_v44, 0.0  ;;  %v992_v59 = vpack.c.bf16 %v910_v53, %v909_v4  ;;  %v1774_v6 = vadd.f32 %v6828_v49, %v1642_v0 }
 0x210   : > { %2140 = vst.msk [vmem:[#allocation2 + $0x241] sm:$0xff] %vm1941_vm0, %v1855_v63  ;;  %v738_v63 = vadd.f32 %v6992_v33, %v606_v51  ;;  %5180 = vmatmul.msk.bf16.gmra.mxu2 %vm1027_vm2, %v992_v59  ;;  %v1902_v10 = vmax.f32 %v1774_v6, 0.0  ;;  %v521_v51 = vld [vmem:[%s6222_s13 + $0x370] sm:$0xff]  ;;  %v478_v59 = vld [vmem:[%s6222_s13 + $0x218] sm:$0xff] }
 0x211   : > { %v1336_v8 = vpop.f32.mrf.mxu0  ;;  %2186 = vst.msk [vmem:[#allocation2 + $0x499] sm:$0xff] %vm1941_vm0, %v1901_v52  ;;  %v522_v52 = vld [vmem:[%s6222_s13 + $0x378] sm:$0xff]  ;;  %v653_v53 = vmul.f32 %v6978_v24, %v521_v51 }
 0x212   : > { %v1596_v46 = vmul.f32 %v6822_v42, %v1336_v8  ;;  %v866_v9 = vmax.f32 %v738_v63, 0.0  ;;  %2187 = vst.msk [vmem:[#allocation2 + $0x4a1] sm:$0xff] %vm1941_vm0, %v1902_v10  ;;  %v7146_v63 = vld [vmem:[%s8078_s4] ss:$0 sm:$0xff] }
 0x213   : > { %v1454_v7 = vpop.f32.mrf.mxu2 }
 0x214   : > { %v1728_v11 = vadd.f32 %v6828_v49, %v1596_v46  ;;  %v5522_v12 = vpop.permute.xlu1 %5521  ;;  %v5517_v13 = vpop.permute.xlu0 %5516  ;;  %v865_v46 = vmax.f32 %v737_v5, 0.0 }
 0x215   : > { %v5524_v15 = vunpack.i.h.bf16 %v5522_v12  ;;  %v5523_v16 = vunpack.i.l.bf16 %v5522_v12  ;;  %v5519_v18 = vunpack.i.h.bf16 %v5517_v13  ;;  %v5518_v19 = vunpack.i.l.bf16 %v5517_v13  ;;  %v519_v12 = vld [vmem:[%s6222_s13 + $0x360] sm:$0xff]  ;;  %v520_v13 = vld [vmem:[%s6222_s13 + $0x368] sm:$0xff] }
 0x216   : > { %v1856_v21 = vmax.f32 %v1728_v11, 0.0  ;;  %v651_v60 = vmul.f32 %v6978_v24, %v519_v12  ;;  %v652_v14 = vmul.f32 %v6978_v24, %v520_v13 }
 0x217   : > { %v3574_v26 = vsel %vm1941_vm0, %v2238_v17, %v5518_v19  ;;  %v3575_v27 = vsel %vm1941_vm0, %v2240_v22, %v5519_v18  ;;  %v1643_v17 = vmul.f32 %v6822_v42, %v1454_v7  ;;  %v476_v19 = vld [vmem:[%s6222_s13 + $0x208] sm:$0xff] }
 0x218   : > { %2141 = vst.msk [vmem:[#allocation2 + $0x249] sm:$0xff] %vm1941_vm0, %v1856_v21  ;;  %v3606_v31 = vsel %vm1027_vm2, %v3574_v26, %v5523_v16  ;;  %v3607_v32 = vsel %vm1027_vm2, %v3575_v27, %v5524_v15  ;;  %v970_v15 = vpack.c.bf16 %v866_v9, %v865_v46  ;;  %v475_v16 = vld [vmem:[%s6222_s13 + $0x200] sm:$0xff]  ;;  %v608_v29 = vmul.f32 %v6978_v24, %v476_v19 }
 0x219   : > { %v1339_v36 = vpop.f32.mrf.mxu0  ;;  %v3639_v37 = vsel %vm3632_vm4, %v3606_v31, %v5528_v20  ;;  %v3640_v38 = vsel %vm3632_vm4, %v3607_v32, %v5529_v1  ;;  %v783_v1 = vadd.f32 %v6992_v33, %v651_v60  ;;  %v784_v20 = vadd.f32 %v6992_v33, %v652_v14 }
 0x21a   : > { %v1597_v41 = vmul.f32 %v6822_v42, %v1339_v36  ;;  %v3806_v43 = vpack.c.bf16 %v3640_v38, %v3639_v37  ;;  %v1775_v22 = vadd.f32 %v6828_v49, %v1643_v17  ;;  %v607_v23 = vmul.f32 %v6978_v24, %v475_v16  ;;  %v2437_v36 = vld [vmem:[#allocation2 + $0x228] ss:$2 sm:$0xff] }
 0x21b   : > { %v1456_v25 = vpop.f32.mrf.mxu2  ;;  %v911_v26 = vmax.f32 %v783_v1, 0.0  ;;  %v912_v27 = vmax.f32 %v784_v20, 0.0  ;;  %v740_v40 = vadd.f32 %v6992_v33, %v608_v29  ;;  %v610_v9 = vmul.f32 %v6978_v24, %v478_v59 }
 0x21c   : > { %v1729_v50 = vadd.f32 %v6828_v49, %v1597_v41  ;;  %5157 = vmatmul.msk.bf16.gmra.mxu0 %vm1027_vm2, %v969_v30  ;;  %4024 = vmatmul.bf16.gmra.mxu1 %v3806_v43  ;;  %v1903_v30 = vmax.f32 %v1775_v22, 0.0  ;;  %v1644_v31 = vmul.f32 %v6822_v42, %v1456_v25  ;;  %v739_v39 = vadd.f32 %v6992_v33, %v607_v23 }
 0x21d   : > { %v993_v32 = vpack.c.bf16 %v912_v27, %v911_v26  ;;  %v868_v4 = vmax.f32 %v740_v40, 0.0  ;;  %v742_v17 = vadd.f32 %v6992_v33, %v610_v9  ;;  %v523_v26 = vld [vmem:[%s6222_s13 + $0x380] sm:$0xff]  ;;  %v524_v27 = vld [vmem:[%s6222_s13 + $0x388] sm:$0xff] }
 0x21e   : > { %v1857_v54 = vmax.f32 %v1729_v50, 0.0  ;;  %2188 = vst.msk [vmem:[#allocation2 + $0x4b1] sm:$0xff] %vm1941_vm0, %v1903_v30  ;;  %v1776_v35 = vadd.f32 %v6828_v49, %v1644_v31  ;;  %v867_v48 = vmax.f32 %v739_v39, 0.0  ;;  %v656_v29 = vmul.f32 %v6978_v24, %v524_v27  ;;  %v479_v31 = vld [vmem:[%s6222_s13 + $0x220] sm:$0xff] }
 0x21f   : > { %v2376_v56 = vld [vmem:[#allocation2 + $0x242] ss:$2 sm:$0xff]  ;;  %v2312_v58 = vld [vmem:[#allocation2 + $0x241] ss:$2 sm:$0xff]  ;;  %v870_v23 = vmax.f32 %v742_v17, 0.0  ;;  %v611_v40 = vmul.f32 %v6978_v24, %v479_v31 }
 0x220   : > { %2142 = vst.msk [vmem:[#allocation2 + $0x259] sm:$0xff] %vm1941_vm0, %v1857_v54  ;;  %v5550_v61 = vpack.i.bf16 %v2376_v56, %v2374_v55  ;;  %v5545_v62 = vpack.i.bf16 %v2312_v58, %v2310_v57  ;;  %v1904_v41 = vmax.f32 %v1776_v35, 0.0  ;;  %5181 = vmatmul.msk.bf16.gmra.mxu2 %vm1027_vm2, %v993_v32  ;;  %v654_v54 = vmul.f32 %v6978_v24, %v522_v52  ;;  %v477_v56 = vld [vmem:[%s6222_s13 + $0x210] sm:$0xff]  ;;  %v5391_v58 = vld [vmem:[%s8080_s6 + $0x68] sm:$0xff] }
 0x221   : > { %v1341_v2 = vpop.f32.mrf.mxu0  ;;  %v971_v55 = vpack.c.bf16 %v868_v4, %v867_v48  ;;  %4092 = vmatpush.bf16.msrb.mxu2 %v5391_v58  ;;  %v2757_v60 = vld [vmem:[#allocation2 + $0x242] ss:$2 sm:$0xff] }
 0x222   : > { %v1598_v3 = vmul.f32 %v6822_v42, %v1341_v2  ;;  %5551 = vrot.lane.b32.xlu1 %v5550_v61, %s6068_s16  ;;  %5546 = vrot.lane.b32.xlu0 %v5545_v62, %s6067_s15  ;;  %2189 = vst.msk [vmem:[#allocation2 + $0x4b9] sm:$0xff] %vm1941_vm0, %v1904_v41  ;;  %v785_v61 = vadd.f32 %v6992_v33, %v653_v53  ;;  %v480_v35 = vld [vmem:[%s6222_s13 + $0x228] sm:$0xff]  ;;  %v481_v17 = vld [vmem:[%s6222_s13 + $0x230] sm:$0xff] }
 0x223   : > { %v1459_v45 = vpop.f32.mrf.mxu2  ;;  %v786_v62 = vadd.f32 %v6992_v33, %v654_v54  ;;  %v743_v53 = vadd.f32 %v6992_v33, %v611_v40 }
 0x224   : > { %v1730_v8 = vadd.f32 %v6828_v49, %v1598_v3  ;;  %v1645_v57 = vmul.f32 %v6822_v42, %v1459_v45  ;;  %v913_v6 = vmax.f32 %v785_v61, 0.0 }
 0x225   : > { %v914_v7 = vmax.f32 %v786_v62, 0.0  ;;  %v2242_v62 = vld [vmem:[#allocation2 + $0x1b0] ss:$2 sm:$0xff] }
 0x226   : > { %v1858_v11 = vmax.f32 %v1730_v8, 0.0  ;;  %v1777_v2 = vadd.f32 %v6828_v49, %v1645_v57  ;;  %v7154_v8 = vld [vmem:[%s8079_s5] ss:$0 sm:$0xff] }
 0x228   : > { %2143 = vst.msk [vmem:[#allocation2 + $0x261] sm:$0xff] %vm1941_vm0, %v1858_v11  ;;  %v1905_v10 = vmax.f32 %v1777_v2, 0.0  ;;  %v994_v11 = vpack.c.bf16 %v914_v7, %v913_v6  ;;  %v871_v2 = vmax.f32 %v743_v53, 0.0 }
 0x229   : > { %v1344_v18 = vpop.f32.mrf.mxu0 }
 0x22a   : > { %v1599_v21 = vmul.f32 %v6822_v42, %v1344_v18  ;;  %2190 = vst.msk [vmem:[#allocation2 + $0x4c9] sm:$0xff] %vm1941_vm0, %v1905_v10  ;;  %v2244_v10 = vld [vmem:[#allocation2 + $0x1e0] ss:$2 sm:$0xff] }
 0x22b   : > { %v1461_v3 = vpop.f32.mrf.mxu2 }
 0x22c   : > { %v1731_v28 = vadd.f32 %v6828_v49, %v1599_v21  ;;  %5158 = vmatmul.msk.bf16.gmra.mxu0 %vm1027_vm2, %v970_v15 }
 0x22e   : > { %v1859_v34 = vmax.f32 %v1731_v28, 0.0  ;;  %v655_v28 = vmul.f32 %v6978_v24, %v523_v26 }
 0x22f   : > { %v2439_v37 = vld [vmem:[#allocation2 + $0x258] ss:$2 sm:$0xff] }
 0x230   : > { %2144 = vst.msk [vmem:[#allocation2 + $0x271] sm:$0xff] %vm1941_vm0, %v1859_v34  ;;  %v5555_v38 = vpack.i.bf16 %v2439_v37, %v2437_v36  ;;  %5182 = vmatmul.msk.bf16.gmra.mxu2 %vm1027_vm2, %v994_v11  ;;  %v787_v36 = vadd.f32 %v6992_v33, %v655_v28  ;;  %v788_v37 = vadd.f32 %v6992_v33, %v656_v29 }
 0x231   : > { %v1346_v43 = vpop.f32.mrf.mxu0  ;;  %v613_v28 = vmul.f32 %v6978_v24, %v481_v17 }
 0x232   : > { %v1600_v44 = vmul.f32 %v6822_v42, %v1346_v43  ;;  %5556 = vrot.lane.b32.xlu2 %v5555_v38, %s6069_s12  ;;  %v609_v42 = vmul.f32 %v6978_v24, %v477_v56  ;;  %v915_v43 = vmax.f32 %v787_v36, 0.0 }
 0x233   : > { %v1464_v20 = vpop.f32.mrf.mxu2 }
 0x234   : > { %v1732_v47 = vadd.f32 %v6828_v49, %v1600_v44  ;;  %v1646_v49 = vmul.f32 %v7146_v63, %v1461_v3  ;;  %v741_v16 = vadd.f32 %v6992_v33, %v609_v42  ;;  %v1647_v32 = vmul.f32 %v7146_v63, %v1464_v20 }
 0x235   : > { %v916_v44 = vmax.f32 %v788_v37, 0.0 }
 0x236   : > { %v1860_v50 = vmax.f32 %v1732_v47, 0.0  ;;  %v1778_v13 = vadd.f32 %v7154_v8, %v1646_v49  ;;  %v869_v22 = vmax.f32 %v741_v16, 0.0  ;;  %v1779_v39 = vadd.f32 %v7154_v8, %v1647_v32 }
 0x237   : > { %v612_v47 = vmul.f32 %v6978_v24, %v480_v35 }
 0x238   : > { %2145 = vst.msk [vmem:[#allocation2 + $0x279] sm:$0xff] %vm1941_vm0, %v1860_v50  ;;  %v1906_v18 = vmax.f32 %v1778_v13, 0.0  ;;  %v972_v30 = vpack.c.bf16 %v870_v23, %v869_v22  ;;  %v1907_v48 = vmax.f32 %v1779_v39, 0.0  ;;  %v995_v50 = vpack.c.bf16 %v916_v44, %v915_v43  ;;  %v482_v22 = vld [vmem:[%s6222_s13 + $0x238] sm:$0xff] }
 0x239   : > { %v1349_v5 = vpop.f32.mrf.mxu0  ;;  %v744_v54 = vadd.f32 %v6992_v33, %v612_v47  ;;  %v745_v44 = vadd.f32 %v6992_v33, %v613_v28 }
 0x23a   : > { %v1601_v0 = vmul.f32 %v7146_v63, %v1349_v5  ;;  %2191 = vst.msk [vmem:[#allocation2 + $0x4d1] sm:$0xff] %vm1941_vm0, %v1906_v18 }
 0x23b   : > { %v1466_v41 = vpop.f32.mrf.mxu2  ;;  %2192 = vst.msk [vmem:[#allocation2 + $0x4e1] sm:$0xff] %vm1941_vm0, %v1907_v48  ;;  %v872_v42 = vmax.f32 %v744_v54, 0.0 }
 0x23c   : > { %v1733_v46 = vadd.f32 %v7154_v8, %v1601_v0  ;;  %5159 = vmatmul.msk.bf16.gmra.mxu0 %vm1027_vm2, %v971_v55  ;;  %v1648_v4 = vmul.f32 %v7146_v63, %v1466_v41 }
 0x23e   : > { %v1861_v12 = vmax.f32 %v1733_v46, 0.0  ;;  %v1780_v52 = vadd.f32 %v7154_v8, %v1648_v4 }
 0x23f   : > { %v2759_v14 = vld [vmem:[#allocation2 + $0x272] ss:$2 sm:$0xff]  ;;  %v2314_v40 = vld [vmem:[#allocation2 + $0x271] ss:$2 sm:$0xff] }
 0x240   : > { %2146 = vst.msk [vmem:[#allocation2 + $0x289] sm:$0xff] %vm1941_vm0, %v1861_v12  ;;  %v3814_v15 = vpack.c.bf16 %v2759_v14, %v2757_v60  ;;  %v1908_v55 = vmax.f32 %v1780_v52, 0.0  ;;  %5183 = vmatmul.msk.bf16.gmra.mxu2 %vm1027_vm2, %v995_v50  ;;  %v525_v60 = vld [vmem:[%s6222_s13 + $0x390] sm:$0xff]  ;;  %v973_v14 = vpack.c.bf16 %v872_v42, %v871_v2  ;;  %v2545_v2 = vld [vmem:[#allocation2 + $0x1a] ss:$2 sm:$0xff] }
 0x241   : > { %v1351_v19 = vpop.f32.mrf.mxu0  ;;  %v657_v23 = vmul.f32 %v6978_v24, %v525_v60  ;;  %v2378_v39 = vld [vmem:[#allocation2 + $0x272] ss:$2 sm:$0xff]  ;;  %v484_v60 = vld [vmem:[%s6222_s13 + $0x248] sm:$0xff] }
 0x242   : > { %v1602_v1 = vmul.f32 %v7146_v63, %v1351_v19  ;;  %5268 = vmatmul.msk.bf16.gmra.mxu3 %vm1941_vm0, %v3814_v15  ;;  %2193 = vst.msk [vmem:[#allocation2 + $0x4e9] sm:$0xff] %vm1941_vm0, %v1908_v55  ;;  %v526_v19 = vld [vmem:[%s6222_s13 + $0x398] sm:$0xff] }
 0x243   : > { %v1469_v5 = vpop.f32.mrf.mxu2  ;;  %v789_v31 = vadd.f32 %v6992_v33, %v657_v23  ;;  %v2547_v55 = vld [vmem:[#allocation2 + $0x4a] ss:$2 sm:$0xff] }
 0x244   : > { %v1734_v21 = vadd.f32 %v7154_v8, %v1602_v1  ;;  %v1649_v18 = vmul.f32 %v7146_v63, %v1469_v5 }
 0x245   : > { %v917_v37 = vmax.f32 %v789_v31, 0.0 }
 0x246   : > { %v1862_v25 = vmax.f32 %v1734_v21, 0.0  ;;  %v1781_v27 = vadd.f32 %v7154_v8, %v1649_v18 }
 0x248   : > { %2147 = vst.msk [vmem:[#allocation2 + $0x291] sm:$0xff] %vm1941_vm0, %v1862_v25  ;;  %v1909_v35 = vmax.f32 %v1781_v27, 0.0 }
 0x249   : > { %v1354_v34 = vpop.f32.mrf.mxu0 }
 0x24a   : > { %v1603_v38 = vmul.f32 %v7146_v63, %v1354_v34  ;;  %v614_v34 = vmul.f32 %v6978_v24, %v482_v22  ;;  %2194 = vst.msk [vmem:[#allocation2 + $0x529] sm:$0xff] %vm1941_vm0, %v1909_v35 }
 0x24b   : > { %v1471_v29 = vpop.f32.mrf.mxu2 }
 0x24c   : > { %v1735_v45 = vadd.f32 %v7154_v8, %v1603_v38  ;;  %5160 = vmatmul.msk.bf16.gmra.mxu0 %vm1027_vm2, %v972_v30  ;;  %v5542_v58 = vpop.permute.xlu2 %5541  ;;  %v658_v30 = vmul.f32 %v6978_v24, %v526_v19  ;;  %v746_v4 = vadd.f32 %v6992_v33, %v614_v34  ;;  %v1650_v50 = vmul.f32 %v7146_v63, %v1471_v29 }
 0x24d   : > { %v5544_v49 = vunpack.i.h.bf16 %v5542_v58  ;;  %v5543_v11 = vunpack.i.l.bf16 %v5542_v58  ;;  %v873_v58 = vmax.f32 %v745_v44, 0.0 }
 0x24e   : > { %v1863_v51 = vmax.f32 %v1735_v45, 0.0  ;;  %v790_v36 = vadd.f32 %v6992_v33, %v658_v30  ;;  %v1782_v54 = vadd.f32 %v7154_v8, %v1650_v50  ;;  %v874_v5 = vmax.f32 %v746_v4, 0.0  ;;  %v530_v4 = vld [vmem:[%s6222_s13 + $0x3b8] sm:$0xff] }
 0x250   : > { %2148 = vst.msk [vmem:[#allocation2 + $0x2a1] sm:$0xff] %vm1941_vm0, %v1863_v51  ;;  %v918_v45 = vmax.f32 %v790_v36, 0.0 }
 0x251   : > { %v1356_v56 = vpop.f32.mrf.mxu0 }
 0x252   : > { %v1604_v57 = vmul.f32 %v7146_v63, %v1356_v56  ;;  %v996_v52 = vpack.c.bf16 %v918_v45, %v917_v37  ;;  %v2673_v45 = vld [vmem:[#allocation2 + $0x31] ss:$2 sm:$0xff] }
 0x254   : > { %v1736_v59 = vadd.f32 %v7154_v8, %v1604_v57  ;;  %v5537_v61 = vpop.permute.xlu1 %5536  ;;  %v5532_v0 = vpop.permute.xlu0 %5531  ;;  %5184 = vmatmul.msk.bf16.gmra.mxu2 %vm1027_vm2, %v996_v52  ;;  %v2611_v57 = vld [vmem:[#allocation2 + $0x60] ss:$2 sm:$0xff] }
 0x255   : > { %v5539_v3 = vunpack.i.h.bf16 %v5537_v61  ;;  %v5538_v6 = vunpack.i.l.bf16 %v5537_v61  ;;  %v5534_v7 = vunpack.i.h.bf16 %v5532_v0  ;;  %v5533_v46 = vunpack.i.l.bf16 %v5532_v0  ;;  %v1474_v61 = vpop.f32.mrf.mxu2  ;;  %v2609_v0 = vld [vmem:[#allocation2 + $0x30] ss:$2 sm:$0xff] }
 0x256   : > { %v1864_v9 = vmax.f32 %v1736_v59, 0.0  ;;  %v1910_v59 = vmax.f32 %v1782_v54, 0.0  ;;  %v5575_v42 = vpack.i.bf16 %v2611_v57, %v2609_v0 }
 0x257   : > { %v3576_v12 = vsel %vm1941_vm0, %v2242_v62, %v5533_v46  ;;  %v3577_v13 = vsel %vm1941_vm0, %v2244_v10, %v5534_v7  ;;  %v528_v7 = vld [vmem:[%s6222_s13 + $0x3a8] sm:$0xff]  ;;  %v974_v46 = vpack.c.bf16 %v874_v5, %v873_v58  ;;  %v1651_v10 = vmul.f32 %v7146_v63, %v1474_v61 }
 0x258   : > { %2149 = vst.msk [vmem:[#allocation2 + $0x2a9] sm:$0xff] %vm1941_vm0, %v1864_v9  ;;  %v3608_v15 = vsel %vm1027_vm2, %v3576_v12, %v5538_v6  ;;  %v3609_v16 = vsel %vm1027_vm2, %v3577_v13, %v5539_v3  ;;  %v5565_v3 = vpack.i.bf16 %v2547_v55, %v2545_v2  ;;  %v527_v6 = vld [vmem:[%s6222_s13 + $0x3a0] sm:$0xff]  ;;  %v660_v12 = vmul.f32 %v6978_v24, %v528_v7 }
 0x259   : > { %v1359_v1 = vpop.f32.mrf.mxu0  ;;  %v3641_v20 = vsel %vm3632_vm4, %v3608_v15, %v5543_v11  ;;  %v3642_v21 = vsel %vm3632_vm4, %v3609_v16, %v5544_v49  ;;  %2195 = vst.msk [vmem:[#allocation2 + $0x531] sm:$0xff] %vm1941_vm0, %v1910_v59  ;;  %v483_v9 = vld [vmem:[%s6222_s13 + $0x240] sm:$0xff]  ;;  %v659_v11 = vmul.f32 %v6978_v24, %v527_v6  ;;  %v1783_v15 = vadd.f32 %v7154_v8, %v1651_v10 }
 0x25a   : > { %v1605_v25 = vmul.f32 %v7146_v63, %v1359_v1  ;;  %v3809_v26 = vpack.c.bf16 %v3642_v21, %v3641_v20  ;;  %v5390_v49 = vld [vmem:[%s8080_s6 + $0x60] sm:$0xff]  ;;  %v615_v17 = vmul.f32 %v6978_v24, %v483_v9  ;;  %v792_v18 = vadd.f32 %v6992_v33, %v660_v12 }
 0x25b   : > { %v791_v16 = vadd.f32 %v6992_v33, %v659_v11  ;;  %4093 = vmatpush.bf16.msrb.mxu2 %v5390_v49  ;;  %v616_v1 = vmul.f32 %v6978_v24, %v484_v60  ;;  %v1911_v20 = vmax.f32 %v1783_v15, 0.0 }
 0x25c   : > { %v1737_v32 = vadd.f32 %v7154_v8, %v1605_v25  ;;  %5161 = vmatmul.msk.bf16.gmra.mxu0 %vm1027_vm2, %v973_v14  ;;  %4029 = vmatmul.bf16.gmra.mxu1 %v3809_v26  ;;  %v920_v23 = vmax.f32 %v792_v18, 0.0  ;;  %v2441_v26 = vld [vmem:[#allocation2 + $0x288] ss:$2 sm:$0xff]  ;;  %v747_v30 = vadd.f32 %v6992_v33, %v615_v17 }
 0x25d   : > { %v1476_v21 = vpop.f32.mrf.mxu2  ;;  %v919_v22 = vmax.f32 %v791_v16, 0.0  ;;  %2196 = vst.msk [vmem:[#allocation2 + $0x541] sm:$0xff] %vm1941_vm0, %v1911_v20  ;;  %v748_v31 = vadd.f32 %v6992_v33, %v616_v1 }
 0x25e   : > { %v1865_v38 = vmax.f32 %v1737_v32, 0.0  ;;  %v1652_v32 = vmul.f32 %v7146_v63, %v1476_v21  ;;  %v5389_v21 = vld [vmem:[%s8080_s6 + $0x58] sm:$0xff] }
 0x25f   : > { %v2380_v41 = vld [vmem:[#allocation2 + $0x2a2] ss:$2 sm:$0xff]  ;;  %v2316_v43 = vld [vmem:[#allocation2 + $0x2a1] ss:$2 sm:$0xff]  ;;  %v997_v28 = vpack.c.bf16 %v920_v23, %v919_v22  ;;  %4094 = vmatpush.bf16.msrb.mxu2 %v5389_v21 }
 0x260   : > { %2150 = vst.msk [vmem:[#allocation2 + $0x2b9] sm:$0xff] %vm1941_vm0, %v1865_v38  ;;  %v5570_v47 = vpack.i.bf16 %v2380_v41, %v2378_v39  ;;  %v5560_v48 = vpack.i.bf16 %v2316_v43, %v2314_v40  ;;  %v1784_v36 = vadd.f32 %v7154_v8, %v1652_v32  ;;  %v2675_v38 = vld [vmem:[#allocation2 + $0x61] ss:$2 sm:$0xff]  ;;  %v875_v39 = vmax.f32 %v747_v30, 0.0 }
 0x261   : > { %v1361_v51 = vpop.f32.mrf.mxu0  ;;  %v876_v40 = vmax.f32 %v748_v31, 0.0 }
 0x262   : > { %v1606_v53 = vmul.f32 %v7146_v63, %v1361_v51  ;;  %5571 = vrot.lane.b32.xlu1 %v5570_v47, %s6068_s16  ;;  %5561 = vrot.lane.b32.xlu0 %v5560_v48, %s6067_s15  ;;  %v1912_v41 = vmax.f32 %v1784_v36, 0.0  ;;  %v5585_v47 = vpack.i.bf16 %v2675_v38, %v2673_v45  ;;  %v529_v48 = vld [vmem:[%s6222_s13 + $0x3b0] sm:$0xff]  ;;  %v2248_v38 = vld [vmem:[#allocation2 + $0x240] ss:$2 sm:$0xff] }
 0x263   : > { %v975_v50 = vpack.c.bf16 %v876_v40, %v875_v39  ;;  %v661_v52 = vmul.f32 %v6978_v24, %v529_v48 }
 0x264   : > { %v1738_v56 = vadd.f32 %v7154_v8, %v1606_v53  ;;  %5185 = vmatmul.msk.bf16.gmra.mxu2 %vm1027_vm2, %v997_v28  ;;  %2197 = vst.msk [vmem:[#allocation2 + $0x549] sm:$0xff] %vm1941_vm0, %v1912_v41  ;;  %v662_v53 = vmul.f32 %v6978_v24, %v530_v4 }
 0x265   : > { %v1479_v43 = vpop.f32.mrf.mxu2  ;;  %v793_v57 = vadd.f32 %v6992_v33, %v661_v52 }
 0x266   : > { %v1866_v62 = vmax.f32 %v1738_v56, 0.0  ;;  %v1653_v51 = vmul.f32 %v7146_v63, %v1479_v43  ;;  %v794_v58 = vadd.f32 %v6992_v33, %v662_v53 }
 0x268   : > { %2151 = vst.msk [vmem:[#allocation2 + $0x2c1] sm:$0xff] %vm1941_vm0, %v1866_v62  ;;  %v1785_v56 = vadd.f32 %v7154_v8, %v1653_v51  ;;  %v921_v62 = vmax.f32 %v793_v57, 0.0  ;;  %v922_v0 = vmax.f32 %v794_v58, 0.0 }
 0x269   : > { %v1364_v13 = vpop.f32.mrf.mxu0 }
 0x26a   : > { %v1607_v14 = vmul.f32 %v7146_v63, %v1364_v13  ;;  %5576 = vrot.lane.b32.xlu1 %v5575_v42, %s6068_s16  ;;  %5566 = vrot.lane.b32.xlu0 %v5565_v3, %s6067_s15  ;;  %v1913_v59 = vmax.f32 %v1785_v56, 0.0  ;;  %v2761_v42 = vld [vmem:[#allocation2 + $0x2a2] ss:$2 sm:$0xff]  ;;  %v998_v7 = vpack.c.bf16 %v922_v0, %v921_v62 }
 0x26c   : > { %v1739_v19 = vadd.f32 %v7154_v8, %v1607_v14  ;;  %5162 = vmatmul.msk.bf16.gmra.mxu0 %vm1027_vm2, %v974_v46  ;;  %2198 = vst.msk [vmem:[#allocation2 + $0x559] sm:$0xff] %vm1941_vm0, %v1913_v59 }
 0x26d   : > { %v1481_v61 = vpop.f32.mrf.mxu2 }
 0x26e   : > { %v1867_v25 = vmax.f32 %v1739_v19, 0.0  ;;  %v1654_v24 = vmul.f32 %v7146_v63, %v1481_v61 }
 0x26f   : > { %v2443_v27 = vld [vmem:[#allocation2 + $0x2b8] ss:$2 sm:$0xff] }
 0x270   : > { %2152 = vst.msk [vmem:[#allocation2 + $0x2d1] sm:$0xff] %vm1941_vm0, %v1867_v25  ;;  %v5580_v29 = vpack.i.bf16 %v2443_v27, %v2441_v26  ;;  %v1786_v6 = vadd.f32 %v7154_v8, %v1654_v24 }
 0x271   : > { %v1366_v34 = vpop.f32.mrf.mxu0 }
 0x272   : > { %v1608_v35 = vmul.f32 %v7146_v63, %v1366_v34  ;;  %5581 = vrot.lane.b32.xlu2 %v5580_v29, %s6069_s12  ;;  %v1914_v9 = vmax.f32 %v1786_v6, 0.0 }
 0x274   : > { %v1740_v37 = vadd.f32 %v7154_v8, %v1608_v35  ;;  %2199 = vst.msk [vmem:[#allocation2 + $0x561] sm:$0xff] %vm1941_vm0, %v1914_v9  ;;  %5186 = vmatmul.msk.bf16.gmra.mxu2 %vm1027_vm2, %v998_v7 }
 0x275   : > { %v1484_v11 = vpop.f32.mrf.mxu2 }
 0x276   : > { %v1868_v44 = vmax.f32 %v1740_v37, 0.0  ;;  %v1655_v13 = vmul.f32 %v7146_v63, %v1484_v11  ;;  %v2246_v37 = vld [vmem:[#allocation2 + $0x210] ss:$2 sm:$0xff] }
 0x277   : > { %v2549_v11 = vld [vmem:[#allocation2 + $0x7a] ss:$2 sm:$0xff] }
 0x278   : > { %2153 = vst.msk [vmem:[#allocation2 + $0x2d9] sm:$0xff] %vm1941_vm0, %v1868_v44  ;;  %v1787_v15 = vadd.f32 %v7154_v8, %v1655_v13 }
 0x279   : > { %v1369_v54 = vpop.f32.mrf.mxu0 }
 0x27a   : > { %v1609_v55 = vmul.f32 %v7146_v63, %v1369_v54  ;;  %5586 = vrot.lane.b32.xlu2 %v5585_v47, %s6069_s12  ;;  %v1915_v17 = vmax.f32 %v1787_v15, 0.0 }
 0x27c   : > { %v1741_v5 = vadd.f32 %v7154_v8, %v1609_v55  ;;  %5163 = vmatmul.msk.bf16.gmra.mxu0 %vm1027_vm2, %v975_v50  ;;  %2200 = vst.msk [vmem:[#allocation2 + $0x571] sm:$0xff] %vm1941_vm0, %v1915_v17 }
 0x27d   : > { %v1486_v18 = vpop.f32.mrf.mxu2 }
 0x27e   : > { %v1869_v2 = vmax.f32 %v1741_v5, 0.0  ;;  %v1656_v19 = vmul.f32 %v7146_v63, %v1486_v18 }
 0x27f   : > { %v2763_v3 = vld [vmem:[#allocation2 + $0x2d2] ss:$2 sm:$0xff]  ;;  %v2318_v59 = vld [vmem:[#allocation2 + $0x2d1] ss:$2 sm:$0xff] }
 0x280   : > { %2154 = vst.msk [vmem:[#allocation2 + $0x2e9] sm:$0xff] %vm1941_vm0, %v1869_v2  ;;  %v3817_v33 = vpack.c.bf16 %v2763_v3, %v2761_v42  ;;  %v1788_v20 = vadd.f32 %v7154_v8, %v1656_v19  ;;  %v2382_v58 = vld [vmem:[#allocation2 + $0x2d2] ss:$2 sm:$0xff] }
 0x281   : > { %v1371_v46 = vpop.f32.mrf.mxu0 }
 0x282   : > { %v1610_v10 = vmul.f32 %v7146_v63, %v1371_v46  ;;  %5269 = vmatmul.msk.bf16.gmra.mxu3 %vm1941_vm0, %v3817_v33  ;;  %v1916_v23 = vmax.f32 %v1788_v20, 0.0  ;;  %v2615_v33 = vld [vmem:[#allocation2 + $0xc0] ss:$2 sm:$0xff] }
 0x283   : > { %v2551_v46 = vld [vmem:[#allocation2 + $0xaa] ss:$2 sm:$0xff] }
 0x284   : > { %v1742_v49 = vadd.f32 %v7154_v8, %v1610_v10  ;;  %2201 = vst.msk [vmem:[#allocation2 + $0x579] sm:$0xff] %vm1941_vm0, %v1916_v23  ;;  %v5595_v13 = vpack.i.bf16 %v2551_v46, %v2549_v11  ;;  %v5397_v46 = vld [vmem:[%s8083_s9 + $0x8] sm:$0xff] }
 0x285   : > { %v1489_v35 = vpop.f32.mrf.mxu2  ;;  %4706 = vmatpush.bf16.msra.mxu1 %v5397_v46  ;;  %v2619_v46 = vld [vmem:[#allocation2 + $0x120] ss:$2 sm:$0xff] }
 0x286   : > { %v1870_v12 = vmax.f32 %v1742_v49, 0.0  ;;  %v1657_v47 = vmul.f32 %v7146_v63, %v1489_v35  ;;  %v2613_v49 = vld [vmem:[#allocation2 + $0x90] ss:$2 sm:$0xff] }
 0x288   : > { %2155 = vst.msk [vmem:[#allocation2 + $0x2f1] sm:$0xff] %vm1941_vm0, %v1870_v12  ;;  %v1789_v53 = vadd.f32 %v7154_v8, %v1657_v47  ;;  %v5605_v12 = vpack.i.bf16 %v2615_v33, %v2613_v49 }
 0x289   : > { %v1374_v60 = vpop.f32.mrf.mxu0 }
 0x28a   : > { %v1611_v14 = vmul.f32 %v7146_v63, %v1374_v60  ;;  %v1917_v55 = vmax.f32 %v1789_v53, 0.0 }
 0x28c   : > { %v1743_v16 = vadd.f32 %v7154_v8, %v1611_v14  ;;  %v5557_v26 = vpop.permute.xlu2 %5556  ;;  %2202 = vst.msk [vmem:[#allocation2 + $0x589] sm:$0xff] %vm1941_vm0, %v1917_v55 }
 0x28d   : > { %v5559_v39 = vunpack.i.h.bf16 %v5557_v26  ;;  %v5558_v40 = vunpack.i.l.bf16 %v5557_v26  ;;  %v1491_v56 = vpop.f32.mrf.mxu2 }
 0x28e   : > { %v1871_v1 = vmax.f32 %v1743_v16, 0.0  ;;  %v1658_v24 = vmul.f32 %v7146_v63, %v1491_v56 }
 0x28f   : > { %v2445_v21 = vld [vmem:[#allocation2 + $0x2e8] ss:$2 sm:$0xff] }
 0x290   : > { %2156 = vst.msk [vmem:[#allocation2 + $0x301] sm:$0xff] %vm1941_vm0, %v1871_v1  ;;  %v1790_v3 = vadd.f32 %v7154_v8, %v1658_v24 }
 0x291   : > { %v1376_v22 = vpop.f32.mrf.mxu0 }
 0x292   : > { %v1612_v25 = vmul.f32 %v7146_v63, %v1376_v22  ;;  %v1918_v7 = vmax.f32 %v1790_v3, 0.0 }
 0x294   : > { %v1744_v27 = vadd.f32 %v7154_v8, %v1612_v25  ;;  %v5552_v28 = vpop.permute.xlu1 %5551  ;;  %v5547_v29 = vpop.permute.xlu0 %5546  ;;  %2203 = vst.msk [vmem:[#allocation2 + $0x591] sm:$0xff] %vm1941_vm0, %v1918_v7 }
 0x295   : > { %v5554_v30 = vunpack.i.h.bf16 %v5552_v28  ;;  %v5553_v31 = vunpack.i.l.bf16 %v5552_v28  ;;  %v5549_v32 = vunpack.i.h.bf16 %v5547_v29  ;;  %v5548_v34 = vunpack.i.l.bf16 %v5547_v29  ;;  %v1494_v9 = vpop.f32.mrf.mxu2 }
 0x296   : > { %v1872_v36 = vmax.f32 %v1744_v27, 0.0  ;;  %v1659_v60 = vmul.f32 %v7146_v63, %v1494_v9 }
 0x297   : > { %v3578_v41 = vsel %vm1941_vm0, %v2246_v37, %v5548_v34  ;;  %v3579_v43 = vsel %vm1941_vm0, %v2248_v38, %v5549_v32  ;;  %v2677_v34 = vld [vmem:[#allocation2 + $0x91] ss:$2 sm:$0xff] }
 0x298   : > { %2157 = vst.msk [vmem:[#allocation2 + $0x309] sm:$0xff] %vm1941_vm0, %v1872_v36  ;;  %v3610_v44 = vsel %vm1027_vm2, %v3578_v41, %v5553_v31  ;;  %v3611_v45 = vsel %vm1027_vm2, %v3579_v43, %v5554_v30  ;;  %v1791_v16 = vadd.f32 %v7154_v8, %v1659_v60  ;;  %v2679_v30 = vld [vmem:[#allocation2 + $0xc1] ss:$2 sm:$0xff]  ;;  %v5388_v37 = vld [vmem:[%s8080_s6 + $0x50] sm:$0xff] }
 0x299   : > { %v1379_v48 = vpop.f32.mrf.mxu0  ;;  %v3643_v4 = vsel %vm3632_vm4, %v3610_v44, %v5558_v40  ;;  %v3644_v50 = vsel %vm3632_vm4, %v3611_v45, %v5559_v39  ;;  %v5615_v35 = vpack.i.bf16 %v2679_v30, %v2677_v34  ;;  %4095 = vmatpush.bf16.msrb.mxu2 %v5388_v37  ;;  %v5387_v45 = vld [vmem:[%s8080_s6 + $0x48] sm:$0xff] }
 0x29a   : > { %v1613_v51 = vmul.f32 %v7146_v63, %v1379_v48  ;;  %v3812_v52 = vpack.c.bf16 %v3644_v50, %v3643_v4  ;;  %v1919_v18 = vmax.f32 %v1791_v16, 0.0 }
 0x29c   : > { %v1745_v54 = vadd.f32 %v7154_v8, %v1613_v51  ;;  %4034 = vmatmul.bf16.gmra.mxu1 %v3812_v52  ;;  %2204 = vst.msk [vmem:[#allocation2 + $0x5a1] sm:$0xff] %vm1941_vm0, %v1919_v18 }
 0x29d   : > { %v1496_v19 = vpop.f32.mrf.mxu2  ;;  %4096 = vmatpush.bf16.msrb.mxu2 %v5387_v45 }
 0x29e   : > { %v1873_v57 = vmax.f32 %v1745_v54, 0.0  ;;  %v1660_v20 = vmul.f32 %v7146_v63, %v1496_v19  ;;  %v5386_v54 = vld [vmem:[%s8080_s6 + $0x40] sm:$0xff] }
 0x29f   : > { %v2384_v5 = vld [vmem:[#allocation2 + $0x302] ss:$2 sm:$0xff]  ;;  %v2320_v61 = vld [vmem:[#allocation2 + $0x301] ss:$2 sm:$0xff] }
 0x2a0   : > { %2158 = vst.msk [vmem:[#allocation2 + $0x319] sm:$0xff] %vm1941_vm0, %v1873_v57  ;;  %v5600_v62 = vpack.i.bf16 %v2384_v5, %v2382_v58  ;;  %v5590_v0 = vpack.i.bf16 %v2320_v61, %v2318_v59  ;;  %v1792_v25 = vadd.f32 %v7154_v8, %v1660_v20  ;;  %v2765_v4 = vld [vmem:[#allocation2 + $0x302] ss:$2 sm:$0xff]  ;;  %v5401_v61 = vld [vmem:[%s8084_s10 + $0x18] sm:$0xff] }
 0x2a1   : > { %v1381_v2 = vpop.f32.mrf.mxu0  ;;  %4097 = vmatpush.bf16.msrb.mxu2 %v5386_v54  ;;  %4555 = vmatpush.bf16.msra.mxu3 %v5401_v61  ;;  %v2252_v20 = vld [vmem:[#allocation2 + $0x2a0] ss:$2 sm:$0xff] }
 0x2a2   : > { %v1614_v42 = vmul.f32 %v7146_v63, %v1381_v2  ;;  %5601 = vrot.lane.b32.xlu1 %v5600_v62, %s6068_s16  ;;  %5591 = vrot.lane.b32.xlu0 %v5590_v0, %s6067_s15  ;;  %v1920_v28 = vmax.f32 %v1792_v25, 0.0 }
 0x2a4   : > { %v1746_v6 = vadd.f32 %v7154_v8, %v1614_v42  ;;  %2205 = vst.msk [vmem:[#allocation2 + $0x5a9] sm:$0xff] %vm1941_vm0, %v1920_v28 }
 0x2a5   : > { %v1499_v31 = vpop.f32.mrf.mxu2 }
 0x2a6   : > { %v1874_v10 = vmax.f32 %v1746_v6, 0.0  ;;  %v1661_v36 = vmul.f32 %v7146_v63, %v1499_v31 }
 0x2a8   : > { %2159 = vst.msk [vmem:[#allocation2 + $0x321] sm:$0xff] %vm1941_vm0, %v1874_v10  ;;  %v1793_v40 = vadd.f32 %v7154_v8, %v1661_v36 }
 0x2a9   : > { %v1384_v14 = vpop.f32.mrf.mxu0 }
 0x2aa   : > { %v1615_v15 = vmul.f32 %v7146_v63, %v1384_v14  ;;  %5606 = vrot.lane.b32.xlu1 %v5605_v12, %s6068_s16  ;;  %5596 = vrot.lane.b32.xlu0 %v5595_v13, %s6067_s15  ;;  %v1921_v43 = vmax.f32 %v1793_v40, 0.0 }
 0x2ac   : > { %v1747_v17 = vadd.f32 %v7154_v8, %v1615_v15  ;;  %2206 = vst.msk [vmem:[#allocation2 + $0x5b9] sm:$0xff] %vm1941_vm0, %v1921_v43 }
 0x2ad   : > { %v1501_v44 = vpop.f32.mrf.mxu2 }
 0x2ae   : > { %v1875_v1 = vmax.f32 %v1747_v17, 0.0  ;;  %v1662_v48 = vmul.f32 %v7146_v63, %v1501_v44 }
 0x2af   : > { %v2447_v22 = vld [vmem:[#allocation2 + $0x318] ss:$2 sm:$0xff] }
 0x2b0   : > { %2160 = vst.msk [vmem:[#allocation2 + $0x331] sm:$0xff] %vm1941_vm0, %v1875_v1  ;;  %v5610_v23 = vpack.i.bf16 %v2447_v22, %v2445_v21  ;;  %v1794_v52 = vadd.f32 %v7154_v8, %v1662_v48  ;;  %v2250_v1 = vld [vmem:[#allocation2 + $0x270] ss:$2 sm:$0xff]  ;;  %v2322_v48 = vld [vmem:[#allocation2 + $0x361] ss:$2 sm:$0xff] }
 0x2b1   : > { %v1386_v26 = vpop.f32.mrf.mxu0 }
 0x2b2   : > { %v1616_v27 = vmul.f32 %v7146_v63, %v1386_v26  ;;  %5611 = vrot.lane.b32.xlu2 %v5610_v23, %s6069_s12  ;;  %v1922_v56 = vmax.f32 %v1794_v52, 0.0  ;;  %v2483_v52 = vld [vmem:[#allocation2 + $0x49] ss:$2 sm:$0xff] }
 0x2b4   : > { %v1748_v29 = vadd.f32 %v7154_v8, %v1616_v27  ;;  %2207 = vst.msk [vmem:[#allocation2 + $0x5c1] sm:$0xff] %vm1941_vm0, %v1922_v56 }
 0x2b5   : > { %v1504_v58 = vpop.f32.mrf.mxu2 }
 0x2b6   : > { %v1876_v32 = vmax.f32 %v1748_v29, 0.0  ;;  %v1663_v59 = vmul.f32 %v7146_v63, %v1504_v58 }
 0x2b8   : > { %2161 = vst.msk [vmem:[#allocation2 + $0x339] sm:$0xff] %vm1941_vm0, %v1876_v32  ;;  %v1795_v24 = vadd.f32 %v7154_v8, %v1663_v59 }
 0x2b9   : > { %v1389_v38 = vpop.f32.mrf.mxu0 }
 0x2ba   : > { %v1617_v39 = vmul.f32 %v7146_v63, %v1389_v38  ;;  %5616 = vrot.lane.b32.xlu2 %v5615_v35, %s6069_s12  ;;  %v1923_v42 = vmax.f32 %v1795_v24, 0.0 }
 0x2bc   : > { %v1749_v41 = vadd.f32 %v7154_v8, %v1617_v39  ;;  %2208 = vst.msk [vmem:[#allocation2 + $0x5d1] sm:$0xff] %vm1941_vm0, %v1923_v42 }
 0x2bd   : > { %v1506_v3 = vpop.f32.mrf.mxu2 }
 0x2be   : > { %v1877_v47 = vmax.f32 %v1749_v41, 0.0  ;;  %v1664_v7 = vmul.f32 %v7146_v63, %v1506_v3 }
 0x2bf   : > { %v2767_v50 = vld [vmem:[#allocation2 + $0x332] ss:$2 sm:$0xff] }
 0x2c0   : > { %2162 = vst.msk [vmem:[#allocation2 + $0x379] sm:$0xff] %vm1941_vm0, %v1877_v47  ;;  %v3820_v51 = vpack.c.bf16 %v2767_v50, %v2765_v4  ;;  %v1796_v33 = vadd.f32 %v7154_v8, %v1664_v7  ;;  %v2386_v47 = vld [vmem:[#allocation2 + $0x362] ss:$2 sm:$0xff] }
 0x2c1   : > { %v1391_v53 = vpop.f32.mrf.mxu0 }
 0x2c2   : > { %v1618_v55 = vmul.f32 %v7146_v63, %v1391_v53  ;;  %5270 = vmatmul.msk.bf16.gmra.mxu3 %vm1941_vm0, %v3820_v51  ;;  %v1924_v11 = vmax.f32 %v1796_v33, 0.0  ;;  %v2481_v51 = vld [vmem:[#allocation2 + $0x19] ss:$2 sm:$0xff] }
 0x2c4   : > { %v1750_v57 = vadd.f32 %v7154_v8, %v1618_v55  ;;  %2209 = vst.msk [vmem:[#allocation2 + $0x5d9] sm:$0xff] %vm1941_vm0, %v1924_v11 }
 0x2c5   : > { %v1509_v18 = vpop.f32.mrf.mxu2 }
 0x2c6   : > { %v1878_v5 = vmax.f32 %v1750_v57, 0.0  ;;  %v1665_v28 = vmul.f32 %v7146_v63, %v1509_v18 }
 0x2c8   : > { %2163 = vst.msk [vmem:[#allocation2 + $0x381] sm:$0xff] %vm1941_vm0, %v1878_v5  ;;  %v1797_v35 = vadd.f32 %v7154_v8, %v1665_v28 }
 0x2c9   : > { %v1394_v62 = vpop.f32.mrf.mxu0 }
 0x2ca   : > { %v1619_v0 = vmul.f32 %v7146_v63, %v1394_v62  ;;  %v1925_v40 = vmax.f32 %v1797_v35, 0.0 }
 0x2cc   : > { %v1751_v2 = vadd.f32 %v7154_v8, %v1619_v0  ;;  %v5582_v9 = vpop.permute.xlu2 %5581  ;;  %2210 = vst.msk [vmem:[#allocation2 + $0x5e9] sm:$0xff] %vm1941_vm0, %v1925_v40 }
 0x2cd   : > { %v5584_v21 = vunpack.i.h.bf16 %v5582_v9  ;;  %v5583_v22 = vunpack.i.l.bf16 %v5582_v9  ;;  %v1511_v4 = vpop.f32.mrf.mxu2  ;;  %v2555_v9 = vld [vmem:[#allocation2 + $0x10a] ss:$2 sm:$0xff] }
 0x2ce   : > { %v1879_v6 = vmax.f32 %v1751_v2, 0.0  ;;  %v1666_v42 = vmul.f32 %v7146_v63, %v1511_v4  ;;  %v2328_v4 = vld [vmem:[#allocation2 + $0x3f1] ss:$2 sm:$0xff] }
 0x2d0   : > { %2164 = vst.msk [vmem:[#allocation2 + $0x391] sm:$0xff] %vm1941_vm0, %v1879_v6  ;;  %v1798_v7 = vadd.f32 %v7154_v8, %v1666_v42  ;;  %v2559_v42 = vld [vmem:[#allocation2 + $0x16a] ss:$2 sm:$0xff] }
 0x2d1   : > { %v1396_v10 = vpop.f32.mrf.mxu0 }
 0x2d2   : > { %v1620_v49 = vmul.f32 %v7146_v63, %v1396_v10  ;;  %v1926_v10 = vmax.f32 %v1798_v7, 0.0 }
 0x2d4   : > { %v1752_v12 = vadd.f32 %v7154_v8, %v1620_v49  ;;  %v5572_v13 = vpop.permute.xlu1 %5571  ;;  %v5562_v60 = vpop.permute.xlu0 %5561  ;;  %2211 = vst.msk [vmem:[#allocation2 + $0x5f1] sm:$0xff] %vm1941_vm0, %v1926_v10 }
 0x2d5   : > { %v5574_v14 = vunpack.i.h.bf16 %v5572_v13  ;;  %v5573_v15 = vunpack.i.l.bf16 %v5572_v13  ;;  %v5564_v16 = vunpack.i.h.bf16 %v5562_v60  ;;  %v5563_v17 = vunpack.i.l.bf16 %v5562_v60  ;;  %v5587_v36 = vpop.permute.xlu2 %5586  ;;  %v2553_v13 = vld [vmem:[#allocation2 + $0xda] ss:$2 sm:$0xff] }
 0x2d6   : > { %v1880_v19 = vmax.f32 %v1752_v12, 0.0  ;;  %v5589_v53 = vunpack.i.h.bf16 %v5587_v36  ;;  %v5588_v54 = vunpack.i.l.bf16 %v5587_v36  ;;  %v2617_v12 = vld [vmem:[#allocation2 + $0xf0] ss:$2 sm:$0xff]  ;;  %v2681_v36 = vld [vmem:[#allocation2 + $0xf1] ss:$2 sm:$0xff] }
 0x2d7   : > { %v3580_v23 = vsel %vm1941_vm0, %v2250_v1, %v5563_v17  ;;  %v3581_v25 = vsel %vm1941_vm0, %v2252_v20, %v5564_v16  ;;  %v1514_v11 = vpop.f32.mrf.mxu2  ;;  %v5635_v60 = vpack.i.bf16 %v2619_v46, %v2617_v12  ;;  %v2557_v46 = vld [vmem:[#allocation2 + $0x13a] ss:$2 sm:$0xff] }
 0x2d8   : > { %2165 = vst.msk [vmem:[#allocation2 + $0x399] sm:$0xff] %vm1941_vm0, %v1880_v19  ;;  %v3612_v26 = vsel %vm1027_vm2, %v3580_v23, %v5573_v15  ;;  %v3613_v27 = vsel %vm1027_vm2, %v3581_v25, %v5574_v14  ;;  %v5625_v14 = vpack.i.bf16 %v2555_v9, %v2553_v13  ;;  %v1667_v15 = vmul.f32 %v7146_v63, %v1514_v11  ;;  %v2773_v11 = vld [vmem:[#allocation2 + $0x3f2] ss:$2 sm:$0xff]  ;;  %v2775_v12 = vld [vmem:[#allocation2 + $0x422] ss:$2 sm:$0xff] }
 0x2d9   : > { %v1399_v29 = vpop.f32.mrf.mxu0  ;;  %v3645_v30 = vsel %vm3632_vm4, %v3612_v26, %v5583_v22  ;;  %v3646_v31 = vsel %vm3632_vm4, %v3613_v27, %v5584_v21  ;;  %v2449_v22 = vld [vmem:[#allocation2 + $0x378] ss:$2 sm:$0xff]  ;;  %v5655_v9 = vpack.i.bf16 %v2559_v42, %v2557_v46  ;;  %v2459_v46 = vld [vmem:[#allocation2 + $0x468] ss:$2 sm:$0xff] }
 0x2da   : > { %v1621_v32 = vmul.f32 %v7146_v63, %v1399_v29  ;;  %v3815_v34 = vpack.c.bf16 %v3646_v31, %v3645_v30  ;;  %v1799_v18 = vadd.f32 %v7154_v8, %v1667_v15  ;;  %v2394_v13 = vld [vmem:[#allocation2 + $0x422] ss:$2 sm:$0xff]  ;;  %v2330_v15 = vld [vmem:[#allocation2 + $0x421] ss:$2 sm:$0xff] }
 0x2db   : > { %v2779_v42 = vld [vmem:[#allocation2 + $0x482] ss:$2 sm:$0xff] }
 0x2dc   : > { %v1753_v37 = vadd.f32 %v7154_v8, %v1621_v32  ;;  %v5577_v38 = vpop.permute.xlu1 %5576  ;;  %v5567_v39 = vpop.permute.xlu0 %5566  ;;  %4039 = vmatmul.bf16.gmra.mxu1 %v3815_v34  ;;  %v1927_v1 = vmax.f32 %v1799_v18, 0.0  ;;  %v2683_v32 = vld [vmem:[#allocation2 + $0x121] ss:$2 sm:$0xff] }
 0x2dd   : > { %v5579_v41 = vunpack.i.h.bf16 %v5577_v38  ;;  %v5578_v43 = vunpack.i.l.bf16 %v5577_v38  ;;  %v5569_v44 = vunpack.i.h.bf16 %v5567_v39  ;;  %v5568_v45 = vunpack.i.l.bf16 %v5567_v39 }
 0x2de   : > { %v1881_v50 = vmax.f32 %v1753_v37, 0.0  ;;  %2212 = vst.msk [vmem:[#allocation2 + $0x601] sm:$0xff] %vm1941_vm0, %v1927_v1  ;;  %v5645_v38 = vpack.i.bf16 %v2683_v32, %v2681_v36  ;;  %v3826_v1 = vpack.c.bf16 %v2775_v12, %v2773_v11  ;;  %v7448_v36 = vpop.f32.mrf.mxu3 }
 0x2df   : > { %v3666_v55 = vsel %vm1941_vm0, %v2483_v52, %v5569_v44  ;;  %v3665_v56 = vsel %vm1941_vm0, %v2481_v51, %v5568_v45  ;;  %v2388_v57 = vld [vmem:[#allocation2 + $0x392] ss:$2 sm:$0xff]  ;;  %v2324_v58 = vld [vmem:[#allocation2 + $0x391] ss:$2 sm:$0xff]  ;;  %v1516_v21 = vpop.f32.mrf.mxu2 }
 0x2e0   : > { %2166 = vst.msk [vmem:[#allocation2 + $0x3a9] sm:$0xff] %vm1941_vm0, %v1881_v50  ;;  %v3698_v5 = vsel %vm1027_vm2, %v3666_v55, %v5579_v41  ;;  %v3697_v59 = vsel %vm1027_vm2, %v3665_v56, %v5578_v43  ;;  %v5630_v61 = vpack.i.bf16 %v2388_v57, %v2386_v47  ;;  %v5620_v62 = vpack.i.bf16 %v2324_v58, %v2322_v48  ;;  %v2392_v45 = vld [vmem:[#allocation2 + $0x3f2] ss:$2 sm:$0xff] }
 0x2e1   : > { %v1401_v0 = vpop.f32.mrf.mxu0  ;;  %v3729_v24 = vsel %vm3632_vm4, %v3697_v59, %v5588_v54  ;;  %v3730_v2 = vsel %vm3632_vm4, %v3698_v5, %v5589_v53  ;;  %v1668_v25 = vmul.f32 %v7146_v63, %v1516_v21  ;;  %v2769_v48 = vld [vmem:[#allocation2 + $0x392] ss:$2 sm:$0xff] }
 0x2e2   : > { %v1622_v3 = vmul.f32 %v7146_v63, %v1401_v0  ;;  %5631 = vrot.lane.b32.xlu1 %v5630_v61, %s6068_s16  ;;  %5621 = vrot.lane.b32.xlu0 %v5620_v62, %s6067_s15  ;;  %v3798_v6 = vpack.c.bf16 %v3730_v2, %v3729_v24  ;;  %v5964_v59 = vld [vmem:[%s8078_s4] ss:$0 sm:$0xff] }
 0x2e3   : > { %v1800_v28 = vadd.f32 %v7154_v8, %v1668_v25  ;;  %v5965_v62 = vld [vmem:[%s8079_s5] ss:$0 sm:$0xff] }
 0x2e4   : > { %v1754_v33 = vadd.f32 %v7154_v8, %v1622_v3  ;;  %4098 = vmatmul.bf16.vlgmr.msrb.gmra.mxu2 %v3798_v6  ;;  %v2623_v24 = vld [vmem:[#allocation2 + $0x180] ss:$2 sm:$0xff]  ;;  %v2621_v6 = vld [vmem:[#allocation2 + $0x150] ss:$2 sm:$0xff] }
 0x2e5   : > { %v1928_v30 = vmax.f32 %v1800_v28, 0.0 }
 0x2e6   : > { %v1882_v49 = vmax.f32 %v1754_v33, 0.0  ;;  %v5665_v33 = vpack.i.bf16 %v2623_v24, %v2621_v6  ;;  %v2400_v6 = vld [vmem:[#allocation2 + $0x4b2] ss:$2 sm:$0xff]  ;;  %v7461_v12 = vpop.f32.mrf.mxu3 }
 0x2e7   : > { %2213 = vst.msk [vmem:[#allocation2 + $0x609] sm:$0xff] %vm1941_vm0, %v1928_v30  ;;  %v1519_v35 = vpop.f32.mrf.mxu2 }
 0x2e8   : > { %2167 = vst.msk [vmem:[#allocation2 + $0x3b1] sm:$0xff] %vm1941_vm0, %v1882_v49  ;;  %v1669_v37 = vmul.f32 %v7146_v63, %v1519_v35  ;;  %v2687_v35 = vld [vmem:[#allocation2 + $0x181] ss:$2 sm:$0xff] }
 0x2e9   : > { %v1404_v16 = vpop.f32.mrf.mxu0 }
 0x2ea   : > { %v1623_v17 = vmul.f32 %v7146_v63, %v1404_v16  ;;  %5636 = vrot.lane.b32.xlu1 %v5635_v60, %s6068_s16  ;;  %5626 = vrot.lane.b32.xlu0 %v5625_v14, %s6067_s15  ;;  %v1801_v40 = vadd.f32 %v7154_v8, %v1669_v37  ;;  %v2396_v60 = vld [vmem:[#allocation2 + $0x452] ss:$2 sm:$0xff]  ;;  %v2332_v16 = vld [vmem:[#allocation2 + $0x451] ss:$2 sm:$0xff] }
 0x2eb   : > { %v2455_v14 = vld [vmem:[#allocation2 + $0x408] ss:$2 sm:$0xff] }
 0x2ec   : > { %v1755_v19 = vadd.f32 %v7154_v8, %v1623_v17  ;;  %v1929_v43 = vmax.f32 %v1801_v40, 0.0  ;;  %v2254_v37 = vld [vmem:[#allocation2 + $0x2d0] ss:$2 sm:$0xff] }
 0x2ee   : > { %v1883_v20 = vmax.f32 %v1755_v19, 0.0  ;;  %2214 = vst.msk [vmem:[#allocation2 + $0x619] sm:$0xff] %vm1941_vm0, %v1929_v43 }
 0x2ef   : > { %v2451_v23 = vld [vmem:[#allocation2 + $0x3a8] ss:$2 sm:$0xff]  ;;  %v1521_v50 = vpop.f32.mrf.mxu2 }
 0x2f0   : > { %2168 = vst.msk [vmem:[#allocation2 + $0x3c1] sm:$0xff] %vm1941_vm0, %v1883_v20  ;;  %v5640_v26 = vpack.i.bf16 %v2451_v23, %v2449_v22  ;;  %v1670_v54 = vmul.f32 %v7146_v63, %v1521_v50  ;;  %v5685_v20 = vpack.i.bf16 %v2396_v60, %v2394_v13  ;;  %v5680_v23 = vpack.i.bf16 %v2332_v16, %v2330_v15 }
 0x2f1   : > { %v1406_v27 = vpop.f32.mrf.mxu0 }
 0x2f2   : > { %v1624_v29 = vmul.f32 %v7146_v63, %v1406_v27  ;;  %5641 = vrot.lane.b32.xlu2 %v5640_v26, %s6069_s12  ;;  %v1802_v5 = vadd.f32 %v7154_v8, %v1670_v54 }
 0x2f4   : > { %v1756_v31 = vadd.f32 %v7154_v8, %v1624_v29 }
 0x2f6   : > { %v1884_v34 = vmax.f32 %v1756_v31, 0.0 }
 0x2f7   : > { %v1524_v3 = vpop.f32.mrf.mxu2 }
 0x2f8   : > { %2169 = vst.msk [vmem:[#allocation2 + $0x3c9] sm:$0xff] %vm1941_vm0, %v1884_v34  ;;  %v1671_v7 = vmul.f32 %v5964_v59, %v1524_v3  ;;  %v2627_v34 = vld [vmem:[#allocation2 + $0x210] ss:$2 sm:$0xff] }
 0x2f9   : > { %v1409_v39 = vpop.f32.mrf.mxu0  ;;  %v2398_v3 = vld [vmem:[#allocation2 + $0x482] ss:$2 sm:$0xff] }
 0x2fa   : > { %v1625_v41 = vmul.f32 %v7146_v63, %v1409_v39  ;;  %5646 = vrot.lane.b32.xlu2 %v5645_v38, %s6069_s12  ;;  %v1930_v63 = vmax.f32 %v1802_v5, 0.0  ;;  %v1803_v10 = vadd.f32 %v5965_v62, %v1671_v7  ;;  %v2256_v38 = vld [vmem:[#allocation2 + $0x300] ss:$2 sm:$0xff]  ;;  %v2485_v5 = vld [vmem:[#allocation2 + $0x79] ss:$2 sm:$0xff]  ;;  %v5715_v60 = vpack.i.bf16 %v2400_v6, %v2398_v3 }
 0x2fb   : > { %v2563_v39 = vld [vmem:[#allocation2 + $0x1fa] ss:$2 sm:$0xff]  ;;  %v2334_v7 = vld [vmem:[#allocation2 + $0x481] ss:$2 sm:$0xff] }
 0x2fc   : > { %v1757_v44 = vadd.f32 %v7154_v8, %v1625_v41  ;;  %v5400_v8 = vld [vmem:[%s8084_s10 + $0x10] sm:$0xff]  ;;  %2215 = vst.msk [vmem:[#allocation2 + $0x621] sm:$0xff] %vm1941_vm0, %v1930_v63  ;;  %v1931_v49 = vmax.f32 %v1803_v10, 0.0 }
 0x2fd   : > { %4556 = vmatpush.bf16.msra.mxu3 %v5400_v8  ;;  %v2777_v63 = vld [vmem:[#allocation2 + $0x452] ss:$2 sm:$0xff] }
 0x2fe   : > { %v1885_v47 = vmax.f32 %v1757_v44, 0.0  ;;  %2216 = vst.msk [vmem:[#allocation2 + $0x631] sm:$0xff] %vm1941_vm0, %v1931_v49  ;;  %v3829_v13 = vpack.c.bf16 %v2779_v42, %v2777_v63  ;;  %v2408_v63 = vld [vmem:[#allocation2 + $0x5a2] ss:$2 sm:$0xff] }
 0x2ff   : > { %v2771_v51 = vld [vmem:[#allocation2 + $0x3c2] ss:$2 sm:$0xff]  ;;  %v2326_v53 = vld [vmem:[#allocation2 + $0x3c1] ss:$2 sm:$0xff]  ;;  %v1526_v17 = vpop.f32.mrf.mxu2 }
 0x300   : > { %v2390_v52 = vld [vmem:[#allocation2 + $0x3c2] ss:$2 sm:$0xff]  ;;  %2170 = vst.msk [vmem:[#allocation2 + $0x3d9] sm:$0xff] %vm1941_vm0, %v1885_v47  ;;  %v3823_v55 = vpack.c.bf16 %v2771_v51, %v2769_v48  ;;  %v5650_v57 = vpack.i.bf16 %v2328_v4, %v2326_v53  ;;  %v1672_v19 = vmul.f32 %v5964_v59, %v1526_v17  ;;  %v2685_v4 = vld [vmem:[#allocation2 + $0x151] ss:$2 sm:$0xff] }
 0x301   : > { %v5660_v56 = vpack.i.bf16 %v2392_v45, %v2390_v52  ;;  %v1411_v58 = vpop.f32.mrf.mxu0  ;;  %v2625_v45 = vld [vmem:[#allocation2 + $0x1e0] ss:$2 sm:$0xff]  ;;  %v5675_v53 = vpack.i.bf16 %v2687_v35, %v2685_v4 }
 0x302   : > { %v1626_v61 = vmul.f32 %v5964_v59, %v1411_v58  ;;  %5271 = vmatmul.msk.bf16.gmra.mxu3 %vm1941_vm0, %v3823_v55  ;;  %5651 = vrot.lane.b32.xlu0 %v5650_v57, %s6067_s15  ;;  %v1804_v25 = vadd.f32 %v5965_v62, %v1672_v19  ;;  %v5700_v47 = vpack.i.bf16 %v2627_v34, %v2625_v45  ;;  %v2561_v48 = vld [vmem:[#allocation2 + $0x1ca] ss:$2 sm:$0xff]  ;;  %v2487_v59 = vld [vmem:[#allocation2 + $0xa9] ss:$2 sm:$0xff]  ;;  %v2571_v4 = vld [vmem:[#allocation2 + $0x2ba] ss:$2 sm:$0xff] }
 0x303   : > { %5661 = vrot.lane.b32.xlu1 %v5660_v56, %s6068_s16  ;;  %v5695_v52 = vpack.i.bf16 %v2563_v39, %v2561_v48  ;;  %v2783_v34 = vld [vmem:[#allocation2 + $0x4e2] ss:$2 sm:$0xff]  ;;  %v2402_v35 = vld [vmem:[#allocation2 + $0x512] ss:$2 sm:$0xff]  ;;  %v2340_v39 = vld [vmem:[#allocation2 + $0x541] ss:$2 sm:$0xff] }
 0x304   : > { %v1758_v0 = vadd.f32 %v5965_v62, %v1626_v61  ;;  %v1932_v26 = vmax.f32 %v1804_v25, 0.0  ;;  %v2457_v62 = vld [vmem:[#allocation2 + $0x438] ss:$2 sm:$0xff]  ;;  %v7471_v25 = vpop.f32.mrf.mxu3 }
 0x305   : > { %v5690_v17 = vpack.i.bf16 %v2459_v46, %v2457_v62  ;;  %v2635_v48 = vld [vmem:[#allocation2 + $0x2d0] ss:$2 sm:$0xff]  ;;  %v2342_v62 = vld [vmem:[#allocation2 + $0x571] ss:$2 sm:$0xff] }
 0x306   : > { %v1886_v2 = vmax.f32 %v1758_v0, 0.0  ;;  %2217 = vst.msk [vmem:[#allocation2 + $0x639] sm:$0xff] %vm1941_vm0, %v1932_v26  ;;  %v2575_v46 = vld [vmem:[#allocation2 + $0x31a] ss:$2 sm:$0xff] }
 0x308   : > { %2171 = vst.msk [vmem:[#allocation2 + $0x3e1] sm:$0xff] %vm1941_vm0, %v1886_v2 }
 0x30a   : > { %5656 = vrot.lane.b32.xlu0 %v5655_v9, %s6067_s15 }
 0x30b   : > { %5666 = vrot.lane.b32.xlu1 %v5665_v33, %s6068_s16  ;;  %v2336_v33 = vld [vmem:[#allocation2 + $0x4b1] ss:$2 sm:$0xff] }
 0x30c   : > { %v5612_v22 = vpop.permute.xlu2 %5611  ;;  %v5710_v16 = vpack.i.bf16 %v2336_v33, %v2334_v7  ;;  %v5399_v7 = vld [vmem:[%s8084_s10 + $0x8] sm:$0xff]  ;;  %v2639_v33 = vld [vmem:[#allocation2 + $0x330] ss:$2 sm:$0xff] }
 0x30d   : > { %v5614_v40 = vunpack.i.h.bf16 %v5612_v22  ;;  %v5613_v41 = vunpack.i.l.bf16 %v5612_v22  ;;  %v2691_v22 = vld [vmem:[#allocation2 + $0x211] ss:$2 sm:$0xff]  ;;  %4557 = vmatpush.bf16.msra.mxu3 %v5399_v7  ;;  %v2793_v7 = vld [vmem:[#allocation2 + $0x602] ss:$2 sm:$0xff] }
 0x30f   : > { %v2453_v18 = vld [vmem:[#allocation2 + $0x3d8] ss:$2 sm:$0xff] }
 0x310   : > { %v5670_v21 = vpack.i.bf16 %v2455_v14, %v2453_v18 }
 0x312   : > { %5272 = vmatmul.msk.bf16.gmra.mxu3 %vm1941_vm0, %v3826_v1  ;;  %5681 = vrot.lane.b32.xlu0 %v5680_v23, %s6067_s15  ;;  %v2629_v23 = vld [vmem:[#allocation2 + $0x240] ss:$2 sm:$0xff] }
 0x313   : > { %5686 = vrot.lane.b32.xlu1 %v5685_v20, %s6068_s16  ;;  %5671 = vrot.lane.b32.xlu2 %v5670_v21, %s6069_s12  ;;  %v2631_v20 = vld [vmem:[#allocation2 + $0x270] ss:$2 sm:$0xff] }
 0x314   : > { %v5602_v27 = vpop.permute.xlu1 %5601  ;;  %v5592_v28 = vpop.permute.xlu0 %5591  ;;  %v2567_v21 = vld [vmem:[#allocation2 + $0x25a] ss:$2 sm:$0xff]  ;;  %v5730_v26 = vpack.i.bf16 %v2631_v20, %v2629_v23  ;;  %v2346_v20 = vld [vmem:[#allocation2 + $0x5d1] ss:$2 sm:$0xff] }
 0x315   : > { %v5604_v29 = vunpack.i.h.bf16 %v5602_v27  ;;  %v5603_v30 = vunpack.i.l.bf16 %v5602_v27  ;;  %v5594_v31 = vunpack.i.h.bf16 %v5592_v28  ;;  %v5593_v32 = vunpack.i.l.bf16 %v5592_v28  ;;  %v5617_v57 = vpop.permute.xlu2 %5616  ;;  %v2565_v27 = vld [vmem:[#allocation2 + $0x22a] ss:$2 sm:$0xff]  ;;  %v2689_v28 = vld [vmem:[#allocation2 + $0x1e1] ss:$2 sm:$0xff] }
 0x316   : > { %v5619_v9 = vunpack.i.h.bf16 %v5617_v57  ;;  %v5618_v10 = vunpack.i.l.bf16 %v5617_v57 }
 0x317   : > { %v3582_v43 = vsel %vm1941_vm0, %v2254_v37, %v5593_v32  ;;  %v3583_v44 = vsel %vm1941_vm0, %v2256_v38, %v5594_v31  ;;  %v2781_v31 = vld [vmem:[#allocation2 + $0x4b2] ss:$2 sm:$0xff]  ;;  %v2404_v37 = vld [vmem:[#allocation2 + $0x542] ss:$2 sm:$0xff]  ;;  %v2338_v38 = vld [vmem:[#allocation2 + $0x511] ss:$2 sm:$0xff] }
 0x318   : > { %v3614_v50 = vsel %vm1027_vm2, %v3582_v43, %v5603_v30  ;;  %v3615_v51 = vsel %vm1027_vm2, %v3583_v44, %v5604_v29  ;;  %v5725_v29 = vpack.i.bf16 %v2567_v21, %v2565_v27  ;;  %v5705_v30 = vpack.i.bf16 %v2691_v22, %v2689_v28  ;;  %v2461_v32 = vld [vmem:[#allocation2 + $0x498] ss:$2 sm:$0xff]  ;;  %v2348_v21 = vld [vmem:[#allocation2 + $0x601] ss:$2 sm:$0xff] }
 0x319   : > { %v3647_v54 = vsel %vm3632_vm4, %v3614_v50, %v5613_v41  ;;  %v3648_v55 = vsel %vm3632_vm4, %v3615_v51, %v5614_v40  ;;  %v2463_v40 = vld [vmem:[#allocation2 + $0x4c8] ss:$2 sm:$0xff]  ;;  %v3832_v41 = vpack.c.bf16 %v2783_v34, %v2781_v31  ;;  %v5745_v43 = vpack.i.bf16 %v2404_v37, %v2402_v35  ;;  %v2695_v50 = vld [vmem:[#allocation2 + $0x271] ss:$2 sm:$0xff]  ;;  %v2471_v22 = vld [vmem:[#allocation2 + $0x5b8] ss:$2 sm:$0xff]  ;;  %v7508_v35 = vpop.f32.mrf.mxu1 }
 0x31a   : > { %v3818_v56 = vpack.c.bf16 %v3648_v55, %v3647_v54  ;;  %5696 = vrot.lane.b32.xlu0 %v5695_v52, %s6067_s15  ;;  %v5740_v44 = vpack.i.bf16 %v2340_v39, %v2338_v38  ;;  %v5720_v45 = vpack.i.bf16 %v2463_v40, %v2461_v32  ;;  %v2633_v51 = vld [vmem:[#allocation2 + $0x2a0] ss:$2 sm:$0xff]  ;;  %v2693_v54 = vld [vmem:[#allocation2 + $0x241] ss:$2 sm:$0xff] }
 0x31b   : > { %5701 = vrot.lane.b32.xlu1 %v5700_v47, %s6068_s16  ;;  %5676 = vrot.lane.b32.xlu2 %v5675_v53, %s6069_s12  ;;  %v7476_v47 = vpop.f32.mrf.mxu3  ;;  %v5760_v52 = vpack.i.bf16 %v2635_v48, %v2633_v51  ;;  %v2569_v53 = vld [vmem:[#allocation2 + $0x28a] ss:$2 sm:$0xff]  ;;  %v5396_v27 = vld [vmem:[%s8083_s9] sm:$0xff]  ;;  %v2703_v48 = vld [vmem:[#allocation2 + $0x331] ss:$2 sm:$0xff] }
 0x31c   : > { %v5607_v58 = vpop.permute.xlu1 %5606  ;;  %v5597_v61 = vpop.permute.xlu0 %5596  ;;  %4044 = vmatmul.bf16.gmra.mxu1 %v3818_v56  ;;  %v5755_v55 = vpack.i.bf16 %v2571_v4, %v2569_v53  ;;  %v5735_v56 = vpack.i.bf16 %v2695_v50, %v2693_v54  ;;  %v2258_v32 = vld [vmem:[#allocation2 + $0x360] ss:$2 sm:$0xff]  ;;  %v2641_v53 = vld [vmem:[#allocation2 + $0x390] ss:$2 sm:$0xff] }
 0x31d   : > { %v5609_v0 = vunpack.i.h.bf16 %v5607_v58  ;;  %v5608_v8 = vunpack.i.l.bf16 %v5607_v58  ;;  %v5599_v24 = vunpack.i.h.bf16 %v5597_v61  ;;  %v5598_v2 = vunpack.i.l.bf16 %v5597_v61  ;;  %v2785_v58 = vld [vmem:[#allocation2 + $0x542] ss:$2 sm:$0xff]  ;;  %v2406_v61 = vld [vmem:[#allocation2 + $0x572] ss:$2 sm:$0xff]  ;;  %4707 = vmatpush.bf16.msra.mxu1 %v5396_v27 }
 0x31f   : > { %v3668_v49 = vsel %vm1941_vm0, %v2487_v59, %v5599_v24  ;;  %v3667_v11 = vsel %vm1941_vm0, %v2485_v5, %v5598_v2  ;;  %v2465_v5 = vld [vmem:[#allocation2 + $0x528] ss:$2 sm:$0xff]  ;;  %v5775_v2 = vpack.i.bf16 %v2408_v63, %v2406_v61 }
 0x320   : > { %v3699_v14 = vsel %vm1027_vm2, %v3667_v11, %v5608_v8  ;;  %v3700_v15 = vsel %vm1027_vm2, %v3668_v49, %v5609_v0  ;;  %v2787_v59 = vld [vmem:[#allocation2 + $0x572] ss:$2 sm:$0xff]  ;;  %v2344_v0 = vld [vmem:[#allocation2 + $0x5a1] ss:$2 sm:$0xff] }
 0x321   : > { %v3731_v18 = vsel %vm3632_vm4, %v3699_v14, %v5618_v10  ;;  %v3732_v19 = vsel %vm3632_vm4, %v3700_v15, %v5619_v9  ;;  %v2467_v8 = vld [vmem:[#allocation2 + $0x558] ss:$2 sm:$0xff]  ;;  %v3835_v24 = vpack.c.bf16 %v2787_v59, %v2785_v58  ;;  %v5770_v42 = vpack.i.bf16 %v2344_v0, %v2342_v62  ;;  %v2699_v9 = vld [vmem:[#allocation2 + $0x2d1] ss:$2 sm:$0xff] }
 0x322   : > { %5273 = vmatmul.msk.bf16.gmra.mxu3 %vm1941_vm0, %v3829_v13  ;;  %v3801_v1 = vpack.c.bf16 %v3732_v19, %v3731_v18  ;;  %5711 = vrot.lane.b32.xlu0 %v5710_v16, %s6067_s15  ;;  %v5750_v3 = vpack.i.bf16 %v2467_v8, %v2465_v5  ;;  %v2637_v10 = vld [vmem:[#allocation2 + $0x300] ss:$2 sm:$0xff]  ;;  %v2697_v13 = vld [vmem:[#allocation2 + $0x2a1] ss:$2 sm:$0xff] }
 0x323   : > { %5716 = vrot.lane.b32.xlu1 %v5715_v60, %s6068_s16  ;;  %5691 = vrot.lane.b32.xlu2 %v5690_v17, %s6069_s12  ;;  %v7482_v57 = vpop.f32.mrf.mxu3  ;;  %v5790_v49 = vpack.i.bf16 %v2639_v33, %v2637_v10  ;;  %v2573_v11 = vld [vmem:[#allocation2 + $0x2ea] ss:$2 sm:$0xff]  ;;  %v5765_v14 = vpack.i.bf16 %v2699_v9, %v2697_v13 }
 0x324   : > { %4103 = vmatmul.bf16.gmra.mxu2 %v3801_v1  ;;  %v5785_v60 = vpack.i.bf16 %v2575_v46, %v2573_v11  ;;  %v2789_v16 = vld [vmem:[#allocation2 + $0x5a2] ss:$2 sm:$0xff]  ;;  %v2791_v18 = vld [vmem:[#allocation2 + $0x5d2] ss:$2 sm:$0xff] }
 0x325   : > { %v2469_v17 = vld [vmem:[#allocation2 + $0x588] ss:$2 sm:$0xff]  ;;  %v3838_v23 = vpack.c.bf16 %v2791_v18, %v2789_v16  ;;  %v2350_v16 = vld [vmem:[#allocation2 + $0x631] ss:$2 sm:$0xff]  ;;  %v2475_v18 = vld [vmem:[#allocation2 + $0x618] ss:$2 sm:$0xff] }
 0x326   : > { %v2410_v19 = vld [vmem:[#allocation2 + $0x5d2] ss:$2 sm:$0xff]  ;;  %v2412_v1 = vld [vmem:[#allocation2 + $0x602] ss:$2 sm:$0xff] }
 0x327   : > { %v2473_v33 = vld [vmem:[#allocation2 + $0x5e8] ss:$2 sm:$0xff] }
 0x328   : > { %v2795_v11 = vld [vmem:[#allocation2 + $0x632] ss:$2 sm:$0xff] }
 0x329   : > { %v2414_v13 = vld [vmem:[#allocation2 + $0x632] ss:$2 sm:$0xff] }
 0x32a   : > { %5726 = vrot.lane.b32.xlu0 %v5725_v29, %s6067_s15  ;;  %v5800_v29 = vpack.i.bf16 %v2348_v21, %v2346_v20 }
 0x32b   : > { %5731 = vrot.lane.b32.xlu1 %v5730_v26, %s6068_s16  ;;  %5706 = vrot.lane.b32.xlu2 %v5705_v30, %s6069_s12  ;;  %v7491_v6 = vpop.f32.mrf.mxu3  ;;  %v5805_v26 = vpack.i.bf16 %v2412_v1, %v2410_v19  ;;  %v5780_v30 = vpack.i.bf16 %v2471_v22, %v2469_v17  ;;  %v2352_v17 = vld [vmem:[#allocation2 + $0x661] ss:$2 sm:$0xff]  ;;  %v7523_v19 = vpop.f32.mrf.mxu1 }
 0x332   : > { %5274 = vmatmul.msk.bf16.gmra.mxu3 %vm1941_vm0, %v3832_v41  ;;  %5741 = vrot.lane.b32.xlu0 %v5740_v44, %s6067_s15  ;;  %v2643_v41 = vld [vmem:[#allocation2 + $0x3c0] ss:$2 sm:$0xff]  ;;  %v2260_v44 = vld [vmem:[#allocation2 + $0x390] ss:$2 sm:$0xff] }
 0x333   : > { %5746 = vrot.lane.b32.xlu1 %v5745_v43, %s6068_s16  ;;  %5721 = vrot.lane.b32.xlu2 %v5720_v45, %s6069_s12  ;;  %v7499_v15 = vpop.f32.mrf.mxu3  ;;  %v2579_v45 = vld [vmem:[#allocation2 + $0x3aa] ss:$2 sm:$0xff]  ;;  %v5820_v54 = vpack.i.bf16 %v2643_v41, %v2641_v53  ;;  %v2707_v41 = vld [vmem:[#allocation2 + $0x3c1] ss:$2 sm:$0xff]  ;;  %v2585_v53 = vld [vmem:[#allocation2 + $0x43a] ss:$2 sm:$0xff] }
 0x33a   : > { %5756 = vrot.lane.b32.xlu0 %v5755_v55, %s6067_s15  ;;  %v2577_v55 = vld [vmem:[#allocation2 + $0x37a] ss:$2 sm:$0xff] }
 0x33b   : > { %5761 = vrot.lane.b32.xlu1 %v5760_v52, %s6068_s16  ;;  %5736 = vrot.lane.b32.xlu2 %v5735_v56, %s6069_s12  ;;  %v7510_v43 = vpop.f32.mrf.mxu3  ;;  %v2701_v56 = vld [vmem:[#allocation2 + $0x301] ss:$2 sm:$0xff]  ;;  %v5815_v59 = vpack.i.bf16 %v2579_v45, %v2577_v55  ;;  %v2797_v55 = vld [vmem:[#allocation2 + $0x662] ss:$2 sm:$0xff] }
 0x33c   : > { %v5795_v61 = vpack.i.bf16 %v2703_v48, %v2701_v56  ;;  %v2799_v56 = vld [vmem:[#allocation2 + $0x692] ss:$2 sm:$0xff] }
 0x342   : > { %5275 = vmatmul.msk.bf16.gmra.mxu3 %vm1941_vm0, %v3835_v24  ;;  %5771 = vrot.lane.b32.xlu0 %v5770_v42, %s6067_s15  ;;  %v2491_v42 = vld [vmem:[#allocation2 + $0x109] ss:$2 sm:$0xff] }
 0x343   : > { %5776 = vrot.lane.b32.xlu1 %v5775_v2, %s6068_s16  ;;  %5751 = vrot.lane.b32.xlu2 %v5750_v3, %s6069_s12  ;;  %v2489_v2 = vld [vmem:[#allocation2 + $0xd9] ss:$2 sm:$0xff] }
 0x34a   : > { %5786 = vrot.lane.b32.xlu0 %v5785_v60, %s6067_s15  ;;  %v2416_v60 = vld [vmem:[#allocation2 + $0x662] ss:$2 sm:$0xff] }
 0x34b   : > { %5791 = vrot.lane.b32.xlu1 %v5790_v49, %s6068_s16  ;;  %5766 = vrot.lane.b32.xlu2 %v5765_v14, %s6069_s12  ;;  %v7521_v14 = vpop.f32.mrf.mxu3 }
 0x34c   : > { %v5642_v28 = vpop.permute.xlu2 %5641 }
 0x34d   : > { %v5644_v4 = vunpack.i.h.bf16 %v5642_v28  ;;  %v5643_v50 = vunpack.i.l.bf16 %v5642_v28 }
 0x352   : > { %5276 = vmatmul.msk.bf16.gmra.mxu3 %vm1941_vm0, %v3838_v23  ;;  %5801 = vrot.lane.b32.xlu0 %v5800_v29, %s6067_s15  ;;  %v3841_v23 = vpack.c.bf16 %v2795_v11, %v2793_v7  ;;  %v5830_v29 = vpack.i.bf16 %v2352_v17, %v2350_v16  ;;  %v2655_v7 = vld [vmem:[#allocation2 + $0x4e0] ss:$2 sm:$0xff]  ;;  %v2711_v17 = vld [vmem:[#allocation2 + $0x421] ss:$2 sm:$0xff] }
 0x353   : > { %5806 = vrot.lane.b32.xlu1 %v5805_v26, %s6068_s16  ;;  %5781 = vrot.lane.b32.xlu2 %v5780_v30, %s6069_s12  ;;  %v5835_v26 = vpack.i.bf16 %v2416_v60, %v2414_v13  ;;  %v5810_v30 = vpack.i.bf16 %v2475_v18, %v2473_v33  ;;  %v7537_v45 = vpop.f32.mrf.mxu3  ;;  %v2589_v60 = vld [vmem:[#allocation2 + $0x49a] ss:$2 sm:$0xff]  ;;  %v2591_v16 = vld [vmem:[#allocation2 + $0x4ca] ss:$2 sm:$0xff] }
 0x354   : > { %v5632_v31 = vpop.permute.xlu1 %5631  ;;  %v5622_v34 = vpop.permute.xlu0 %5621  ;;  %v2264_v18 = vld [vmem:[#allocation2 + $0x3f0] ss:$2 sm:$0xff] }
 0x355   : > { %v5634_v37 = vunpack.i.h.bf16 %v5632_v31  ;;  %v5633_v38 = vunpack.i.l.bf16 %v5632_v31  ;;  %v5624_v39 = vunpack.i.h.bf16 %v5622_v34  ;;  %v5623_v40 = vunpack.i.l.bf16 %v5622_v34  ;;  %v5647_v8 = vpop.permute.xlu2 %5646 }
 0x356   : > { %v5649_v1 = vunpack.i.h.bf16 %v5647_v8  ;;  %v5648_v20 = vunpack.i.l.bf16 %v5647_v8 }
 0x357   : > { %v3584_v51 = vsel %vm1941_vm0, %v2258_v32, %v5623_v40  ;;  %v3585_v52 = vsel %vm1941_vm0, %v2260_v44, %v5624_v39  ;;  %v2581_v39 = vld [vmem:[#allocation2 + $0x3da] ss:$2 sm:$0xff]  ;;  %v2583_v40 = vld [vmem:[#allocation2 + $0x40a] ss:$2 sm:$0xff]  ;;  %v7535_v44 = vpop.f32.mrf.mxu1 }
 0x358   : > { %v3616_v58 = vsel %vm1027_vm2, %v3584_v51, %v5633_v38  ;;  %v3617_v5 = vsel %vm1027_vm2, %v3585_v52, %v5634_v37  ;;  %v2645_v37 = vld [vmem:[#allocation2 + $0x3f0] ss:$2 sm:$0xff]  ;;  %v2647_v38 = vld [vmem:[#allocation2 + $0x420] ss:$2 sm:$0xff] }
 0x359   : > { %v3649_v63 = vsel %vm3632_vm4, %v3616_v58, %v5643_v50  ;;  %v3650_v62 = vsel %vm3632_vm4, %v3617_v5, %v5644_v4  ;;  %v5850_v48 = vpack.i.bf16 %v2647_v38, %v2645_v37  ;;  %v2705_v4 = vld [vmem:[#allocation2 + $0x391] ss:$2 sm:$0xff]  ;;  %v5845_v50 = vpack.i.bf16 %v2583_v40, %v2581_v39  ;;  %v2649_v52 = vld [vmem:[#allocation2 + $0x450] ss:$2 sm:$0xff]  ;;  %v2651_v58 = vld [vmem:[#allocation2 + $0x480] ss:$2 sm:$0xff] }
 0x35a   : > { %v3821_v0 = vpack.c.bf16 %v3650_v62, %v3649_v63  ;;  %5816 = vrot.lane.b32.xlu0 %v5815_v59, %s6067_s15  ;;  %v5825_v51 = vpack.i.bf16 %v2707_v41, %v2705_v4  ;;  %v2587_v5 = vld [vmem:[#allocation2 + $0x46a] ss:$2 sm:$0xff]  ;;  %v3844_v62 = vpack.c.bf16 %v2799_v56, %v2797_v55  ;;  %v2595_v56 = vld [vmem:[#allocation2 + $0x55a] ss:$2 sm:$0xff] }
 0x35b   : > { %5821 = vrot.lane.b32.xlu1 %v5820_v54, %s6068_s16  ;;  %5796 = vrot.lane.b32.xlu2 %v5795_v61, %s6069_s12  ;;  %v2477_v59 = vld [vmem:[#allocation2 + $0x648] ss:$2 sm:$0xff]  ;;  %v2479_v61 = vld [vmem:[#allocation2 + $0x678] ss:$2 sm:$0xff]  ;;  %v7542_v63 = vpop.f32.mrf.mxu3 }
 0x35c   : > { %v5637_v24 = vpop.permute.xlu1 %5636  ;;  %v5627_v3 = vpop.permute.xlu0 %5626  ;;  %4049 = vmatmul.bf16.gmra.mxu1 %v3821_v0  ;;  %v5865_v0 = vpack.i.bf16 %v2651_v58, %v2649_v52  ;;  %v2657_v40 = vld [vmem:[#allocation2 + $0x540] ss:$2 sm:$0xff]  ;;  %v2659_v41 = vld [vmem:[#allocation2 + $0x570] ss:$2 sm:$0xff]  ;;  %v2713_v52 = vld [vmem:[#allocation2 + $0x451] ss:$2 sm:$0xff] }
 0x35d   : > { %v5639_v46 = vunpack.i.h.bf16 %v5637_v24  ;;  %v5638_v9 = vunpack.i.l.bf16 %v5637_v24  ;;  %v5629_v10 = vunpack.i.h.bf16 %v5627_v3  ;;  %v5628_v49 = vunpack.i.l.bf16 %v5627_v3  ;;  %v2653_v3 = vld [vmem:[#allocation2 + $0x4b0] ss:$2 sm:$0xff]  ;;  %v2715_v58 = vld [vmem:[#allocation2 + $0x481] ss:$2 sm:$0xff] }
 0x35e   : > { %v5860_v24 = vpack.i.bf16 %v2587_v5, %v2585_v53  ;;  %v2593_v55 = vld [vmem:[#allocation2 + $0x52a] ss:$2 sm:$0xff]  ;;  %v2493_v5 = vld [vmem:[#allocation2 + $0x139] ss:$2 sm:$0xff] }
 0x35f   : > { %v3670_v21 = vsel %vm1941_vm0, %v2491_v42, %v5629_v10  ;;  %v3669_v22 = vsel %vm1941_vm0, %v2489_v2, %v5628_v49  ;;  %v7544_v8 = vpop.f32.mrf.mxu1  ;;  %v5840_v2 = vpack.i.bf16 %v2479_v61, %v2477_v59  ;;  %v2709_v49 = vld [vmem:[#allocation2 + $0x3f1] ss:$2 sm:$0xff]  ;;  %v5895_v61 = vpack.i.bf16 %v2659_v41, %v2657_v40  ;;  %v5398_v41 = vld [vmem:[%s8084_s10] sm:$0xff] }
 0x360   : > { %v3701_v27 = vsel %vm1027_vm2, %v3669_v22, %v5638_v9  ;;  %v3702_v28 = vsel %vm1027_vm2, %v3670_v21, %v5639_v46  ;;  %v2495_v59 = vld [vmem:[#allocation2 + $0x169] ss:$2 sm:$0xff]  ;;  %4558 = vmatpush.bf16.msra.mxu3 %v5398_v41 }
 0x361   : > { %v3733_v31 = vsel %vm3632_vm4, %v3701_v27, %v5648_v20  ;;  %v3734_v32 = vsel %vm3632_vm4, %v3702_v28, %v5649_v1  ;;  %v2262_v1 = vld [vmem:[#allocation2 + $0x3c0] ss:$2 sm:$0xff]  ;;  %v5880_v20 = vpack.i.bf16 %v2655_v7, %v2653_v3  ;;  %v5875_v28 = vpack.i.bf16 %v2591_v16, %v2589_v60  ;;  %v2663_v16 = vld [vmem:[#allocation2 + $0x5d0] ss:$2 sm:$0xff]  ;;  %v2725_v41 = vld [vmem:[#allocation2 + $0x5a1] ss:$2 sm:$0xff] }
 0x362   : > { %5277 = vmatmul.msk.bf16.gmra.mxu3 %vm1941_vm0, %v3841_v23  ;;  %v3804_v34 = vpack.c.bf16 %v3734_v32, %v3733_v31  ;;  %5831 = vrot.lane.b32.xlu0 %v5830_v29, %s6067_s15  ;;  %v5855_v29 = vpack.i.bf16 %v2711_v17, %v2709_v49  ;;  %v5870_v3 = vpack.i.bf16 %v2715_v58, %v2713_v52  ;;  %v2661_v60 = vld [vmem:[#allocation2 + $0x5a0] ss:$2 sm:$0xff] }
 0x363   : > { %5836 = vrot.lane.b32.xlu1 %v5835_v26, %s6068_s16  ;;  %5811 = vrot.lane.b32.xlu2 %v5810_v30, %s6069_s12  ;;  %v7556_v32 = vpop.f32.mrf.mxu3 }
 0x364   : > { %4108 = vmatmul.bf16.gmra.mxu2 %v3804_v34 }
 0x367   : > { %v7552_v27 = vpop.f32.mrf.mxu1 }
 0x36a   : > { %5846 = vrot.lane.b32.xlu0 %v5845_v50, %s6067_s15 }
 0x36b   : > { %5851 = vrot.lane.b32.xlu1 %v5850_v48, %s6068_s16  ;;  %5826 = vrot.lane.b32.xlu2 %v5825_v51, %s6069_s12 }
 0x36d   : > { %v5672_v54 = vpop.permute.xlu2 %5671 }
 0x36e   : > { %v5674_v21 = vunpack.i.h.bf16 %v5672_v54  ;;  %v5673_v22 = vunpack.i.l.bf16 %v5672_v54 }
 0x372   : > { %5278 = vmatmul.msk.bf16.gmra.mxu3 %vm1941_vm0, %v3844_v62  ;;  %5861 = vrot.lane.b32.xlu0 %v5860_v24, %s6067_s15 }
 0x373   : > { %5866 = vrot.lane.b32.xlu1 %v5865_v0, %s6068_s16  ;;  %5841 = vrot.lane.b32.xlu2 %v5840_v2, %s6069_s12 }
 0x374   : > { %v5652_v9 = vpop.permute.xlu0 %5651 }
 0x375   : > { %v5662_v42 = vpop.permute.xlu1 %5661  ;;  %v5677_v10 = vpop.permute.xlu2 %5676  ;;  %v5654_v11 = vunpack.i.h.bf16 %v5652_v9  ;;  %v5653_v13 = vunpack.i.l.bf16 %v5652_v9 }
 0x376   : > { %v5664_v33 = vunpack.i.h.bf16 %v5662_v42  ;;  %v5663_v46 = vunpack.i.l.bf16 %v5662_v42  ;;  %v5679_v62 = vunpack.i.h.bf16 %v5677_v10  ;;  %v5678_v0 = vunpack.i.l.bf16 %v5677_v10 }
 0x377   : > { %v3587_v23 = vsel %vm1941_vm0, %v2264_v18, %v5654_v11  ;;  %v3586_v26 = vsel %vm1941_vm0, %v2262_v1, %v5653_v13  ;;  %v5890_v42 = vpack.i.bf16 %v2595_v56, %v2593_v55  ;;  %v7572_v11 = vpop.f32.mrf.mxu1 }
 0x378   : > { %v3618_v30 = vsel %vm1027_vm2, %v3586_v26, %v5663_v46  ;;  %v3619_v31 = vsel %vm1027_vm2, %v3587_v23, %v5664_v33  ;;  %v7567_v46 = vpop.f32.mrf.mxu3  ;;  %v2597_v26 = vld [vmem:[#allocation2 + $0x58a] ss:$2 sm:$0xff] }
 0x379   : > { %v3651_v34 = vsel %vm3632_vm4, %v3618_v30, %v5673_v22  ;;  %v3652_v37 = vsel %vm3632_vm4, %v3619_v31, %v5674_v21  ;;  %v2717_v21 = vld [vmem:[#allocation2 + $0x4b1] ss:$2 sm:$0xff]  ;;  %v2266_v30 = vld [vmem:[#allocation2 + $0x420] ss:$2 sm:$0xff]  ;;  %v2268_v31 = vld [vmem:[#allocation2 + $0x450] ss:$2 sm:$0xff] }
 0x37a   : > { %5876 = vrot.lane.b32.xlu0 %v5875_v28, %s6067_s15  ;;  %v3824_v38 = vpack.c.bf16 %v3652_v37, %v3651_v34  ;;  %v2599_v28 = vld [vmem:[#allocation2 + $0x5ba] ss:$2 sm:$0xff]  ;;  %v5910_v34 = vpack.i.bf16 %v2663_v16, %v2661_v60 }
 0x37b   : > { %5881 = vrot.lane.b32.xlu1 %v5880_v20, %s6068_s16  ;;  %5856 = vrot.lane.b32.xlu2 %v5855_v29, %s6069_s12  ;;  %v2719_v29 = vld [vmem:[#allocation2 + $0x4e1] ss:$2 sm:$0xff] }
 0x37c   : > { %v5657_v50 = vpop.permute.xlu0 %5656  ;;  %4054 = vmatmul.bf16.gmra.mxu1 %v3824_v38 }
 0x37d   : > { %v5667_v39 = vpop.permute.xlu1 %5666  ;;  %v5692_v51 = vpop.permute.xlu2 %5691  ;;  %v5659_v53 = vunpack.i.h.bf16 %v5657_v50  ;;  %v5658_v54 = vunpack.i.l.bf16 %v5657_v50 }
 0x37e   : > { %v5669_v48 = vunpack.i.h.bf16 %v5667_v39  ;;  %v5668_v4 = vunpack.i.l.bf16 %v5667_v39  ;;  %v5694_v37 = vunpack.i.h.bf16 %v5692_v51  ;;  %v5693_v38 = vunpack.i.l.bf16 %v5692_v51 }
 0x37f   : > { %v3672_v24 = vsel %vm1941_vm0, %v2495_v59, %v5659_v53  ;;  %v3671_v2 = vsel %vm1941_vm0, %v2493_v5, %v5658_v54  ;;  %v7586_v54 = vpop.f32.mrf.mxu1  ;;  %v2665_v5 = vld [vmem:[#allocation2 + $0x600] ss:$2 sm:$0xff]  ;;  %v2667_v59 = vld [vmem:[#allocation2 + $0x630] ss:$2 sm:$0xff] }
 0x380   : > { %v3703_v7 = vsel %vm1027_vm2, %v3671_v2, %v5668_v4  ;;  %v3704_v33 = vsel %vm1027_vm2, %v3672_v24, %v5669_v48  ;;  %v5905_v48 = vpack.i.bf16 %v2599_v28, %v2597_v26  ;;  %v5885_v4 = vpack.i.bf16 %v2719_v29, %v2717_v21  ;;  %v7590_v56 = vpop.f32.mrf.mxu3  ;;  %v2721_v2 = vld [vmem:[#allocation2 + $0x541] ss:$2 sm:$0xff] }
 0x381   : > { %v3735_v9 = vsel %vm3632_vm4, %v3703_v7, %v5678_v0  ;;  %v3736_v49 = vsel %vm3632_vm4, %v3704_v33, %v5679_v62  ;;  %v2601_v7 = vld [vmem:[#allocation2 + $0x5ea] ss:$2 sm:$0xff]  ;;  %v2603_v33 = vld [vmem:[#allocation2 + $0x61a] ss:$2 sm:$0xff] }
 0x382   : > { %5891 = vrot.lane.b32.xlu0 %v5890_v42, %s6067_s15  ;;  %v3807_v10 = vpack.c.bf16 %v3736_v49, %v3735_v9  ;;  %v2723_v9 = vld [vmem:[#allocation2 + $0x571] ss:$2 sm:$0xff] }
 0x383   : > { %5896 = vrot.lane.b32.xlu1 %v5895_v61, %s6068_s16  ;;  %5871 = vrot.lane.b32.xlu2 %v5870_v3, %s6069_s12  ;;  %v2497_v49 = vld [vmem:[#allocation2 + $0x1c9] ss:$2 sm:$0xff]  ;;  %v5900_v21 = vpack.i.bf16 %v2723_v9, %v2721_v2 }
 0x384   : > { %v5682_v1 = vpop.permute.xlu0 %5681  ;;  %4113 = vmatmul.bf16.gmra.mxu2 %v3807_v10  ;;  %v2499_v10 = vld [vmem:[#allocation2 + $0x1f9] ss:$2 sm:$0xff] }
 0x385   : > { %v5687_v13 = vpop.permute.xlu1 %5686  ;;  %v5707_v20 = vpop.permute.xlu2 %5706  ;;  %v5684_v22 = vunpack.i.h.bf16 %v5682_v1  ;;  %v5683_v23 = vunpack.i.l.bf16 %v5682_v1  ;;  %v5920_v1 = vpack.i.bf16 %v2603_v33, %v2601_v7 }
 0x386   : > { %v5689_v17 = vunpack.i.h.bf16 %v5687_v13  ;;  %v5688_v18 = vunpack.i.l.bf16 %v5687_v13  ;;  %v5925_v13 = vpack.i.bf16 %v2667_v59, %v2665_v5  ;;  %v5709_v60 = vunpack.i.h.bf16 %v5707_v20 }
 0x387   : > { %v3589_v39 = vsel %vm1941_vm0, %v2268_v31, %v5684_v22  ;;  %v3588_v40 = vsel %vm1941_vm0, %v2266_v30, %v5683_v23  ;;  %v5708_v16 = vunpack.i.l.bf16 %v5707_v20  ;;  %v2669_v31 = vld [vmem:[#allocation2 + $0x660] ss:$2 sm:$0xff] }
 0x388   : > { %v3620_v50 = vsel %vm1027_vm2, %v3588_v40, %v5688_v18  ;;  %v3621_v52 = vsel %vm1027_vm2, %v3589_v39, %v5689_v17  ;;  %v7601_v29 = vpop.f32.mrf.mxu3 }
 0x389   : > { %v3653_v53 = vsel %vm3632_vm4, %v3620_v50, %v5693_v38  ;;  %v3654_v51 = vsel %vm3632_vm4, %v3621_v52, %v5694_v37  ;;  %v2605_v50 = vld [vmem:[#allocation2 + $0x64a] ss:$2 sm:$0xff]  ;;  %v2607_v52 = vld [vmem:[#allocation2 + $0x67a] ss:$2 sm:$0xff] }
 0x38a   : > { %5906 = vrot.lane.b32.xlu0 %v5905_v48, %s6067_s15  ;;  %v3827_v55 = vpack.c.bf16 %v3654_v51, %v3653_v53  ;;  %v2727_v53 = vld [vmem:[#allocation2 + $0x5d1] ss:$2 sm:$0xff]  ;;  %v7603_v51 = vpop.f32.mrf.mxu1  ;;  %v5935_v2 = vpack.i.bf16 %v2607_v52, %v2605_v50 }
 0x38b   : > { %5911 = vrot.lane.b32.xlu1 %v5910_v34, %s6068_s16  ;;  %5886 = vrot.lane.b32.xlu2 %v5885_v4, %s6069_s12  ;;  %v2671_v34 = vld [vmem:[#allocation2 + $0x690] ss:$2 sm:$0xff] }
 0x38c   : > { %v5697_v0 = vpop.permute.xlu0 %5696  ;;  %4059 = vmatmul.bf16.gmra.mxu1 %v3827_v55  ;;  %v2270_v55 = vld [vmem:[#allocation2 + $0x480] ss:$2 sm:$0xff]  ;;  %v5940_v5 = vpack.i.bf16 %v2671_v34, %v2669_v31 }
 0x38d   : > { %v5702_v58 = vpop.permute.xlu1 %5701  ;;  %v5722_v24 = vpop.permute.xlu2 %5721  ;;  %v5699_v42 = vunpack.i.h.bf16 %v5697_v0  ;;  %v5698_v3 = vunpack.i.l.bf16 %v5697_v0 }
 0x38e   : > { %v5704_v61 = vunpack.i.h.bf16 %v5702_v58  ;;  %v5703_v62 = vunpack.i.l.bf16 %v5702_v58  ;;  %v2272_v58 = vld [vmem:[#allocation2 + $0x4b0] ss:$2 sm:$0xff]  ;;  %v5724_v59 = vunpack.i.h.bf16 %v5722_v24 }
 0x38f   : > { %v3674_v17 = vsel %vm1941_vm0, %v2499_v10, %v5699_v42  ;;  %v3673_v18 = vsel %vm1941_vm0, %v2497_v49, %v5698_v3  ;;  %v5915_v42 = vpack.i.bf16 %v2727_v53, %v2725_v41 }
 0x390   : > { %v3705_v22 = vsel %vm1027_vm2, %v3673_v18, %v5703_v62  ;;  %v3706_v23 = vsel %vm1027_vm2, %v3674_v17, %v5704_v61  ;;  %v5723_v61 = vunpack.i.l.bf16 %v5722_v24  ;;  %v7614_v17 = vpop.f32.mrf.mxu3 }
 0x391   : > { %v3737_v26 = vsel %vm3632_vm4, %v3705_v22, %v5708_v16  ;;  %v3738_v28 = vsel %vm3632_vm4, %v3706_v23, %v5709_v60  ;;  %v2731_v22 = vld [vmem:[#allocation2 + $0x631] ss:$2 sm:$0xff] }
 0x392   : > { %5921 = vrot.lane.b32.xlu0 %v5920_v1, %s6067_s15  ;;  %v3810_v20 = vpack.c.bf16 %v3738_v28, %v3737_v26  ;;  %v7616_v23 = vpop.f32.mrf.mxu1  ;;  %v2501_v26 = vld [vmem:[#allocation2 + $0x229] ss:$2 sm:$0xff]  ;;  %v2503_v28 = vld [vmem:[#allocation2 + $0x259] ss:$2 sm:$0xff] }
 0x393   : > { %5926 = vrot.lane.b32.xlu1 %v5925_v13, %s6068_s16  ;;  %5901 = vrot.lane.b32.xlu2 %v5900_v21, %s6069_s12  ;;  %v2729_v21 = vld [vmem:[#allocation2 + $0x601] ss:$2 sm:$0xff] }
 0x394   : > { %v5712_v39 = vpop.permute.xlu0 %5711  ;;  %4118 = vmatmul.bf16.gmra.mxu2 %v3810_v20 }
 0x395   : > { %v5717_v30 = vpop.permute.xlu1 %5716  ;;  %v5737_v40 = vpop.permute.xlu2 %5736  ;;  %v5714_v48 = vunpack.i.h.bf16 %v5712_v39  ;;  %v5713_v4 = vunpack.i.l.bf16 %v5712_v39 }
 0x396   : > { %v5719_v37 = vunpack.i.h.bf16 %v5717_v30  ;;  %v5718_v38 = vunpack.i.l.bf16 %v5717_v30  ;;  %v5739_v20 = vunpack.i.h.bf16 %v5737_v40  ;;  %v5738_v30 = vunpack.i.l.bf16 %v5737_v40  ;;  %v2274_v40 = vld [vmem:[#allocation2 + $0x510] ss:$2 sm:$0xff] }
 0x397   : > { %v3591_v62 = vsel %vm1941_vm0, %v2272_v58, %v5714_v48  ;;  %v3590_v0 = vsel %vm1941_vm0, %v2270_v55, %v5713_v4 }
 0x398   : > { %v3622_v3 = vsel %vm1027_vm2, %v3590_v0, %v5718_v38  ;;  %v3623_v7 = vsel %vm1027_vm2, %v3591_v62, %v5719_v37  ;;  %v5930_v37 = vpack.i.bf16 %v2731_v22, %v2729_v21  ;;  %v2733_v62 = vld [vmem:[#allocation2 + $0x661] ss:$2 sm:$0xff]  ;;  %v2735_v0 = vld [vmem:[#allocation2 + $0x691] ss:$2 sm:$0xff] }
 0x399   : > { %v3655_v33 = vsel %vm3632_vm4, %v3622_v3, %v5723_v61  ;;  %v3656_v9 = vsel %vm3632_vm4, %v3623_v7, %v5724_v59 }
 0x39a   : > { %5936 = vrot.lane.b32.xlu0 %v5935_v2, %s6067_s15  ;;  %v3830_v24 = vpack.c.bf16 %v3656_v9, %v3655_v33  ;;  %v2276_v2 = vld [vmem:[#allocation2 + $0x540] ss:$2 sm:$0xff]  ;;  %v7629_v9 = vpop.f32.mrf.mxu1 }
 0x39b   : > { %5941 = vrot.lane.b32.xlu1 %v5940_v5, %s6068_s16  ;;  %5916 = vrot.lane.b32.xlu2 %v5915_v42, %s6069_s12  ;;  %v7625_v5 = vpop.f32.mrf.mxu3 }
 0x39c   : > { %v5727_v60 = vpop.permute.xlu0 %5726  ;;  %4064 = vmatmul.bf16.gmra.mxu1 %v3830_v24  ;;  %v5945_v24 = vpack.i.bf16 %v2735_v0, %v2733_v62 }
 0x39d   : > { %v5732_v49 = vpop.permute.xlu1 %5731  ;;  %v5752_v16 = vpop.permute.xlu2 %5751  ;;  %v5729_v18 = vunpack.i.h.bf16 %v5727_v60  ;;  %v5728_v1 = vunpack.i.l.bf16 %v5727_v60 }
 0x39e   : > { %v5734_v10 = vunpack.i.h.bf16 %v5732_v49  ;;  %v5733_v13 = vunpack.i.l.bf16 %v5732_v49  ;;  %v5754_v42 = vunpack.i.h.bf16 %v5752_v16  ;;  %v5753_v3 = vunpack.i.l.bf16 %v5752_v16 }
 0x39f   : > { %v3676_v31 = vsel %vm1941_vm0, %v2503_v28, %v5729_v18  ;;  %v3675_v34 = vsel %vm1941_vm0, %v2501_v26, %v5728_v1 }
 0x3a0   : > { %v3707_v38 = vsel %vm1027_vm2, %v3675_v34, %v5733_v13  ;;  %v3708_v39 = vsel %vm1027_vm2, %v3676_v31, %v5734_v10  ;;  %v2507_v31 = vld [vmem:[#allocation2 + $0x2b9] ss:$2 sm:$0xff] }
 0x3a1   : > { %v3739_v41 = vsel %vm3632_vm4, %v3707_v38, %v5738_v30  ;;  %v3740_v48 = vsel %vm3632_vm4, %v3708_v39, %v5739_v20  ;;  %v2505_v30 = vld [vmem:[#allocation2 + $0x289] ss:$2 sm:$0xff] }
 0x3a2   : > { %v3813_v4 = vpack.c.bf16 %v3740_v48, %v3739_v41  ;;  %v7640_v48 = vpop.f32.mrf.mxu1 }
 0x3a3   : > { %5931 = vrot.lane.b32.xlu2 %v5930_v37, %s6069_s12  ;;  %v7636_v34 = vpop.f32.mrf.mxu3 }
 0x3a4   : > { %v5742_v55 = vpop.permute.xlu0 %5741  ;;  %4123 = vmatmul.bf16.gmra.mxu2 %v3813_v4 }
 0x3a5   : > { %v5747_v50 = vpop.permute.xlu1 %5746  ;;  %v5767_v58 = vpop.permute.xlu2 %5766  ;;  %v5744_v59 = vunpack.i.h.bf16 %v5742_v55  ;;  %v5743_v61 = vunpack.i.l.bf16 %v5742_v55 }
 0x3a6   : > { %v5749_v52 = vunpack.i.h.bf16 %v5747_v50  ;;  %v5748_v53 = vunpack.i.l.bf16 %v5747_v50  ;;  %v5769_v37 = vunpack.i.h.bf16 %v5767_v58  ;;  %v5768_v38 = vunpack.i.l.bf16 %v5767_v58 }
 0x3a7   : > { %v3593_v7 = vsel %vm1941_vm0, %v2276_v2, %v5744_v59  ;;  %v3592_v33 = vsel %vm1941_vm0, %v2274_v40, %v5743_v61 }
 0x3a8   : > { %v3624_v49 = vsel %vm1027_vm2, %v3592_v33, %v5748_v53  ;;  %v3625_v10 = vsel %vm1027_vm2, %v3593_v7, %v5749_v52 }
 0x3a9   : > { %v3657_v13 = vsel %vm3632_vm4, %v3624_v49, %v5753_v3  ;;  %v3658_v60 = vsel %vm3632_vm4, %v3625_v10, %v5754_v42  ;;  %v2278_v42 = vld [vmem:[#allocation2 + $0x570] ss:$2 sm:$0xff]  ;;  %v2280_v3 = vld [vmem:[#allocation2 + $0x5a0] ss:$2 sm:$0xff] }
 0x3aa   : > { %v3833_v18 = vpack.c.bf16 %v3658_v60, %v3657_v13 }
 0x3ab   : > { %5946 = vrot.lane.b32.xlu2 %v5945_v24, %s6069_s12  ;;  %v7650_v60 = vpop.f32.mrf.mxu3  ;;  %s6016_s12 = scalar_lea.hbm %s8085_s11, 512 }
 0x3ac   : > { %v5757_v22 = vpop.permute.xlu0 %5756  ;;  %4069 = vmatmul.bf16.gmra.mxu1 %v3833_v18 }
 0x3ad   : > { %v5762_v1 = vpop.permute.xlu1 %5761  ;;  %v5782_v26 = vpop.permute.xlu2 %5781  ;;  %v5759_v28 = vunpack.i.h.bf16 %v5757_v22  ;;  %v5758_v20 = vunpack.i.l.bf16 %v5757_v22 }
 0x3ae   : > { %v5764_v16 = vunpack.i.h.bf16 %v5762_v1  ;;  %v5763_v21 = vunpack.i.l.bf16 %v5762_v1  ;;  %v5784_v7 = vunpack.i.h.bf16 %v5782_v26  ;;  %v5783_v33 = vunpack.i.l.bf16 %v5782_v26 }
 0x3af   : > { %v3678_v39 = vsel %vm1941_vm0, %v2507_v31, %v5759_v28  ;;  %v3677_v41 = vsel %vm1941_vm0, %v2505_v30, %v5758_v20  ;;  %v4392_v30 = vld [vmem:[%s6222_s13] ss:$2 sm:$0xff] }
 0x3b0   : > { %v3709_v4 = vsel %vm1027_vm2, %v3677_v41, %v5763_v21  ;;  %v3710_v50 = vsel %vm1027_vm2, %v3678_v39, %v5764_v16  ;;  %v7654_v16 = vpop.f32.mrf.mxu1  ;;  %v5279_v31 = vld [vmem:[%s6222_s13 + $0x20] ss:$2 sm:$0xff]  ;;  %v2509_v39 = vld [vmem:[#allocation2 + $0x2e9] ss:$2 sm:$0xff]  ;;  %v2511_v41 = vld [vmem:[#allocation2 + $0x319] ss:$2 sm:$0xff] }
 0x3b1   : > { %v3741_v52 = vsel %vm3632_vm4, %v3709_v4, %v5768_v38  ;;  %v3742_v53 = vsel %vm3632_vm4, %v3710_v50, %v5769_v37  ;;  %v4463_v50 = vpack.c.bf16 %v5279_v31, %v4392_v30 }
 0x3b2   : > { %v3816_v40 = vpack.c.bf16 %v3742_v53, %v3741_v52 }
 0x3b3   : > { %5326 = vmatmul.msk.bf16.vlgmr.msra.gmra.mxu3 %vm1027_vm2, %v4463_v50 }
 0x3b4   : > { %v5772_v62 = vpop.permute.xlu0 %5771  ;;  %4128 = vmatmul.bf16.gmra.mxu2 %v3816_v40 }
 0x3b5   : > { %v5777_v55 = vpop.permute.xlu1 %5776  ;;  %v5797_v58 = vpop.permute.xlu2 %5796  ;;  %v5774_v0 = vunpack.i.h.bf16 %v5772_v62  ;;  %v5773_v2 = vunpack.i.l.bf16 %v5772_v62 }
 0x3b6   : > { %v5779_v59 = vunpack.i.h.bf16 %v5777_v55  ;;  %v5778_v61 = vunpack.i.l.bf16 %v5777_v55  ;;  %v5799_v52 = vunpack.i.h.bf16 %v5797_v58  ;;  %v5798_v53 = vunpack.i.l.bf16 %v5797_v58 }
 0x3b7   : > { %v3595_v24 = vsel %vm1941_vm0, %v2280_v3, %v5774_v0  ;;  %v3594_v49 = vsel %vm1941_vm0, %v2278_v42, %v5773_v2  ;;  %v7667_v3 = vpop.f32.mrf.mxu3 }
 0x3b8   : > { %v3626_v10 = vsel %vm1027_vm2, %v3594_v49, %v5778_v61  ;;  %v3627_v13 = vsel %vm1027_vm2, %v3595_v24, %v5779_v59  ;;  %v7665_v2 = vpop.f32.mrf.mxu1  ;;  %v4099_v49 = vpop.f32.mrf.mxu2 }
 0x3b9   : > { %v3659_v18 = vsel %vm3632_vm4, %v3626_v10, %v5783_v33  ;;  %v3660_v1 = vsel %vm3632_vm4, %v3627_v13, %v5784_v7 }
 0x3ba   : > { %v3836_v21 = vpack.c.bf16 %v3660_v1, %v3659_v18  ;;  %v2282_v18 = vld [vmem:[#allocation2 + $0x5d0] ss:$2 sm:$0xff]  ;;  %v2284_v1 = vld [vmem:[#allocation2 + $0x600] ss:$2 sm:$0xff] }
 0x3bc   : > { %v5787_v20 = vpop.permute.xlu0 %5786  ;;  %4074 = vmatmul.bf16.gmra.mxu1 %v3836_v21 }
 0x3bd   : > { %v5792_v22 = vpop.permute.xlu1 %5791  ;;  %v5789_v37 = vunpack.i.h.bf16 %v5787_v20  ;;  %v5788_v38 = vunpack.i.l.bf16 %v5787_v20  ;;  %v5812_v4 = vpop.permute.xlu2 %5811 }
 0x3be   : > { %v5794_v26 = vunpack.i.h.bf16 %v5792_v22  ;;  %v5793_v28 = vunpack.i.l.bf16 %v5792_v22  ;;  %v5814_v21 = vunpack.i.h.bf16 %v5812_v4  ;;  %v5813_v22 = vunpack.i.l.bf16 %v5812_v4  ;;  %v5280_v4 = vld [vmem:[%s6222_s13 + $0x40] ss:$2 sm:$0xff] }
 0x3bf   : > { %v3680_v40 = vsel %vm1941_vm0, %v2511_v41, %v5789_v37  ;;  %v3679_v55 = vsel %vm1941_vm0, %v2509_v39, %v5788_v38 }
 0x3c0   : > { %v3711_v59 = vsel %vm1027_vm2, %v3679_v55, %v5793_v28  ;;  %v3712_v61 = vsel %vm1027_vm2, %v3680_v40, %v5794_v26  ;;  %v5281_v40 = vld [vmem:[%s6222_s13 + $0x60] ss:$2 sm:$0xff]  ;;  %v7677_v55 = vpop.f32.mrf.mxu1 }
 0x3c1   : > { %v3743_v62 = vsel %vm3632_vm4, %v3711_v59, %v5798_v53  ;;  %v3744_v0 = vsel %vm3632_vm4, %v3712_v61, %v5799_v52  ;;  %v7679_v59 = vpop.f32.mrf.mxu3 }
 0x3c2   : > { %v3819_v42 = vpack.c.bf16 %v3744_v0, %v3743_v62  ;;  %v2513_v0 = vld [vmem:[#allocation2 + $0x379] ss:$2 sm:$0xff] }
 0x3c4   : > { %v5802_v24 = vpop.permute.xlu0 %5801  ;;  %4133 = vmatmul.bf16.gmra.mxu2 %v3819_v42  ;;  %v2515_v42 = vld [vmem:[#allocation2 + $0x3a9] ss:$2 sm:$0xff] }
 0x3c5   : > { %v5807_v58 = vpop.permute.xlu1 %5806  ;;  %v5804_v10 = vunpack.i.h.bf16 %v5802_v24  ;;  %v5803_v13 = vunpack.i.l.bf16 %v5802_v24  ;;  %v5827_v20 = vpop.permute.xlu2 %5826 }
 0x3c6   : > { %v5809_v7 = vunpack.i.h.bf16 %v5807_v58  ;;  %v5808_v33 = vunpack.i.l.bf16 %v5807_v58  ;;  %v4464_v58 = vpack.c.bf16 %v5281_v40, %v5280_v4  ;;  %v5828_v24 = vunpack.i.l.bf16 %v5827_v20 }
 0x3c7   : > { %v3597_v26 = vsel %vm1941_vm0, %v2284_v1, %v5804_v10  ;;  %v3596_v28 = vsel %vm1941_vm0, %v2282_v18, %v5803_v13 }
 0x3c8   : > { %v3628_v30 = vsel %vm1027_vm2, %v3596_v28, %v5808_v33  ;;  %v3629_v31 = vsel %vm1027_vm2, %v3597_v26, %v5809_v7  ;;  %v4101_v7 = vpop.f32.mrf.mxu2  ;;  %v5829_v33 = vunpack.i.h.bf16 %v5827_v20  ;;  %5327 = vmatmul.msk.bf16.gmra.mxu3 %vm1027_vm2, %v4464_v58  ;;  %v4100_v58 = vadd.f32 %v4099_v49, %v7508_v35 }
 0x3c9   : > { %v3661_v37 = vsel %vm3632_vm4, %v3628_v30, %v5813_v22  ;;  %v3662_v38 = vsel %vm3632_vm4, %v3629_v31, %v5814_v21  ;;  %v7691_v40 = vpop.f32.mrf.mxu3 }
 0x3ca   : > { %v3839_v39 = vpack.c.bf16 %v3662_v38, %v3661_v37  ;;  %v7688_v38 = vpop.f32.mrf.mxu1 }
 0x3cc   : > { %v5817_v53 = vpop.permute.xlu0 %5816  ;;  %4079 = vmatmul.bf16.gmra.mxu1 %v3839_v39 }
 0x3cd   : > { %v5822_v41 = vpop.permute.xlu1 %5821  ;;  %v5819_v61 = vunpack.i.h.bf16 %v5817_v53  ;;  %v5818_v62 = vunpack.i.l.bf16 %v5817_v53  ;;  %v5842_v26 = vpop.permute.xlu2 %5841  ;;  %v2288_v53 = vld [vmem:[#allocation2 + $0x660] ss:$2 sm:$0xff] }
 0x3ce   : > { %v5824_v50 = vunpack.i.h.bf16 %v5822_v41  ;;  %v5823_v52 = vunpack.i.l.bf16 %v5822_v41 }
 0x3cf   : > { %v3682_v10 = vsel %vm1941_vm0, %v2515_v42, %v5819_v61  ;;  %v3681_v13 = vsel %vm1941_vm0, %v2513_v0, %v5818_v62  ;;  %v5844_v61 = vunpack.i.h.bf16 %v5842_v26  ;;  %v5843_v62 = vunpack.i.l.bf16 %v5842_v26 }
 0x3d0   : > { %v3713_v18 = vsel %vm1027_vm2, %v3681_v13, %v5823_v52  ;;  %v3714_v1 = vsel %vm1027_vm2, %v3682_v10, %v5824_v50  ;;  %v4102_v52 = vadd.f32 %v4101_v7, %v7523_v19  ;;  %v2286_v50 = vld [vmem:[#allocation2 + $0x630] ss:$2 sm:$0xff]  ;;  %v4104_v4 = vpop.f32.mrf.mxu2 }
 0x3d1   : > { %v3745_v21 = vsel %vm3632_vm4, %v3713_v18, %v5828_v24  ;;  %v3746_v22 = vsel %vm3632_vm4, %v3714_v1, %v5829_v33  ;;  %v4189_v1 = vadd.f32 %v7448_v36, %v4100_v58 }
 0x3d2   : > { %v3822_v28 = vpack.c.bf16 %v3746_v22, %v3745_v21  ;;  %v4191_v10 = vadd.f32 %v7461_v12, %v4102_v52  ;;  %v7705_v21 = vld [vmem:[%s8081_s7] ss:$0 sm:$0xff]  ;;  %v7710_v36 = vpop.f32.mrf.mxu1 }
 0x3d4   : > { %v5832_v20 = vpop.permute.xlu0 %5831  ;;  %4138 = vmatmul.bf16.gmra.mxu2 %v3822_v28  ;;  %v5282_v28 = vld [vmem:[%s6222_s13 + $0x80] ss:$2 sm:$0xff]  ;;  %v4273_v12 = vmul.f32 %v7705_v21, %v4191_v10 }
 0x3d5   : > { %v5837_v30 = vpop.permute.xlu1 %5836  ;;  %v5834_v39 = vunpack.i.h.bf16 %v5832_v20  ;;  %v5833_v41 = vunpack.i.l.bf16 %v5832_v20  ;;  %v5857_v35 = vpop.permute.xlu2 %5856  ;;  %v2519_v20 = vld [vmem:[#allocation2 + $0x409] ss:$2 sm:$0xff] }
 0x3d6   : > { %v5839_v31 = vunpack.i.h.bf16 %v5837_v30  ;;  %v5838_v37 = vunpack.i.l.bf16 %v5837_v30  ;;  %v5283_v30 = vld [vmem:[%s6222_s13 + $0xa0] ss:$2 sm:$0xff]  ;;  %v5859_v52 = vunpack.i.h.bf16 %v5857_v35 }
 0x3d7   : > { %v3599_v0 = vsel %vm1941_vm0, %v2288_v53, %v5834_v39  ;;  %v3598_v42 = vsel %vm1941_vm0, %v2286_v50, %v5833_v41  ;;  %v2517_v39 = vld [vmem:[#allocation2 + $0x3d9] ss:$2 sm:$0xff]  ;;  %v4465_v41 = vpack.c.bf16 %v5283_v30, %v5282_v28  ;;  %v5858_v50 = vunpack.i.l.bf16 %v5857_v35 }
 0x3d8   : > { %v3630_v33 = vsel %vm1027_vm2, %v3598_v42, %v5838_v37  ;;  %v3631_v24 = vsel %vm1027_vm2, %v3599_v0, %v5839_v31  ;;  %v7718_v0 = vld [vmem:[%s8082_s8] ss:$0 sm:$0xff] }
 0x3d9   : > { %v3663_v19 = vsel %vm3632_vm4, %v3630_v33, %v5843_v62  ;;  %v3664_v7 = vsel %vm3632_vm4, %v3631_v24, %v5844_v61  ;;  %v4272_v62 = vmul.f32 %v7705_v21, %v4189_v1  ;;  %5328 = vmatmul.msk.bf16.gmra.mxu3 %vm1027_vm2, %v4465_v41  ;;  %v4106_v33 = vpop.f32.mrf.mxu2  ;;  %v7723_v24 = vpop.f32.mrf.mxu3  ;;  %v4309_v10 = vadd.f32 %v7718_v0, %v4273_v12  ;;  %v2523_v41 = vld [vmem:[#allocation2 + $0x469] ss:$2 sm:$0xff] }
 0x3da   : > { %v3842_v13 = vpack.c.bf16 %v3664_v7, %v3663_v19  ;;  %v4107_v28 = vadd.f32 %v4106_v33, %v7544_v8  ;;  %v7730_v30 = vpop.f32.mrf.mxu1  ;;  %v5284_v33 = vld [vmem:[%s6222_s13 + $0xc0] ss:$2 sm:$0xff] }
 0x3dc   : > { %v5847_v26 = vpop.permute.xlu0 %5846  ;;  %4084 = vmatmul.bf16.gmra.mxu1 %v3842_v13 }
 0x3dd   : > { %v5852_v18 = vpop.permute.xlu1 %5851  ;;  %v5849_v31 = vunpack.i.h.bf16 %v5847_v26  ;;  %v5848_v37 = vunpack.i.l.bf16 %v5847_v26  ;;  %v5872_v8 = vpop.permute.xlu2 %5871 }
 0x3de   : > { %v5854_v49 = vunpack.i.h.bf16 %v5852_v18  ;;  %v5853_v22 = vunpack.i.l.bf16 %v5852_v18  ;;  %v4308_v18 = vadd.f32 %v7718_v0, %v4272_v62  ;;  %v4196_v62 = vadd.f32 %v7476_v47, %v4107_v28 }
 0x3df   : > { %v3684_v53 = vsel %vm1941_vm0, %v2519_v20, %v5849_v31  ;;  %v3683_v61 = vsel %vm1941_vm0, %v2517_v39, %v5848_v37  ;;  %v4105_v37 = vadd.f32 %v4104_v4, %v7535_v44  ;;  %v2521_v39 = vld [vmem:[#allocation2 + $0x439] ss:$2 sm:$0xff] }
 0x3e0   : > { %v3715_v42 = vsel %vm1027_vm2, %v3683_v61, %v5853_v22  ;;  %v3716_v58 = vsel %vm1027_vm2, %v3684_v53, %v5854_v49  ;;  %v4341_v49 = vmax.f32 %v4309_v10, 0.0  ;;  %v4340_v31 = vmax.f32 %v4308_v18, 0.0 }
 0x3e1   : > { %v3747_v19 = vsel %vm3632_vm4, %v3715_v42, %v5858_v50  ;;  %v3748_v7 = vsel %vm3632_vm4, %v3716_v58, %v5859_v52  ;;  %v7736_v42 = vpop.f32.mrf.mxu3  ;;  %v4194_v58 = vadd.f32 %v7471_v25, %v4105_v37  ;;  %v5873_v10 = vunpack.i.l.bf16 %v5872_v8 }
 0x3e2   : > { %v3825_v13 = vpack.c.bf16 %v3748_v7, %v3747_v19  ;;  %v4376_v61 = vpack.c.bf16 %v4341_v49, %v4340_v31  ;;  %v5285_v19 = vld [vmem:[%s6222_s13 + $0xe0] ss:$2 sm:$0xff]  ;;  %v5874_v7 = vunpack.i.h.bf16 %v5872_v8  ;;  %v7749_v25 = vpop.f32.mrf.mxu1 }
 0x3e3   : > { %v4466_v18 = vpack.c.bf16 %v5285_v19, %v5284_v33 }
 0x3e4   : > { %v5862_v1 = vpop.permute.xlu0 %5861  ;;  %4143 = vmatmul.bf16.gmra.mxu2 %v3825_v13  ;;  %v4275_v13 = vmul.f32 %v7705_v21, %v4196_v62 }
 0x3e5   : > { %v5867_v35 = vpop.permute.xlu1 %5866  ;;  %v5864_v22 = vunpack.i.h.bf16 %v5862_v1  ;;  %v5863_v26 = vunpack.i.l.bf16 %v5862_v1 }
 0x3e6   : > { %v5869_v20 = vunpack.i.h.bf16 %v5867_v35  ;;  %v5868_v12 = vunpack.i.l.bf16 %v5867_v35  ;;  %v4274_v35 = vmul.f32 %v7705_v21, %v4194_v58  ;;  %v2525_v58 = vld [vmem:[#allocation2 + $0x499] ss:$2 sm:$0xff] }
 0x3e7   : > { %v3686_v52 = vsel %vm1941_vm0, %v2523_v41, %v5864_v22  ;;  %v3685_v50 = vsel %vm1941_vm0, %v2521_v39, %v5863_v26  ;;  %v4109_v53 = vpop.f32.mrf.mxu2  ;;  %v4311_v22 = vadd.f32 %v7718_v0, %v4275_v13 }
 0x3e8   : > { %v3717_v44 = vsel %vm1027_vm2, %v3685_v50, %v5868_v12  ;;  %v3718_v4 = vsel %vm1027_vm2, %v3686_v52, %v5869_v20  ;;  %v4310_v31 = vadd.f32 %v7718_v0, %v4274_v35 }
 0x3e9   : > { %v3749_v47 = vsel %vm3632_vm4, %v3717_v44, %v5873_v10  ;;  %v3750_v1 = vsel %vm3632_vm4, %v3718_v4, %v5874_v7  ;;  %5329 = vmatmul.msk.bf16.gmra.mxu3 %vm1027_vm2, %v4466_v18  ;;  %v7753_v37 = vpop.f32.mrf.mxu3  ;;  %v4343_v41 = vmax.f32 %v4311_v22, 0.0  ;;  %v2527_v44 = vld [vmem:[#allocation2 + $0x4c9] ss:$2 sm:$0xff]  ;;  %v5887_v7 = vpop.permute.xlu2 %5886  ;;  %v5286_v18 = vld [vmem:[%s6222_s13 + $0x100] ss:$2 sm:$0xff] }
 0x3ea   : > { %v3828_v49 = vpack.c.bf16 %v3750_v1, %v3749_v47  ;;  %v4342_v50 = vmax.f32 %v4310_v31, 0.0  ;;  %v5287_v47 = vld [vmem:[%s6222_s13 + $0x120] ss:$2 sm:$0xff]  ;;  %v5889_v1 = vunpack.i.h.bf16 %v5887_v7  ;;  %v5888_v35 = vunpack.i.l.bf16 %v5887_v7  ;;  %v2531_v7 = vld [vmem:[#allocation2 + $0x559] ss:$2 sm:$0xff] }
 0x3ec   : > { %5350 = vmatmul.msk.bf16.vlgmr.msra.gmra.mxu1 %vm1941_vm0, %v4376_v61  ;;  %v5877_v26 = vpop.permute.xlu0 %5876  ;;  %v4110_v61 = vadd.f32 %v4109_v53, %v7552_v27  ;;  %v4377_v13 = vpack.c.bf16 %v4343_v41, %v4342_v50 }
 0x3ed   : > { %v5882_v20 = vpop.permute.xlu1 %5881  ;;  %v5879_v12 = vunpack.i.h.bf16 %v5877_v26  ;;  %v5878_v39 = vunpack.i.l.bf16 %v5877_v26  ;;  %v4467_v26 = vpack.c.bf16 %v5287_v47, %v5286_v18 }
 0x3ee   : > { %v5884_v62 = vunpack.i.h.bf16 %v5882_v20  ;;  %v5883_v8 = vunpack.i.l.bf16 %v5882_v20 }
 0x3ef   : > { %v4111_v28 = vpop.f32.mrf.mxu2  ;;  %v3688_v4 = vsel %vm1941_vm0, %v2527_v44, %v5879_v12  ;;  %v3687_v33 = vsel %vm1941_vm0, %v2525_v58, %v5878_v39 }
 0x3f0   : > { %v4112_v52 = vadd.f32 %v4111_v28, %v7572_v11  ;;  %v4199_v11 = vadd.f32 %v7482_v57, %v4110_v61  ;;  %v3719_v27 = vsel %vm1027_vm2, %v3687_v33, %v5883_v8  ;;  %v3720_v53 = vsel %vm1027_vm2, %v3688_v4, %v5884_v62  ;;  %v2529_v33 = vld [vmem:[#allocation2 + $0x529] ss:$2 sm:$0xff] }
 0x3f1   : > { %v3752_v28 = vsel %vm3632_vm4, %v3720_v53, %v5889_v1  ;;  %v5902_v18 = vpop.permute.xlu2 %5901 }
 0x3f2   : > { %v4201_v10 = vadd.f32 %v7491_v6, %v4112_v52  ;;  %v3751_v6 = vsel %vm3632_vm4, %v3719_v27, %v5888_v35  ;;  %v4276_v57 = vmul.f32 %v7705_v21, %v4199_v11 }
 0x3f3   : > { %v3831_v39 = vpack.c.bf16 %v3752_v28, %v3751_v6  ;;  %v5904_v6 = vunpack.i.h.bf16 %v5902_v18  ;;  %v5903_v28 = vunpack.i.l.bf16 %v5902_v18  ;;  %v2533_v18 = vld [vmem:[#allocation2 + $0x589] ss:$2 sm:$0xff] }
 0x3f4   : > { %4148 = vmatmul.bf16.gmra.mxu2 %v3828_v49  ;;  %v4277_v22 = vmul.f32 %v7705_v21, %v4201_v10  ;;  %v7769_v49 = vpop.f32.mrf.mxu3  ;;  %v5892_v12 = vpop.permute.xlu0 %5891  ;;  %v4312_v41 = vadd.f32 %v7718_v0, %v4276_v57 }
 0x3f5   : > { %v5897_v52 = vpop.permute.xlu1 %5896  ;;  %v5894_v50 = vunpack.i.h.bf16 %v5892_v12  ;;  %v5893_v61 = vunpack.i.l.bf16 %v5892_v12 }
 0x3f6   : > { %v4313_v20 = vadd.f32 %v7718_v0, %v4277_v22  ;;  %v4344_v58 = vmax.f32 %v4312_v41, 0.0  ;;  %v5899_v44 = vunpack.i.h.bf16 %v5897_v52  ;;  %v5898_v4 = vunpack.i.l.bf16 %v5897_v52 }
 0x3f7   : > { %v3690_v11 = vsel %vm1941_vm0, %v2531_v7, %v5894_v50  ;;  %v3689_v27 = vsel %vm1941_vm0, %v2529_v33, %v5893_v61 }
 0x3f8   : > { %v4345_v62 = vmax.f32 %v4313_v20, 0.0  ;;  %v3721_v35 = vsel %vm1027_vm2, %v3689_v27, %v5898_v4  ;;  %v3722_v22 = vsel %vm1027_vm2, %v3690_v11, %v5899_v44 }
 0x3f9   : > { %v7759_v19 = vpop.f32.mrf.mxu1  ;;  %5330 = vmatmul.msk.bf16.gmra.mxu3 %vm1027_vm2, %v4467_v26  ;;  %v5288_v26 = vld [vmem:[%s6222_s13 + $0x140] ss:$2 sm:$0xff]  ;;  %v3753_v12 = vsel %vm3632_vm4, %v3721_v35, %v5903_v28 }
 0x3fa   : > { %v4378_v47 = vpack.c.bf16 %v4345_v62, %v4344_v58 }
 0x3fc   : > { %5351 = vmatmul.msk.bf16.gmra.mxu1 %vm1941_vm0, %v4377_v13  ;;  %v7780_v13 = vpop.f32.mrf.mxu3  ;;  %v5907_v50 = vpop.permute.xlu0 %5906 }
 0x3fd   : > { %v5912_v58 = vpop.permute.xlu1 %5911  ;;  %v5909_v33 = vunpack.i.h.bf16 %v5907_v50  ;;  %v5908_v7 = vunpack.i.l.bf16 %v5907_v50 }
 0x3fe   : > { %v5913_v27 = vunpack.i.l.bf16 %v5912_v58 }
 0x401   : > { %v7775_v31 = vpop.f32.mrf.mxu1 }
 0x404   : > { %4153 = vmatmul.bf16.gmra.mxu2 %v3831_v39  ;;  %v3754_v39 = vsel %vm3632_vm4, %v3722_v22, %v5904_v6  ;;  %v5917_v6 = vpop.permute.xlu2 %5916 }
 0x405   : > { %v3834_v62 = vpack.c.bf16 %v3754_v39, %v3753_v12  ;;  %v5290_v39 = vld [vmem:[%s6222_s13 + $0x180] ss:$2 sm:$0xff]  ;;  %v5918_v50 = vunpack.i.l.bf16 %v5917_v6 }
 0x407   : > { %v4114_v8 = vpop.f32.mrf.mxu2 }
 0x408   : > { %v4115_v10 = vadd.f32 %v4114_v8, %v7586_v54  ;;  %v5289_v54 = vld [vmem:[%s6222_s13 + $0x160] ss:$2 sm:$0xff]  ;;  %v7800_v8 = vpop.f32.mrf.mxu3 }
 0x409   : > { %v7784_v53 = vpop.f32.mrf.mxu1  ;;  %v4468_v57 = vpack.c.bf16 %v5289_v54, %v5288_v26  ;;  %v3691_v26 = vsel %vm1941_vm0, %v2533_v18, %v5908_v7  ;;  %v5922_v7 = vpop.permute.xlu0 %5921 }
 0x40a   : > { %v4204_v1 = vadd.f32 %v7499_v15, %v4115_v10  ;;  %v5914_v10 = vunpack.i.h.bf16 %v5912_v58 }
 0x40b   : > { %5331 = vmatmul.msk.bf16.gmra.mxu3 %vm1027_vm2, %v4468_v57 }
 0x40c   : > { %5352 = vmatmul.msk.bf16.gmra.mxu1 %vm1941_vm0, %v4378_v47  ;;  %v4278_v41 = vmul.f32 %v7705_v21, %v4204_v1 }
 0x40e   : > { %v4314_v44 = vadd.f32 %v7718_v0, %v4278_v41  ;;  %v5291_v41 = vld [vmem:[%s6222_s13 + $0x1a0] ss:$2 sm:$0xff] }
 0x40f   : > { %v4116_v20 = vpop.f32.mrf.mxu2 }
 0x410   : > { %v4117_v15 = vadd.f32 %v4116_v20, %v7603_v51  ;;  %v4346_v47 = vmax.f32 %v4314_v44, 0.0  ;;  %v3723_v20 = vsel %vm1027_vm2, %v3691_v26, %v5913_v27 }
 0x411   : > { %v7797_v52 = vpop.f32.mrf.mxu1  ;;  %v3755_v58 = vsel %vm3632_vm4, %v3723_v20, %v5918_v50 }
 0x412   : > { %v4206_v61 = vadd.f32 %v7510_v43, %v4117_v15  ;;  %v2535_v43 = vld [vmem:[#allocation2 + $0x5b9] ss:$2 sm:$0xff]  ;;  %v7816_v15 = vpop.f32.mrf.mxu3 }
 0x413   : > { %v3692_v22 = vsel %vm1941_vm0, %v2535_v43, %v5909_v33  ;;  %v5924_v43 = vunpack.i.h.bf16 %v5922_v7 }
 0x414   : > { %v4279_v4 = vmul.f32 %v7705_v21, %v4206_v61  ;;  %4158 = vmatmul.bf16.gmra.mxu2 %v3834_v62  ;;  %v3724_v12 = vsel %vm1027_vm2, %v3692_v22, %v5914_v10  ;;  %v4469_v61 = vpack.c.bf16 %v5291_v41, %v5290_v39 }
 0x416   : > { %v4315_v51 = vadd.f32 %v7718_v0, %v4279_v4 }
 0x417   : > { %v4119_v11 = vpop.f32.mrf.mxu2 }
 0x418   : > { %v4347_v1 = vmax.f32 %v4315_v51, 0.0  ;;  %v4120_v35 = vadd.f32 %v4119_v11, %v7616_v23  ;;  %v5919_v23 = vunpack.i.h.bf16 %v5917_v6  ;;  %v5927_v11 = vpop.permute.xlu1 %5926  ;;  %v2537_v6 = vld [vmem:[#allocation2 + $0x5e9] ss:$2 sm:$0xff] }
 0x419   : > { %v7808_v54 = vpop.f32.mrf.mxu1  ;;  %v5928_v26 = vunpack.i.l.bf16 %v5927_v11 }
 0x41a   : > { %v4379_v28 = vpack.c.bf16 %v4347_v1, %v4346_v47  ;;  %v4209_v57 = vadd.f32 %v7521_v14, %v4120_v35  ;;  %v3756_v44 = vsel %vm3632_vm4, %v3724_v12, %v5919_v23  ;;  %v5923_v47 = vunpack.i.l.bf16 %v5922_v7  ;;  %v7829_v35 = vpop.f32.mrf.mxu3  ;;  %v5932_v23 = vpop.permute.xlu2 %5931 }
 0x41b   : > { %5332 = vmatmul.msk.bf16.gmra.mxu3 %vm1027_vm2, %v4469_v61  ;;  %v3837_v10 = vpack.c.bf16 %v3756_v44, %v3755_v58  ;;  %v5292_v44 = vld [vmem:[%s6222_s13 + $0x1c0] ss:$2 sm:$0xff] }
 0x41c   : > { %5353 = vmatmul.msk.bf16.gmra.mxu1 %vm1941_vm0, %v4379_v28  ;;  %v4280_v14 = vmul.f32 %v7705_v21, %v4209_v57  ;;  %v3693_v39 = vsel %vm1941_vm0, %v2537_v6, %v5923_v47  ;;  %v5937_v47 = vpop.permute.xlu0 %5936 }
 0x41e   : > { %v4316_v27 = vadd.f32 %v7718_v0, %v4280_v14  ;;  %v5293_v14 = vld [vmem:[%s6222_s13 + $0x1e0] ss:$2 sm:$0xff] }
 0x41f   : > { %v4121_v62 = vpop.f32.mrf.mxu2  ;;  %v4470_v7 = vpack.c.bf16 %v5293_v14, %v5292_v44 }
 0x420   : > { %v4122_v4 = vadd.f32 %v4121_v62, %v7629_v9  ;;  %v5929_v9 = vunpack.i.h.bf16 %v5927_v11  ;;  %v4348_v28 = vmax.f32 %v4316_v27, 0.0  ;;  %v3725_v62 = vsel %vm1027_vm2, %v3693_v39, %v5928_v26  ;;  %v2541_v39 = vld [vmem:[#allocation2 + $0x649] ss:$2 sm:$0xff] }
 0x421   : > { %v7823_v33 = vpop.f32.mrf.mxu1 }
 0x422   : > { %v4211_v51 = vadd.f32 %v7537_v45, %v4122_v4  ;;  %v2539_v45 = vld [vmem:[#allocation2 + $0x619] ss:$2 sm:$0xff]  ;;  %v5934_v4 = vunpack.i.h.bf16 %v5932_v23  ;;  %v5947_v14 = vpop.permute.xlu2 %5946 }
 0x423   : > { %v3694_v12 = vsel %vm1941_vm0, %v2539_v45, %v5924_v43  ;;  %v5939_v45 = vunpack.i.h.bf16 %v5937_v47 }
 0x424   : > { %v4281_v18 = vmul.f32 %v7705_v21, %v4211_v51  ;;  %4163 = vmatmul.bf16.gmra.mxu2 %v3837_v10  ;;  %v3726_v58 = vsel %vm1027_vm2, %v3694_v12, %v5929_v9 }
 0x425   : > { %v3758_v11 = vsel %vm3632_vm4, %v3726_v58, %v5934_v4 }
 0x426   : > { %v4317_v1 = vadd.f32 %v7718_v0, %v4281_v18  ;;  %v7847_v18 = vpop.f32.mrf.mxu3 }
 0x427   : > { %v4124_v22 = vpop.f32.mrf.mxu2 }
 0x428   : > { %v4349_v57 = vmax.f32 %v4317_v1, 0.0  ;;  %v4125_v20 = vadd.f32 %v4124_v22, %v7640_v48  ;;  %v5933_v48 = vunpack.i.l.bf16 %v5932_v23  ;;  %v5942_v22 = vpop.permute.xlu1 %5941  ;;  %v2543_v23 = vld [vmem:[#allocation2 + $0x679] ss:$2 sm:$0xff] }
 0x429   : > { %v7834_v41 = vpop.f32.mrf.mxu1  ;;  %v5943_v12 = vunpack.i.l.bf16 %v5942_v22 }
 0x42a   : > { %v4380_v50 = vpack.c.bf16 %v4349_v57, %v4348_v28  ;;  %v4214_v61 = vadd.f32 %v7542_v63, %v4125_v20  ;;  %v3757_v10 = vsel %vm3632_vm4, %v3725_v62, %v5933_v48  ;;  %v5938_v28 = vunpack.i.l.bf16 %v5937_v47 }
 0x42b   : > { %5333 = vmatmul.msk.bf16.gmra.mxu3 %vm1027_vm2, %v4470_v7  ;;  %v3840_v9 = vpack.c.bf16 %v3758_v11, %v3757_v10  ;;  %v5944_v57 = vunpack.i.h.bf16 %v5942_v22  ;;  %v3696_v62 = vsel %vm1941_vm0, %v2543_v23, %v5939_v45  ;;  %v5294_v11 = vld [vmem:[%s6222_s13 + $0x200] ss:$2 sm:$0xff] }
 0x42c   : > { %5354 = vmatmul.msk.bf16.gmra.mxu1 %vm1941_vm0, %v4380_v50  ;;  %v4282_v27 = vmul.f32 %v7705_v21, %v4214_v61  ;;  %v3695_v58 = vsel %vm1941_vm0, %v2541_v39, %v5938_v28 }
 0x42d   : > { %v3728_v10 = vsel %vm1027_vm2, %v3696_v62, %v5944_v57 }
 0x42e   : > { %v4318_v26 = vadd.f32 %v7718_v0, %v4282_v27  ;;  %v7860_v48 = vpop.f32.mrf.mxu3  ;;  %v5949_v27 = vunpack.i.h.bf16 %v5947_v14 }
 0x42f   : > { %v4126_v51 = vpop.f32.mrf.mxu2 }
 0x430   : > { %v4127_v63 = vadd.f32 %v4126_v51, %v7654_v16  ;;  %v4350_v50 = vmax.f32 %v4318_v26, 0.0  ;;  %v3727_v51 = vsel %vm1027_vm2, %v3695_v58, %v5943_v12  ;;  %v3760_v22 = vsel %vm3632_vm4, %v3728_v10, %v5949_v27  ;;  %v5296_v58 = vld [vmem:[%s6222_s13 + $0x240] ss:$2 sm:$0xff] }
 0x431   : > { %v7849_v43 = vpop.f32.mrf.mxu1 }
 0x432   : > { %v4216_v1 = vadd.f32 %v7556_v32, %v4127_v63  ;;  %v5948_v63 = vunpack.i.l.bf16 %v5947_v14  ;;  %v5297_v14 = vld [vmem:[%s6222_s13 + $0x260] ss:$2 sm:$0xff] }
 0x434   : > { %v4283_v6 = vmul.f32 %v7705_v21, %v4216_v1  ;;  %4168 = vmatmul.bf16.gmra.mxu2 %v3840_v9  ;;  %v3759_v9 = vsel %vm3632_vm4, %v3727_v51, %v5948_v63 }
 0x435   : > { %v3843_v28 = vpack.c.bf16 %v3760_v22, %v3759_v9 }
 0x436   : > { %v4319_v16 = vadd.f32 %v7718_v0, %v4283_v6 }
 0x437   : > { %v4129_v20 = vpop.f32.mrf.mxu2 }
 0x438   : > { %v4351_v32 = vmax.f32 %v4319_v16, 0.0  ;;  %v4130_v61 = vadd.f32 %v4129_v20, %v7665_v2  ;;  %v5295_v2 = vld [vmem:[%s6222_s13 + $0x220] ss:$2 sm:$0xff]  ;;  %v4560_v16 = vpop.f32.mrf.mxu3 }
 0x439   : > { %v7858_v44 = vpop.f32.mrf.mxu1  ;;  %v4471_v47 = vpack.c.bf16 %v5295_v2, %v5294_v11 }
 0x43a   : > { %v4381_v4 = vpack.c.bf16 %v4351_v32, %v4350_v50  ;;  %v4219_v7 = vadd.f32 %v7567_v46, %v4130_v61 }
 0x43b   : > { %5334 = vmatmul.msk.bf16.gmra.mxu3 %vm1027_vm2, %v4471_v47 }
 0x43c   : > { %5355 = vmatmul.msk.bf16.gmra.mxu1 %vm1941_vm0, %v4381_v4  ;;  %v4284_v26 = vmul.f32 %v7705_v21, %v4219_v7  ;;  %v4472_v4 = vpack.c.bf16 %v5297_v14, %v5296_v58 }
 0x43e   : > { %v4320_v57 = vadd.f32 %v7718_v0, %v4284_v26 }
 0x43f   : > { %v4131_v1 = vpop.f32.mrf.mxu2 }
 0x440   : > { %v4132_v46 = vadd.f32 %v4131_v1, %v7677_v55  ;;  %v4352_v23 = vmax.f32 %v4320_v57, 0.0 }
 0x441   : > { %v7873_v6 = vpop.f32.mrf.mxu1 }
 0x442   : > { %v4221_v45 = vadd.f32 %v7590_v56, %v4132_v46  ;;  %v4562_v56 = vpop.f32.mrf.mxu3 }
 0x444   : > { %v4285_v20 = vmul.f32 %v7705_v21, %v4221_v45  ;;  %4173 = vmatmul.bf16.gmra.mxu2 %v3843_v28  ;;  %v5298_v45 = vld [vmem:[%s6222_s13 + $0x280] ss:$2 sm:$0xff] }
 0x445   : > { %v5299_v28 = vld [vmem:[%s6222_s13 + $0x2a0] ss:$2 sm:$0xff] }
 0x446   : > { %v4321_v12 = vadd.f32 %v7718_v0, %v4285_v20  ;;  %v4473_v57 = vpack.c.bf16 %v5299_v28, %v5298_v45 }
 0x447   : > { %v4134_v39 = vpop.f32.mrf.mxu2 }
 0x448   : > { %v4353_v55 = vmax.f32 %v4321_v12, 0.0  ;;  %v4135_v50 = vadd.f32 %v4134_v39, %v7688_v38 }
 0x449   : > { %v7880_v32 = vpop.f32.mrf.mxu1 }
 0x44a   : > { %v4382_v61 = vpack.c.bf16 %v4353_v55, %v4352_v23  ;;  %v4224_v62 = vadd.f32 %v7601_v29, %v4135_v50 }
 0x44b   : > { %5335 = vmatmul.msk.bf16.gmra.mxu3 %vm1027_vm2, %v4472_v4  ;;  %v4565_v2 = vpop.f32.mrf.mxu3 }
 0x44c   : > { %5356 = vmatmul.msk.bf16.gmra.mxu1 %vm1941_vm0, %v4382_v61  ;;  %v4286_v51 = vmul.f32 %v7705_v21, %v4224_v62 }
 0x44e   : > { %v4322_v29 = vadd.f32 %v7718_v0, %v4286_v51 }
 0x44f   : > { %v4136_v7 = vpop.f32.mrf.mxu2 }
 0x450   : > { %v4137_v10 = vadd.f32 %v4136_v7, %v7710_v36  ;;  %v4354_v1 = vmax.f32 %v4322_v29, 0.0  ;;  %v5301_v29 = vld [vmem:[%s6222_s13 + $0x2e0] ss:$2 sm:$0xff] }
 0x451   : > { %v7889_v38 = vpop.f32.mrf.mxu1 }
 0x452   : > { %v4226_v11 = vadd.f32 %v7614_v17, %v4137_v10 }
 0x453   : > { %v7898_v46 = vpop.f32.mrf.mxu3 }
 0x454   : > { %v4287_v27 = vmul.f32 %v7705_v21, %v4226_v11  ;;  %v5300_v11 = vld [vmem:[%s6222_s13 + $0x2c0] ss:$2 sm:$0xff] }
 0x456   : > { %v4323_v63 = vadd.f32 %v7718_v0, %v4287_v27  ;;  %v4474_v27 = vpack.c.bf16 %v5301_v29, %v5300_v11 }
 0x457   : > { %v4139_v47 = vpop.f32.mrf.mxu2 }
 0x458   : > { %v4355_v9 = vmax.f32 %v4323_v63, 0.0  ;;  %v4140_v36 = vadd.f32 %v4139_v47, %v7730_v30 }
 0x459   : > { %v7896_v22 = vpop.f32.mrf.mxu1 }
 0x45a   : > { %v4383_v26 = vpack.c.bf16 %v4355_v9, %v4354_v1  ;;  %v4229_v17 = vadd.f32 %v7625_v5, %v4140_v36 }
 0x45b   : > { %5336 = vmatmul.msk.bf16.gmra.mxu3 %vm1027_vm2, %v4473_v57 }
 0x45c   : > { %5357 = vmatmul.msk.bf16.gmra.mxu1 %vm1941_vm0, %v4383_v26  ;;  %v4288_v12 = vmul.f32 %v7705_v21, %v4229_v17  ;;  %v7910_v55 = vpop.f32.mrf.mxu3 }
 0x45e   : > { %v4324_v5 = vadd.f32 %v7718_v0, %v4288_v12 }
 0x45f   : > { %v4141_v20 = vpop.f32.mrf.mxu2 }
 0x460   : > { %v4142_v39 = vadd.f32 %v4141_v20, %v7749_v25  ;;  %v4356_v58 = vmax.f32 %v4324_v5, 0.0  ;;  %v5303_v5 = vld [vmem:[%s6222_s13 + $0x320] ss:$2 sm:$0xff] }
 0x461   : > { %v7907_v30 = vpop.f32.mrf.mxu1 }
 0x462   : > { %v4231_v23 = vadd.f32 %v7636_v34, %v4142_v39 }
 0x464   : > { %v4289_v50 = vmul.f32 %v7705_v21, %v4231_v23  ;;  %v7917_v34 = vpop.f32.mrf.mxu3  ;;  %v5302_v23 = vld [vmem:[%s6222_s13 + $0x300] ss:$2 sm:$0xff] }
 0x466   : > { %v4325_v61 = vadd.f32 %v7718_v0, %v4289_v50  ;;  %v4475_v50 = vpack.c.bf16 %v5303_v5, %v5302_v23  ;;  %v5306_v23 = vld [vmem:[%s6222_s13 + $0x380] ss:$2 sm:$0xff] }
 0x467   : > { %v4144_v62 = vpop.f32.mrf.mxu2  ;;  %v5307_v5 = vld [vmem:[%s6222_s13 + $0x3a0] ss:$2 sm:$0xff] }
 0x468   : > { %v4357_v25 = vmax.f32 %v4325_v61, 0.0  ;;  %v4145_v14 = vadd.f32 %v4144_v62, %v7759_v19 }
 0x469   : > { %v4709_v4 = vpop.f32.mrf.mxu1 }
 0x46a   : > { %v4710_v7 = vadd.f32 %v4709_v4, %v4560_v16  ;;  %v4384_v51 = vpack.c.bf16 %v4357_v25, %v4356_v58  ;;  %v4234_v10 = vadd.f32 %v7650_v60, %v4145_v14 }
 0x46b   : > { %5337 = vmatmul.msk.bf16.gmra.mxu3 %vm1027_vm2, %v4474_v27 }
 0x46c   : > { %4789 = vst [vmem:[%s7920_s25] sm:$0xff] %v4710_v7  ;;  %5358 = vmatmul.msk.bf16.gmra.mxu1 %vm1941_vm0, %v4384_v51  ;;  %v4290_v19 = vmul.f32 %v7705_v21, %v4234_v10  ;;  %v4575_v9 = vpop.f32.mrf.mxu3 }
 0x46e   : > { %v4326_v36 = vadd.f32 %v7718_v0, %v4290_v19  ;;  %v5304_v19 = vld [vmem:[%s6222_s13 + $0x340] ss:$2 sm:$0xff] }
 0x46f   : > { %v4146_v63 = vpop.f32.mrf.mxu2 }
 0x470   : > { %v4147_v16 = vadd.f32 %v4146_v63, %v7775_v31  ;;  %v4358_v28 = vmax.f32 %v4326_v36, 0.0 }
 0x471   : > { %v4711_v47 = vpop.f32.mrf.mxu1 }
 0x472   : > { %v4236_v60 = vadd.f32 %v7667_v3, %v4147_v16  ;;  %v4712_v1 = vadd.f32 %v4711_v47, %v4562_v56  ;;  %v5305_v16 = vld [vmem:[%s6222_s13 + $0x360] ss:$2 sm:$0xff] }
 0x473   : > { %v4476_v47 = vpack.c.bf16 %v5305_v16, %v5304_v19 }
 0x474   : > { %v4291_v26 = vmul.f32 %v7705_v21, %v4236_v60  ;;  %4790 = vst [vmem:[%s7920_s25 + $0x8] sm:$0xff] %v4712_v1  ;;  %v7935_v39 = vpop.f32.mrf.mxu3 }
 0x476   : > { %v4327_v17 = vadd.f32 %v7718_v0, %v4291_v26 }
 0x477   : > { %v4149_v45 = vpop.f32.mrf.mxu2 }
 0x478   : > { %v4359_v31 = vmax.f32 %v4327_v17, 0.0  ;;  %v4150_v57 = vadd.f32 %v4149_v45, %v7784_v53 }
 0x479   : > { %v4714_v20 = vpop.f32.mrf.mxu1 }
 0x47a   : > { %v4715_v12 = vadd.f32 %v4714_v20, %v4565_v2  ;;  %v4385_v3 = vpack.c.bf16 %v4359_v31, %v4358_v28  ;;  %v4239_v56 = vadd.f32 %v7679_v59, %v4150_v57 }
 0x47b   : > { %5338 = vmatmul.msk.bf16.gmra.mxu3 %vm1027_vm2, %v4475_v50  ;;  %v4477_v50 = vpack.c.bf16 %v5307_v5, %v5306_v23 }
 0x47c   : > { %4791 = vst [vmem:[%s7920_s25 + $0x10] sm:$0xff] %v4715_v12  ;;  %5359 = vmatmul.msk.bf16.gmra.mxu1 %vm1941_vm0, %v4385_v3  ;;  %v4292_v62 = vmul.f32 %v7705_v21, %v4239_v56  ;;  %v4580_v25 = vpop.f32.mrf.mxu3 }
 0x47e   : > { %v4328_v14 = vadd.f32 %v7718_v0, %v4292_v62 }
 0x47f   : > { %v4151_v61 = vpop.f32.mrf.mxu2 }
 0x480   : > { %v4152_v58 = vadd.f32 %v4151_v61, %v7797_v52  ;;  %v4360_v52 = vmax.f32 %v4328_v14, 0.0 }
 0x481   : > { %v4716_v53 = vpop.f32.mrf.mxu1 }
 0x482   : > { %v4241_v2 = vadd.f32 %v7691_v40, %v4152_v58  ;;  %v4717_v59 = vadd.f32 %v4716_v53, %v7898_v46 }
 0x484   : > { %v4293_v4 = vmul.f32 %v7705_v21, %v4241_v2  ;;  %4792 = vst [vmem:[%s7920_s25 + $0x18] sm:$0xff] %v4717_v59  ;;  %v7953_v46 = vpop.f32.mrf.mxu3 }
 0x486   : > { %v4329_v7 = vadd.f32 %v7718_v0, %v4293_v4 }
 0x487   : > { %v4154_v51 = vpop.f32.mrf.mxu2 }
 0x488   : > { %v4361_v10 = vmax.f32 %v4329_v7, 0.0  ;;  %v4155_v11 = vadd.f32 %v4154_v51, %v7808_v54 }
 0x489   : > { %v4719_v29 = vpop.f32.mrf.mxu1 }
 0x48a   : > { %v4720_v40 = vadd.f32 %v4719_v29, %v7910_v55  ;;  %v4386_v27 = vpack.c.bf16 %v4361_v10, %v4360_v52  ;;  %v4244_v63 = vadd.f32 %v7723_v24, %v4155_v11  ;;  %v5308_v11 = vld [vmem:[%s6222_s13 + $0x3c0] ss:$2 sm:$0xff] }
 0x48b   : > { %5339 = vmatmul.msk.bf16.gmra.mxu3 %vm1027_vm2, %v4476_v47  ;;  %v5309_v29 = vld [vmem:[%s6222_s13 + $0x3e0] ss:$2 sm:$0xff]  ;;  %s5403_s13 = sshll.u32 %s6153_s21, 8 }
 0x48c   : > { %4793 = vst [vmem:[%s7920_s25 + $0x20] sm:$0xff] %v4720_v40  ;;  %5360 = vmatmul.msk.bf16.gmra.mxu1 %vm1941_vm0, %v4386_v27  ;;  %v4294_v1 = vmul.f32 %v7705_v21, %v4244_v63  ;;  %v4478_v27 = vpack.c.bf16 %v5309_v29, %v5308_v11  ;;  %s4834_s28 = scalar_lea.hbm %s8085_s11, %s5403_s13 }
 0x48d   : > { %s4837_s17 = sshll.u32 %s4834_s28, 4  ;;  %s4838_s17 = int_to_ptr.hbm [resolvable:$true] %s4837_s17 }
 0x48e   : > { %v4585_v26 = vpop.f32.mrf.mxu3  ;;  %v4330_v17 = vadd.f32 %v7718_v0, %v4294_v1  ;;  %s6010_s19 = sshra.s32 %s4838_s17, 4  ;;  %s6011_s19 = int_to_ptr.hbm [resolvable:$true] %s6010_s19 }
 0x48f   : > { %v4156_v60 = vpop.f32.mrf.mxu2  ;;  %s6012_s21 = scalar_lea.hbm %s6011_s19, 256  ;;  %p6017_p0 = scmp.lt.s32.totalorder %s6011_s19, %s8085_s11 }
 0x490   : > { %v4157_v54 = vadd.f32 %v4156_v60, %v7823_v33  ;;  %v4362_v33 = vmax.f32 %v4330_v17, 0.0  ;;  %p6013_p6 = scmp.ne.s32.totalorder %s6011_s19, %s6012_s21  ;;  %p6018_p1 = scmp.lt.s32.totalorder %s6016_s12, %s6012_s21 }
 0x491   : > { %v4721_v55 = vpop.f32.mrf.mxu1 }
 0x492   : > { %v4246_v36 = vadd.f32 %v7736_v42, %v4157_v54  ;;  %v4722_v24 = vadd.f32 %v4721_v55, %v7917_v34  ;;  %p6014_p9 = pnand %p6013_p6, %p6182_p11  ;;  %p6019_p3 = por %p6018_p1, %p6017_p0 }
 0x494   : > { %v4295_v45 = vmul.f32 %v7705_v21, %v4246_v36  ;;  %4794 = vst [vmem:[%s7920_s25 + $0x28] sm:$0xff] %v4722_v24  ;;  %p6015_p13 = pneg %p6014_p9 }
 0x496   : > { %v4331_v28 = vadd.f32 %v7718_v0, %v4295_v45  ;;  %v4587_v56 = vpop.f32.mrf.mxu3  ;;  %p6020_p4 = pnand %p6019_p3, %p6015_p13 }
 0x497   : > { %v4159_v31 = vpop.f32.mrf.mxu2 }
 0x498   : > { %v4363_v57 = vmax.f32 %v4331_v28, 0.0  ;;  %v4160_v20 = vadd.f32 %v4159_v31, %v7834_v41 }
 0x499   : > { %v4724_v12 = vpop.f32.mrf.mxu1 }
 0x49a   : > { %v4725_v42 = vadd.f32 %v4724_v12, %v4575_v9  ;;  %v4387_v3 = vpack.c.bf16 %v4363_v57, %v4362_v33  ;;  %v4249_v34 = vadd.f32 %v7753_v37, %v4160_v20 }
 0x49b   : > { %5340 = vmatmul.msk.bf16.gmra.mxu3 %vm1027_vm2, %v4477_v50 }
 0x49c   : > { %4795 = vst [vmem:[%s7920_s25 + $0x30] sm:$0xff] %v4725_v42  ;;  %5361 = vmatmul.msk.bf16.gmra.mxu1 %vm1941_vm0, %v4387_v3  ;;  %v4296_v62 = vmul.f32 %v7705_v21, %v4249_v34 }
 0x49e   : > { %v4590_v53 = vpop.f32.mrf.mxu3  ;;  %v4332_v2 = vadd.f32 %v7718_v0, %v4296_v62 }
 0x49f   : > { %v4161_v61 = vpop.f32.mrf.mxu2 }
 0x4a0   : > { %v4162_v58 = vadd.f32 %v4161_v61, %v7849_v43  ;;  %v4364_v43 = vmax.f32 %v4332_v2, 0.0 }
 0x4a1   : > { %v4726_v41 = vpop.f32.mrf.mxu1 }
 0x4a2   : > { %v4251_v9 = vadd.f32 %v7769_v49, %v4162_v58  ;;  %v4727_v37 = vadd.f32 %v4726_v41, %v7935_v39 }
 0x4a4   : > { %v4297_v59 = vmul.f32 %v7705_v21, %v4251_v9  ;;  %4796 = vst [vmem:[%s7920_s25 + $0x38] sm:$0xff] %v4727_v37 }
 0x4a6   : > { %v4333_v14 = vadd.f32 %v7718_v0, %v4297_v59  ;;  %v4592_v40 = vpop.f32.mrf.mxu3 }
 0x4a7   : > { %v4164_v4 = vpop.f32.mrf.mxu2 }
 0x4a8   : > { %v4365_v7 = vmax.f32 %v4333_v14, 0.0  ;;  %v4165_v51 = vadd.f32 %v4164_v4, %v7858_v44 }
 0x4a9   : > { %v4729_v52 = vpop.f32.mrf.mxu1 }
 0x4aa   : > { %v4730_v10 = vadd.f32 %v4729_v52, %v4580_v25  ;;  %v4388_v49 = vpack.c.bf16 %v4365_v7, %v4364_v43  ;;  %v4254_v39 = vadd.f32 %v7780_v13, %v4165_v51 }
 0x4ab   : > { %5341 = vmatmul.msk.bf16.gmra.mxu3 %vm1027_vm2, %v4478_v27 }
 0x4ac   : > { %4797 = vst [vmem:[%s7920_s25 + $0x40] sm:$0xff] %v4730_v10  ;;  %5362 = vmatmul.msk.bf16.gmra.mxu1 %vm1941_vm0, %v4388_v49  ;;  %v4298_v19 = vmul.f32 %v7705_v21, %v4254_v39 }
 0x4ae   : > { %v4334_v47 = vadd.f32 %v7718_v0, %v4298_v19  ;;  %v4595_v55 = vpop.f32.mrf.mxu3 }
 0x4af   : > { %v4166_v63 = vpop.f32.mrf.mxu2 }
 0x4b0   : > { %v4167_v16 = vadd.f32 %v4166_v63, %v7873_v6  ;;  %v4366_v36 = vmax.f32 %v4334_v47, 0.0 }
 0x4b1   : > { %v4731_v44 = vpop.f32.mrf.mxu1 }
 0x4b2   : > { %v4256_v25 = vadd.f32 %v7800_v8, %v4167_v16  ;;  %v4732_v13 = vadd.f32 %v4731_v44, %v7953_v46 }
 0x4b4   : > { %v4299_v60 = vmul.f32 %v7705_v21, %v4256_v25  ;;  %4798 = vst [vmem:[%s7920_s25 + $0x48] sm:$0xff] %v4732_v13 }
 0x4b6   : > { %v4335_v1 = vadd.f32 %v7718_v0, %v4299_v60  ;;  %v4597_v20 = vpop.f32.mrf.mxu3 }
 0x4b7   : > { %v4169_v54 = vpop.f32.mrf.mxu2 }
 0x4b8   : > { %v4367_v24 = vmax.f32 %v4335_v1, 0.0  ;;  %v4170_v6 = vadd.f32 %v4169_v54, %v7880_v32 }
 0x4b9   : > { %v4734_v17 = vpop.f32.mrf.mxu1 }
 0x4ba   : > { %v4735_v45 = vadd.f32 %v4734_v17, %v4585_v26  ;;  %v4389_v28 = vpack.c.bf16 %v4367_v24, %v4366_v36  ;;  %v4259_v8 = vadd.f32 %v7816_v15, %v4170_v6 }
 0x4bc   : > { %4799 = vst [vmem:[%s7920_s25 + $0x50] sm:$0xff] %v4735_v45  ;;  %5363 = vmatmul.msk.bf16.gmra.mxu1 %vm1941_vm0, %v4389_v28  ;;  %v4300_v31 = vmul.f32 %v7705_v21, %v4259_v8 }
 0x4be   : > { %v4336_v42 = vadd.f32 %v7718_v0, %v4300_v31  ;;  %v4600_v62 = vpop.f32.mrf.mxu3 }
 0x4bf   : > { %v4171_v46 = vpop.f32.mrf.mxu2 }
 0x4c0   : > { %v4172_v33 = vadd.f32 %v4171_v46, %v7889_v38  ;;  %v4368_v34 = vmax.f32 %v4336_v42, 0.0 }
 0x4c1   : > { %v4736_v57 = vpop.f32.mrf.mxu1 }
 0x4c2   : > { %v4261_v12 = vadd.f32 %v7829_v35, %v4172_v33  ;;  %v4737_v32 = vadd.f32 %v4736_v57, %v4587_v56 }
 0x4c4   : > { %v4301_v26 = vmul.f32 %v7705_v21, %v4261_v12  ;;  %4800 = vst [vmem:[%s7920_s25 + $0x58] sm:$0xff] %v4737_v32 }
 0x4c6   : > { %v4337_v15 = vadd.f32 %v7718_v0, %v4301_v26 }
 0x4c7   : > { %v4174_v3 = vpop.f32.mrf.mxu2 }
 0x4c8   : > { %v4369_v23 = vmax.f32 %v4337_v15, 0.0  ;;  %v4175_v5 = vadd.f32 %v4174_v3, %v7896_v22 }
 0x4c9   : > { %v4739_v38 = vpop.f32.mrf.mxu1 }
 0x4ca   : > { %v4740_v50 = vadd.f32 %v4739_v38, %v4590_v53  ;;  %v4390_v61 = vpack.c.bf16 %v4369_v23, %v4368_v34  ;;  %v4264_v35 = vadd.f32 %v7847_v18, %v4175_v5  ;;  %v4602_v18 = vpop.f32.mrf.mxu3 }
 0x4cc   : > { %4801 = vst [vmem:[%s7920_s25 + $0x60] sm:$0xff] %v4740_v50  ;;  %5364 = vmatmul.msk.bf16.gmra.mxu1 %vm1941_vm0, %v4390_v61  ;;  %v4302_v58 = vmul.f32 %v7705_v21, %v4264_v35 }
 0x4ce   : > { %v4338_v53 = vadd.f32 %v7718_v0, %v4302_v58 }
 0x4cf   : > { %v4176_v56 = vpop.f32.mrf.mxu2 }
 0x4d0   : > { %v4177_v41 = vadd.f32 %v4176_v56, %v7907_v30  ;;  %v4370_v14 = vmax.f32 %v4338_v53, 0.0 }
 0x4d1   : > { %v4741_v9 = vpop.f32.mrf.mxu1 }
 0x4d2   : > { %v4266_v37 = vadd.f32 %v7860_v48, %v4177_v41  ;;  %v4742_v22 = vadd.f32 %v4741_v9, %v4592_v40  ;;  %v4605_v48 = vpop.f32.mrf.mxu3 }
 0x4d4   : > { %v4303_v2 = vmul.f32 %v7705_v21, %v4266_v37  ;;  %4802 = vst [vmem:[%s7920_s25 + $0x68] sm:$0xff] %v4742_v22 }
 0x4d6   : > { %v4339_v59 = vadd.f32 %v7718_v0, %v4303_v2 }
 0x4d8   : > { %v4371_v4 = vmax.f32 %v4339_v59, 0.0 }
 0x4d9   : > { %v4744_v43 = vpop.f32.mrf.mxu1 }
 0x4da   : > { %v4745_v7 = vadd.f32 %v4744_v43, %v4595_v55  ;;  %v4391_v30 = vpack.c.bf16 %v4371_v4, %v4370_v14  ;;  %v4607_v10 = vpop.f32.mrf.mxu3 }
 0x4dc   : > { %4803 = vst [vmem:[%s7920_s25 + $0x70] sm:$0xff] %v4745_v7  ;;  %5365 = vmatmul.msk.bf16.gmra.mxu1 %vm1941_vm0, %v4391_v30 }
 0x4e1   : > { %v4746_v51 = vpop.f32.mrf.mxu1 }
 0x4e2   : > { %v4747_v52 = vadd.f32 %v4746_v51, %v4597_v20  ;;  %v4610_v11 = vpop.f32.mrf.mxu3 }
 0x4e4   : > { %4804 = vst [vmem:[%s7920_s25 + $0x78] sm:$0xff] %v4747_v52 }
 0x4e9   : > { %v4749_v21 = vpop.f32.mrf.mxu1 }
 0x4ea   : > { %v4750_v49 = vadd.f32 %v4749_v21, %v4600_v62  ;;  %v4612_v27 = vpop.f32.mrf.mxu3 }
 0x4ec   : > { %4805 = vst [vmem:[%s7920_s25 + $0x80] sm:$0xff] %v4750_v49 }
 0x4f1   : > { %v4751_v0 = vpop.f32.mrf.mxu1 }
 0x4f2   : > { %v4752_v39 = vadd.f32 %v4751_v0, %v4602_v18  ;;  %v4615_v16 = vpop.f32.mrf.mxu3 }
 0x4f4   : > { %4806 = vst [vmem:[%s7920_s25 + $0x88] sm:$0xff] %v4752_v39 }
 0x4f9   : > { %v4754_v29 = vpop.f32.mrf.mxu1 }
 0x4fa   : > { %v4755_v40 = vadd.f32 %v4754_v29, %v4605_v48  ;;  %v4617_v47 = vpop.f32.mrf.mxu3 }
 0x4fc   : > { %4807 = vst [vmem:[%s7920_s25 + $0x90] sm:$0xff] %v4755_v40 }
 0x501   : > { %v4756_v63 = vpop.f32.mrf.mxu1 }
 0x502   : > { %v4757_v19 = vadd.f32 %v4756_v63, %v4607_v10  ;;  %v4620_v55 = vpop.f32.mrf.mxu3 }
 0x504   : > { %4808 = vst [vmem:[%s7920_s25 + $0x98] sm:$0xff] %v4757_v19 }
 0x509   : > { %v4759_v44 = vpop.f32.mrf.mxu1 }
 0x50a   : > { %v4760_v25 = vadd.f32 %v4759_v44, %v4610_v11  ;;  %v4622_v6 = vpop.f32.mrf.mxu3 }
 0x50c   : > { %4809 = vst [vmem:[%s7920_s25 + $0xa0] sm:$0xff] %v4760_v25 }
 0x511   : > { %v4761_v13 = vpop.f32.mrf.mxu1 }
 0x512   : > { %v4762_v60 = vadd.f32 %v4761_v13, %v4612_v27  ;;  %v4625_v28 = vpop.f32.mrf.mxu3 }
 0x514   : > { %4810 = vst [vmem:[%s7920_s25 + $0xa8] sm:$0xff] %v4762_v60 }
 0x519   : > { %v4764_v1 = vpop.f32.mrf.mxu1 }
 0x51a   : > { %v4765_v54 = vadd.f32 %v4764_v1, %v4615_v16  ;;  %v4627_v31 = vpop.f32.mrf.mxu3 }
 0x51c   : > { %4811 = vst [vmem:[%s7920_s25 + $0xb0] sm:$0xff] %v4765_v54 }
 0x521   : > { %v4766_v36 = vpop.f32.mrf.mxu1 }
 0x522   : > { %v4767_v24 = vadd.f32 %v4766_v36, %v4617_v47  ;;  %v4630_v32 = vpop.f32.mrf.mxu3 }
 0x524   : > { %4812 = vst [vmem:[%s7920_s25 + $0xb8] sm:$0xff] %v4767_v24 }
 0x529   : > { %v4769_v17 = vpop.f32.mrf.mxu1 }
 0x52a   : > { %v4770_v45 = vadd.f32 %v4769_v17, %v4620_v55  ;;  %v4632_v15 = vpop.f32.mrf.mxu3 }
 0x52c   : > { %4813 = vst [vmem:[%s7920_s25 + $0xc0] sm:$0xff] %v4770_v45 }
 0x531   : > { %v4771_v8 = vpop.f32.mrf.mxu1 }
 0x532   : > { %v4772_v46 = vadd.f32 %v4771_v8, %v4622_v6  ;;  %v4635_v23 = vpop.f32.mrf.mxu3 }
 0x534   : > { %4814 = vst [vmem:[%s7920_s25 + $0xc8] sm:$0xff] %v4772_v46 }
 0x539   : > { %v4774_v33 = vpop.f32.mrf.mxu1 }
 0x53a   : > { %v4775_v57 = vadd.f32 %v4774_v33, %v4625_v28  ;;  %v4637_v50 = vpop.f32.mrf.mxu3 }
 0x53c   : > { %4815 = vst [vmem:[%s7920_s25 + $0xd0] sm:$0xff] %v4775_v57 }
 0x541   : > { %v4776_v20 = vpop.f32.mrf.mxu1 }
 0x542   : > { %v4777_v12 = vadd.f32 %v4776_v20, %v4627_v31 }
 0x544   : > { %4816 = vst [vmem:[%s7920_s25 + $0xd8] sm:$0xff] %v4777_v12 }
 0x549   : > { %v4779_v42 = vpop.f32.mrf.mxu1 }
 0x54a   : > { %v4780_v26 = vadd.f32 %v4779_v42, %v4630_v32 }
 0x54c   : > { %4817 = vst [vmem:[%s7920_s25 + $0xe0] sm:$0xff] %v4780_v26 }
 0x551   : > { %v4781_v3 = vpop.f32.mrf.mxu1 }
 0x552   : > { %v4782_v34 = vadd.f32 %v4781_v3, %v4632_v15 }
 0x554   : > { %4818 = vst [vmem:[%s7920_s25 + $0xe8] sm:$0xff] %v4782_v34 }
 0x559   : > { %v4784_v5 = vpop.f32.mrf.mxu1 }
 0x55a   : > { %v4785_v38 = vadd.f32 %v4784_v5, %v4635_v23 }
 0x55c   : > { %4819 = vst [vmem:[%s7920_s25 + $0xf0] sm:$0xff] %v4785_v38 }
 0x561   : > { %v4786_v61 = vpop.f32.mrf.mxu1 }
 0x562   : > { %v4787_v62 = vadd.f32 %v4786_v61, %v4637_v50 }
 0x564   : > { %4820 = vst [vmem:[%s7920_s25 + $0xf8] sm:$0xff] %v4787_v62 }
 0x565   : > { %6023 = shalt.err (!%p6020_p4)
}
 0x566   : > { %s6070_s22 = smov 128   ;;  %s6071_s25 = smov 8  }
 0x567   : > { %5418 = dma.vmem_to_hbm [thread:$0]  (%p6182_p11), %s4836_s24, 4096, %s4838_s17, %s4822_s30, %s6070_s22, %s6070_s22, %s6071_s25  }
 0x568 PF: > { %s8101_s13 = sld [smem:[#allocation9_spill]]  ;;  %p8103_p7 = scmp.ge.s32.totalorder %s6062_s20, 2 }
 0x56a   : > { %p5425_p5 = pnand %p8103_p7, %p6186_p12 }
 0x56c   : > { %p5426_p8 = pneg %p5425_p5 }
 0x56e   : > { %s4852_s27 = sand.u32 1, %s8101_s13  }
 0x56f   : > { %s4853_s28 = scalar_lea.sflag [#allocation5], %s4852_s27 }
 0x570   : > { %6045 = dma.done.wait (%p5426_p8), %s4853_s28, 4096  }
 0x571   : > { %6047 = vsyncadd (%p5426_p8), %s4853_s28, 4294963200  ;;  %s8104_s20 = sld [smem:[#allocation11_spill]]  ;;  %s8107_s17 = smov %s6054_s18 }
 0x572   : > { %s8105_s19 = sld [smem:[#allocation10_spill]] }
 0x573   : > { %s8106_s21 = sld [smem:[#allocation12_spill]] }
 0x577   : > { %p24_p10 = scmp.ge.s32.totalorder %s8104_s20, 4  }
 0x578   : > { %s8108_s18 = smov %s8105_s19 }
 0x579   : > { %s8109_s19 = smov %s8106_s21  ;;  %26 = sbr.rel (!%p24_p10) target bundleno = 5 (0x5), region = 428 }
 0x57e   :  { %4859 = vsyncpa [#allocation4], 1 }
 0x57f   :  { %4861 = vsyncpa [#allocation4 + $0x1], 1 }
 0x580   :  { %4862 = vsyncpa [#allocation5], 1 }
 0x581   :  { %4864 = vsyncpa [#allocation5 + $0x1], 1 }

</bundles_post_ra>
